<compile_context>
chip_gen: v5e
topology: v5e:2x2
jax: 0.10.0
libtpu: 0.0.40
codegen_flags: <defaults>
</compile_context>

<pallas_src>
import numpy as np

import jax
import jax.numpy as jnp
from jax import lax
from jax.experimental import pallas as pl
from jax.experimental.pallas import tpu as pltpu


_BT_CAP = 128   # batch-tile cap; ~30 MiB peak VMEM at 128, fits all generations


# --------------------------------------------------------------------------- #
# In-kernel helpers
# --------------------------------------------------------------------------- #
def _sigmoid(x):
    # Exact sigmoid via a single EUP tanh: half the EUP pushes of exp+recip and
    # no approximate-reciprocal error.
    return 0.5 * jnp.tanh(0.5 * x) + 0.5


# --------------------------------------------------------------------------- #
# The fused LeNet kernel (one batch tile per grid step)
# --------------------------------------------------------------------------- #
def _lenet_kernel(x_ref, band1_ref, b1_ref, band2_ref, b2_ref,
                  p1m_ref, p2m_ref, w3_ref, b3_ref, w4_ref, b4_ref,
                  w5_ref, b5_ref, o_ref):
    bt = x_ref.shape[0]
    x = x_ref[...]                       # (bt, 32, 32) f32, conv1 pad=2 applied

    # ---- conv1 (1->6, 5x5, pad=2) + sigmoid, lane-dense (bt*28, 28*6) --------
    band1 = band1_ref[...]               # (5, 32, 168) bf16 row-band matrices
    acc1 = jnp.zeros((bt * 28, 168), jnp.float32)
    for kh in range(5):
        a = x[:, kh:kh + 28, :].reshape(bt * 28, 32).astype(jnp.bfloat16)
        acc1 = acc1 + jnp.dot(a, band1[kh], preferred_element_type=jnp.float32)
    c1 = _sigmoid(acc1 + b1_ref[...])    # rows=(b,h), cols=(w*6+c)

    # ---- avgpool1 2x2 + sigmoid ----------------------------------------------
    # H pairs via a lane-preserving row-pair reshape; W pairs via a tiny pooling
    # matmul (0.25 factors folded into p1m) so channels never land in lanes.
    cr = c1.reshape(bt * 14, 2, 168)
    hsum = (cr[:, 0, :] + cr[:, 1, :]).astype(jnp.bfloat16)      # (bt*14, 168)
    p1 = _sigmoid(jnp.dot(hsum, p1m_ref[...],
                          preferred_element_type=jnp.float32))   # (bt*14, 84)
    p1 = p1.reshape(bt, 14, 84)          # rows=(b, h'), cols=(w'*6 + c)

    # ---- conv2 (6->16, 5x5, valid) + sigmoid: band matmuls (K=84, N=160) -----
    band2 = band2_ref[...]               # (5, 84, 160) bf16
    acc2 = jnp.zeros((bt * 10, 160), jnp.float32)
    for kh in range(5):
        a = p1[:, kh:kh + 10, :].reshape(bt * 10, 84).astype(jnp.bfloat16)
        acc2 = acc2 + jnp.dot(a, band2[kh], preferred_element_type=jnp.float32)
    c2 = _sigmoid(acc2 + b2_ref[...])    # rows=(b,h), cols=(w*16+c)

    # ---- avgpool2 2x2 (no sigmoid, per the nn.Sequential) --------------------
    cr2 = c2.reshape(bt * 5, 2, 160)
    hsum2 = (cr2[:, 0, :] + cr2[:, 1, :]).astype(jnp.bfloat16)   # (bt*5, 160)
    p2 = jnp.dot(hsum2, p2m_ref[...], preferred_element_type=jnp.float32)
    p2 = p2.reshape(bt, 5, 80)           # rows=b, (h', w'*16 + c)

    # ---- MLP + softmax --------------------------------------------------------
    # fc1 as 5 (bt,80)x(80,120) matmuls; the PyTorch NCHW-flatten permutation is
    # pre-folded into w3 host-side (no lane-changing flatten reshape needed).
    w3 = w3_ref[...]                     # (5, 80, 120) bf16
    acc3 = jnp.zeros((bt, 120), jnp.float32)
    for h in range(5):
        acc3 = acc3 + jnp.dot(p2[:, h, :].astype(jnp.bfloat16), w3[h],
                              preferred_element_type=jnp.float32)
    h1 = _sigmoid(acc3 + b3_ref[...])
    h2 = _sigmoid(jnp.dot(h1.astype(jnp.bfloat16), w4_ref[...],
                          preferred_element_type=jnp.float32) + b4_ref[...])
    logits = jnp.dot(h2.astype(jnp.bfloat16), w5_ref[...],
                     preferred_element_type=jnp.float32) + b5_ref[...]
    z = logits - jnp.max(logits, axis=-1, keepdims=True)
    e = jnp.exp(z)
    probs = e / jnp.sum(e, axis=-1, keepdims=True)   # exact final normalization
    o_ref[...] = probs.reshape(bt, 1, 10)


# --------------------------------------------------------------------------- #
# Parameters (PyTorch layout) and one-time repack into kernel layout
# --------------------------------------------------------------------------- #
def init_params(key):
    """Deterministic synthetic parameters in PyTorch layout."""
    ks = jax.random.split(key, 10)
    s = 0.1
    return {
        "w1": s * jax.random.normal(ks[0], (6, 1, 5, 5), jnp.float32),
        "b1": s * jax.random.normal(ks[1], (6,), jnp.float32),
        "w2": s * jax.random.normal(ks[2], (16, 6, 5, 5), jnp.float32),
        "b2": s * jax.random.normal(ks[3], (16,), jnp.float32),
        "w3": s * jax.random.normal(ks[4], (120, 400), jnp.float32),
        "b3": s * jax.random.normal(ks[5], (120,), jnp.float32),
        "w4": s * jax.random.normal(ks[6], (84, 120), jnp.float32),
        "b4": s * jax.random.normal(ks[7], (84,), jnp.float32),
        "w5": s * jax.random.normal(ks[8], (10, 84), jnp.float32),
        "b5": s * jax.random.normal(ks[9], (10,), jnp.float32),
    }


def prepare_params(params):
    """One-time host-side repack: all transposes/permutations/band expansions
    happen here, in numpy; weights that feed the MXU are stored as bf16."""
    w1 = np.asarray(params["w1"])      # (6, 1, 5, 5)
    w2 = np.asarray(params["w2"])      # (16, 6, 5, 5)
    w3 = np.asarray(params["w3"])      # (120, 400)

    # conv1 row-band matrices: band1[kh, wo+kw, wo*6+co] = w1[co, 0, kh, kw]
    band1 = np.zeros((5, 32, 28 * 6), np.float32)
    for kh in range(5):
        for wo in range(28):
            for kw in range(5):
                band1[kh, wo + kw, wo * 6:(wo + 1) * 6] = w1[:, 0, kh, kw]
    b1t = np.tile(np.asarray(params["b1"]), 28).reshape(1, 168)

    # conv2 row-band matrices: band2[kh, win*6+ci, wo*16+co] = w2[co, ci, kh, win-wo]
    band2 = np.zeros((5, 14 * 6, 10 * 16), np.float32)
    for kh in range(5):
        for wo in range(10):
            for kw in range(5):
                win = wo + kw
                band2[kh, win * 6:(win + 1) * 6, wo * 16:(wo + 1) * 16] = \
                    w2[:, :, kh, kw].T
    b2t = np.tile(np.asarray(params["b2"]), 10).reshape(1, 160)

    # W-direction 2x average-pool matrices (0.25 factor folded in).
    p1m = np.zeros((168, 84), np.float32)
    for w in range(28):
        for c in range(6):
            p1m[w * 6 + c, (w // 2) * 6 + c] = 0.25
    p2m = np.zeros((160, 80), np.float32)
    for w in range(10):
        for c in range(16):
            p2m[w * 16 + c, (w // 2) * 16 + c] = 0.25

    # fc1: permute the 400 input rows from PyTorch's NCHW flatten (c*25+h*5+w)
    # to the kernel's (h, w*16+c) order, then split by h for the 5-matmul form.
    w3p = np.transpose(w3.T.reshape(16, 5, 5, 120), (1, 2, 0, 3)).reshape(400, 120)
    w3h = w3p.reshape(5, 80, 120)

    bf = jnp.bfloat16
    return {
        "band1": jnp.asarray(band1, bf),
        "b1t": jnp.asarray(b1t),
        "band2": jnp.asarray(band2, bf),
        "b2t": jnp.asarray(b2t),
        "p1m": jnp.asarray(p1m, bf),
        "p2m": jnp.asarray(p2m, bf),
        "w3h": jnp.asarray(w3h, bf),
        "b3": jnp.asarray(np.asarray(params["b3"]).reshape(1, 120)),
        "w4": jnp.asarray(np.asarray(params["w4"]).T, bf),
        "b4": jnp.asarray(np.asarray(params["b4"]).reshape(1, 84)),
        "w5": jnp.asarray(np.asarray(params["w5"]).T, bf),
        "b5": jnp.asarray(np.asarray(params["b5"]).reshape(1, 10)),
    }


# --------------------------------------------------------------------------- #
# Forward pass: one fused pallas_call over a parallel batch grid
# --------------------------------------------------------------------------- #
def _batch_tile(B):
    """Single full-batch step for B <= cap; otherwise 128-sample tiles (the
    batch is zero-padded up to a multiple, so odd B never degrades to bt=1)."""
    return B if B <= _BT_CAP else _BT_CAP


@jax.jit
def lenet_forward(x_nchw, kparams):
    B = x_nchw.shape[0]
    bt = _batch_tile(B)
    Bp = ((B + bt - 1) // bt) * bt
    # conv1 pad=2 on H/W + batch pad to a multiple of the batch tile (Cin == 1,
    # so NCHW -> (B,28,28) is a free reshape).
    xp = jnp.pad(x_nchw.reshape(B, 28, 28), ((0, Bp - B), (2, 2), (2, 2)))

    grid = (Bp // bt,)

    def full(shape):
        # Whole (small) weight resident each step; block equals full array dims.
        return pl.BlockSpec(shape, lambda i: (0,) * len(shape))

    out = pl.pallas_call(
        _lenet_kernel,
        out_shape=jax.ShapeDtypeStruct((Bp, 1, 10), jnp.float32),
        grid=grid,
        in_specs=[
            pl.BlockSpec((bt, 32, 32), lambda i: (i, 0, 0)),   # batch-tiled input
            full((5, 32, 168)), full((1, 168)),                # conv1 bands + bias
            full((5, 84, 160)), full((1, 160)),                # conv2 bands + bias
            full((168, 84)), full((160, 80)),                  # W-pool matrices
            full((5, 80, 120)), full((1, 120)),                # fc1
            full((120, 84)), full((1, 84)),                    # fc2
            full((84, 10)), full((1, 10)),                     # fc3
        ],
        out_specs=pl.BlockSpec((bt, 1, 10), lambda i: (i, 0, 0)),
        compiler_params=pltpu.CompilerParams(
            dimension_semantics=("parallel",),   # shard batch steps across v7x TCs
            vmem_limit_bytes=48 * 1024 * 1024,   # fits bt=128; within v7x's 64 MiB
        ),
    )(xp, kparams["band1"], kparams["b1t"], kparams["band2"], kparams["b2t"],
      kparams["p1m"], kparams["p2m"], kparams["w3h"], kparams["b3"],
      kparams["w4"], kparams["b4"], kparams["w5"], kparams["b5"])
    return out.reshape(Bp, 10)[:B]


# --------------------------------------------------------------------------- #
# Pure-JAX/XLA reference (exact f32 math) for a structural correctness check
# --------------------------------------------------------------------------- #
def lenet_reference(x_nchw, params):
    hi = lax.Precision.HIGHEST
    B = x_nchw.shape[0]
    c1 = lax.conv_general_dilated(
        x_nchw, params["w1"], (1, 1), ((2, 2), (2, 2)),
        dimension_numbers=("NCHW", "OIHW", "NCHW"), precision=hi)
    c1 = jax.nn.sigmoid(c1 + params["b1"].reshape(1, 6, 1, 1))
    p1 = jax.nn.sigmoid(c1.reshape(B, 6, 14, 2, 14, 2).mean(axis=(3, 5)))
    c2 = lax.conv_general_dilated(
        p1, params["w2"], (1, 1), ((0, 0), (0, 0)),
        dimension_numbers=("NCHW", "OIHW", "NCHW"), precision=hi)
    c2 = jax.nn.sigmoid(c2 + params["b2"].reshape(1, 16, 1, 1))
    p2 = c2.reshape(B, 16, 5, 2, 5, 2).mean(axis=(3, 5))
    flat = p2.reshape(B, 400)                               # PyTorch NCHW flatten
    h = jax.nn.sigmoid(jnp.dot(flat, params["w3"].T, precision=hi) + params["b3"])
    h = jax.nn.sigmoid(jnp.dot(h, params["w4"].T, precision=hi) + params["b4"])
    logits = jnp.dot(h, params["w5"].T, precision=hi) + params["b5"]
    return jax.nn.softmax(logits, axis=-1)


if __name__ == "__main__":
    key = jax.random.PRNGKey(0)
    kx, kp = jax.random.split(key)
    x = jax.random.normal(kx, (2, 1, 28, 28), jnp.float32)   # NCHW, like PyTorch
    params = init_params(kp)
    kparams = prepare_params(params)                         # one-time repack

    y = jax.block_until_ready(lenet_forward(x, kparams))

    assert y.shape == (2, 10)
    assert bool(jnp.all(jnp.isfinite(y)))
    assert bool(jnp.allclose(jnp.sum(y, axis=1), 1.0, atol=1e-4))  # softmax rows

    # Structural correctness vs. an exact-f32 XLA reference (tolerance covers the
    # bf16 MXU operands used inside the kernel).
    y_ref = lenet_reference(x, params)
    assert bool(jnp.allclose(y, y_ref, atol=2e-2)), \
        f"max abs diff {float(jnp.max(jnp.abs(y - y_ref)))}"

    print("KERNEL_OK")
</pallas_src>

<mosaic_0001>
module attributes {stable_mosaic.version = 11 : i64} {
  func.func @_lenet_kernel(%arg0: i32, %arg1: memref<2x32x32xf32, #tpu.memory_space<vmem>>, %arg2: memref<5x32x168xbf16, #tpu.memory_space<vmem>>, %arg3: memref<1x168xf32, #tpu.memory_space<vmem>>, %arg4: memref<5x84x160xbf16, #tpu.memory_space<vmem>>, %arg5: memref<1x160xf32, #tpu.memory_space<vmem>>, %arg6: memref<168x84xbf16, #tpu.memory_space<vmem>>, %arg7: memref<160x80xbf16, #tpu.memory_space<vmem>>, %arg8: memref<5x80x120xbf16, #tpu.memory_space<vmem>>, %arg9: memref<1x120xf32, #tpu.memory_space<vmem>>, %arg10: memref<120x84xbf16, #tpu.memory_space<vmem>>, %arg11: memref<1x84xf32, #tpu.memory_space<vmem>>, %arg12: memref<84x10xbf16, #tpu.memory_space<vmem>>, %arg13: memref<1x10xf32, #tpu.memory_space<vmem>>, %arg14: memref<2x1x10xf32, #tpu.memory_space<vmem>>) attributes {dimension_semantics = [#tpu.dimension_semantics<parallel>], iteration_bounds = array<i64: 1>, scalar_prefetch = 0 : i64, scratch_operands = 0 : i64, tpu.core_type = #tpu.core_type<tc>, window_params = [{transform_indices = @transform_0, window_bounds = array<i64: 2, 32, 32>}, {pipeline_mode = #tpu.pipeline_mode<synchronous>, transform_indices = @transform_1, window_bounds = array<i64: 5, 32, 168>}, {pipeline_mode = #tpu.pipeline_mode<synchronous>, transform_indices = @transform_2, window_bounds = array<i64: 1, 168>}, {pipeline_mode = #tpu.pipeline_mode<synchronous>, transform_indices = @transform_3, window_bounds = array<i64: 5, 84, 160>}, {pipeline_mode = #tpu.pipeline_mode<synchronous>, transform_indices = @transform_4, window_bounds = array<i64: 1, 160>}, {pipeline_mode = #tpu.pipeline_mode<synchronous>, transform_indices = @transform_5, window_bounds = array<i64: 168, 84>}, {pipeline_mode = #tpu.pipeline_mode<synchronous>, transform_indices = @transform_6, window_bounds = array<i64: 160, 80>}, {pipeline_mode = #tpu.pipeline_mode<synchronous>, transform_indices = @transform_7, window_bounds = array<i64: 5, 80, 120>}, {pipeline_mode = #tpu.pipeline_mode<synchronous>, transform_indices = @transform_8, window_bounds = array<i64: 1, 120>}, {pipeline_mode = #tpu.pipeline_mode<synchronous>, transform_indices = @transform_9, window_bounds = array<i64: 120, 84>}, {pipeline_mode = #tpu.pipeline_mode<synchronous>, transform_indices = @transform_10, window_bounds = array<i64: 1, 84>}, {pipeline_mode = #tpu.pipeline_mode<synchronous>, transform_indices = @transform_11, window_bounds = array<i64: 84, 10>}, {pipeline_mode = #tpu.pipeline_mode<synchronous>, transform_indices = @transform_12, window_bounds = array<i64: 1, 10>}, {transform_indices = @transform_13, window_bounds = array<i64: 2, 1, 10>}]} {
    %c0 = arith.constant 0 : index
    %c0_0 = arith.constant 0 : index
    %c0_1 = arith.constant 0 : index
    %0 = vector.load %arg1[%c0, %c0_0, %c0_1] : memref<2x32x32xf32, #tpu.memory_space<vmem>>, vector<2x32x32xf32>
    %c0_2 = arith.constant 0 : index
    %c0_3 = arith.constant 0 : index
    %c0_4 = arith.constant 0 : index
    %1 = vector.load %arg2[%c0_2, %c0_3, %c0_4] : memref<5x32x168xbf16, #tpu.memory_space<vmem>>, vector<5x32x168xbf16>
    %cst = arith.constant 0.000000e+00 : f32
    %2 = vector.broadcast %cst : f32 to vector<56x168xf32>
    %3 = vector.extract_strided_slice %0 {offsets = [0, 0, 0], sizes = [2, 28, 32], strides = [1, 1, 1]} : vector<2x32x32xf32> to vector<2x28x32xf32>
    %4 = vector.shape_cast %3 : vector<2x28x32xf32> to vector<56x32xf32>
    %5 = arith.truncf %4 : vector<56x32xf32> to vector<56x32xbf16>
    %6 = vector.extract_strided_slice %1 {offsets = [0, 0, 0], sizes = [1, 32, 168], strides = [1, 1, 1]} : vector<5x32x168xbf16> to vector<1x32x168xbf16>
    %7 = vector.shape_cast %6 : vector<1x32x168xbf16> to vector<32x168xbf16>
    %cst_5 = arith.constant dense<0.000000e+00> : vector<56x168xf32>
    %8 = tpu.matmul %5, %7, %cst_5 {dimension_numbers = #tpu.dot_dimension_numbers<[1], [0], [0], [1], [0, 0, 1, 1], [], []>} : vector<56x32xbf16>, vector<32x168xbf16>, vector<56x168xf32> -> vector<56x168xf32>
    %9 = arith.addf %2, %8 : vector<56x168xf32>
    %10 = vector.extract_strided_slice %0 {offsets = [0, 1, 0], sizes = [2, 28, 32], strides = [1, 1, 1]} : vector<2x32x32xf32> to vector<2x28x32xf32>
    %11 = vector.shape_cast %10 : vector<2x28x32xf32> to vector<56x32xf32>
    %12 = arith.truncf %11 : vector<56x32xf32> to vector<56x32xbf16>
    %13 = vector.extract_strided_slice %1 {offsets = [1, 0, 0], sizes = [1, 32, 168], strides = [1, 1, 1]} : vector<5x32x168xbf16> to vector<1x32x168xbf16>
    %14 = vector.shape_cast %13 : vector<1x32x168xbf16> to vector<32x168xbf16>
    %cst_6 = arith.constant dense<0.000000e+00> : vector<56x168xf32>
    %15 = tpu.matmul %12, %14, %cst_6 {dimension_numbers = #tpu.dot_dimension_numbers<[1], [0], [0], [1], [0, 0, 1, 1], [], []>} : vector<56x32xbf16>, vector<32x168xbf16>, vector<56x168xf32> -> vector<56x168xf32>
    %16 = arith.addf %9, %15 : vector<56x168xf32>
    %17 = vector.extract_strided_slice %0 {offsets = [0, 2, 0], sizes = [2, 28, 32], strides = [1, 1, 1]} : vector<2x32x32xf32> to vector<2x28x32xf32>
    %18 = vector.shape_cast %17 : vector<2x28x32xf32> to vector<56x32xf32>
    %19 = arith.truncf %18 : vector<56x32xf32> to vector<56x32xbf16>
    %20 = vector.extract_strided_slice %1 {offsets = [2, 0, 0], sizes = [1, 32, 168], strides = [1, 1, 1]} : vector<5x32x168xbf16> to vector<1x32x168xbf16>
    %21 = vector.shape_cast %20 : vector<1x32x168xbf16> to vector<32x168xbf16>
    %cst_7 = arith.constant dense<0.000000e+00> : vector<56x168xf32>
    %22 = tpu.matmul %19, %21, %cst_7 {dimension_numbers = #tpu.dot_dimension_numbers<[1], [0], [0], [1], [0, 0, 1, 1], [], []>} : vector<56x32xbf16>, vector<32x168xbf16>, vector<56x168xf32> -> vector<56x168xf32>
    %23 = arith.addf %16, %22 : vector<56x168xf32>
    %24 = vector.extract_strided_slice %0 {offsets = [0, 3, 0], sizes = [2, 28, 32], strides = [1, 1, 1]} : vector<2x32x32xf32> to vector<2x28x32xf32>
    %25 = vector.shape_cast %24 : vector<2x28x32xf32> to vector<56x32xf32>
    %26 = arith.truncf %25 : vector<56x32xf32> to vector<56x32xbf16>
    %27 = vector.extract_strided_slice %1 {offsets = [3, 0, 0], sizes = [1, 32, 168], strides = [1, 1, 1]} : vector<5x32x168xbf16> to vector<1x32x168xbf16>
    %28 = vector.shape_cast %27 : vector<1x32x168xbf16> to vector<32x168xbf16>
    %cst_8 = arith.constant dense<0.000000e+00> : vector<56x168xf32>
    %29 = tpu.matmul %26, %28, %cst_8 {dimension_numbers = #tpu.dot_dimension_numbers<[1], [0], [0], [1], [0, 0, 1, 1], [], []>} : vector<56x32xbf16>, vector<32x168xbf16>, vector<56x168xf32> -> vector<56x168xf32>
    %30 = arith.addf %23, %29 : vector<56x168xf32>
    %31 = vector.extract_strided_slice %0 {offsets = [0, 4, 0], sizes = [2, 28, 32], strides = [1, 1, 1]} : vector<2x32x32xf32> to vector<2x28x32xf32>
    %32 = vector.shape_cast %31 : vector<2x28x32xf32> to vector<56x32xf32>
    %33 = arith.truncf %32 : vector<56x32xf32> to vector<56x32xbf16>
    %34 = vector.extract_strided_slice %1 {offsets = [4, 0, 0], sizes = [1, 32, 168], strides = [1, 1, 1]} : vector<5x32x168xbf16> to vector<1x32x168xbf16>
    %35 = vector.shape_cast %34 : vector<1x32x168xbf16> to vector<32x168xbf16>
    %cst_9 = arith.constant dense<0.000000e+00> : vector<56x168xf32>
    %36 = tpu.matmul %33, %35, %cst_9 {dimension_numbers = #tpu.dot_dimension_numbers<[1], [0], [0], [1], [0, 0, 1, 1], [], []>} : vector<56x32xbf16>, vector<32x168xbf16>, vector<56x168xf32> -> vector<56x168xf32>
    %37 = arith.addf %30, %36 : vector<56x168xf32>
    %c0_10 = arith.constant 0 : index
    %c0_11 = arith.constant 0 : index
    %38 = vector.load %arg3[%c0_10, %c0_11] : memref<1x168xf32, #tpu.memory_space<vmem>>, vector<1x168xf32>
    %39 = vector.broadcast %38 : vector<1x168xf32> to vector<56x168xf32>
    %40 = arith.addf %37, %39 : vector<56x168xf32>
    %cst_12 = arith.constant 5.000000e-01 : f32
    %41 = vector.broadcast %cst_12 : f32 to vector<56x168xf32>
    %42 = arith.mulf %41, %40 : vector<56x168xf32>
    %43 = math.tanh %42 : vector<56x168xf32>
    %cst_13 = arith.constant 5.000000e-01 : f32
    %44 = vector.broadcast %cst_13 : f32 to vector<56x168xf32>
    %45 = arith.mulf %44, %43 : vector<56x168xf32>
    %cst_14 = arith.constant 5.000000e-01 : f32
    %46 = vector.broadcast %cst_14 : f32 to vector<56x168xf32>
    %47 = arith.addf %45, %46 : vector<56x168xf32>
    %48 = vector.shape_cast %47 : vector<56x168xf32> to vector<28x2x168xf32>
    %49 = vector.extract_strided_slice %48 {offsets = [0, 0, 0], sizes = [28, 1, 168], strides = [1, 1, 1]} : vector<28x2x168xf32> to vector<28x1x168xf32>
    %50 = vector.shape_cast %49 : vector<28x1x168xf32> to vector<28x168xf32>
    %51 = vector.extract_strided_slice %48 {offsets = [0, 1, 0], sizes = [28, 1, 168], strides = [1, 1, 1]} : vector<28x2x168xf32> to vector<28x1x168xf32>
    %52 = vector.shape_cast %51 : vector<28x1x168xf32> to vector<28x168xf32>
    %53 = arith.addf %50, %52 : vector<28x168xf32>
    %54 = arith.truncf %53 : vector<28x168xf32> to vector<28x168xbf16>
    %c0_15 = arith.constant 0 : index
    %c0_16 = arith.constant 0 : index
    %55 = vector.load %arg6[%c0_15, %c0_16] : memref<168x84xbf16, #tpu.memory_space<vmem>>, vector<168x84xbf16>
    %cst_17 = arith.constant dense<0.000000e+00> : vector<28x84xf32>
    %56 = tpu.matmul %54, %55, %cst_17 {dimension_numbers = #tpu.dot_dimension_numbers<[1], [0], [0], [1], [0, 0, 1, 1], [], []>} : vector<28x168xbf16>, vector<168x84xbf16>, vector<28x84xf32> -> vector<28x84xf32>
    %cst_18 = arith.constant 5.000000e-01 : f32
    %57 = vector.broadcast %cst_18 : f32 to vector<28x84xf32>
    %58 = arith.mulf %57, %56 : vector<28x84xf32>
    %59 = math.tanh %58 : vector<28x84xf32>
    %cst_19 = arith.constant 5.000000e-01 : f32
    %60 = vector.broadcast %cst_19 : f32 to vector<28x84xf32>
    %61 = arith.mulf %60, %59 : vector<28x84xf32>
    %cst_20 = arith.constant 5.000000e-01 : f32
    %62 = vector.broadcast %cst_20 : f32 to vector<28x84xf32>
    %63 = arith.addf %61, %62 : vector<28x84xf32>
    %64 = vector.shape_cast %63 : vector<28x84xf32> to vector<2x14x84xf32>
    %c0_21 = arith.constant 0 : index
    %c0_22 = arith.constant 0 : index
    %c0_23 = arith.constant 0 : index
    %65 = vector.load %arg4[%c0_21, %c0_22, %c0_23] : memref<5x84x160xbf16, #tpu.memory_space<vmem>>, vector<5x84x160xbf16>
    %cst_24 = arith.constant 0.000000e+00 : f32
    %66 = vector.broadcast %cst_24 : f32 to vector<20x160xf32>
    %67 = vector.extract_strided_slice %64 {offsets = [0, 0, 0], sizes = [2, 10, 84], strides = [1, 1, 1]} : vector<2x14x84xf32> to vector<2x10x84xf32>
    %68 = vector.shape_cast %67 : vector<2x10x84xf32> to vector<20x84xf32>
    %69 = arith.truncf %68 : vector<20x84xf32> to vector<20x84xbf16>
    %70 = vector.extract_strided_slice %65 {offsets = [0, 0, 0], sizes = [1, 84, 160], strides = [1, 1, 1]} : vector<5x84x160xbf16> to vector<1x84x160xbf16>
    %71 = vector.shape_cast %70 : vector<1x84x160xbf16> to vector<84x160xbf16>
    %cst_25 = arith.constant dense<0.000000e+00> : vector<20x160xf32>
    %72 = tpu.matmul %69, %71, %cst_25 {dimension_numbers = #tpu.dot_dimension_numbers<[1], [0], [0], [1], [0, 0, 1, 1], [], []>} : vector<20x84xbf16>, vector<84x160xbf16>, vector<20x160xf32> -> vector<20x160xf32>
    %73 = arith.addf %66, %72 : vector<20x160xf32>
    %74 = vector.extract_strided_slice %64 {offsets = [0, 1, 0], sizes = [2, 10, 84], strides = [1, 1, 1]} : vector<2x14x84xf32> to vector<2x10x84xf32>
    %75 = vector.shape_cast %74 : vector<2x10x84xf32> to vector<20x84xf32>
    %76 = arith.truncf %75 : vector<20x84xf32> to vector<20x84xbf16>
    %77 = vector.extract_strided_slice %65 {offsets = [1, 0, 0], sizes = [1, 84, 160], strides = [1, 1, 1]} : vector<5x84x160xbf16> to vector<1x84x160xbf16>
    %78 = vector.shape_cast %77 : vector<1x84x160xbf16> to vector<84x160xbf16>
    %cst_26 = arith.constant dense<0.000000e+00> : vector<20x160xf32>
    %79 = tpu.matmul %76, %78, %cst_26 {dimension_numbers = #tpu.dot_dimension_numbers<[1], [0], [0], [1], [0, 0, 1, 1], [], []>} : vector<20x84xbf16>, vector<84x160xbf16>, vector<20x160xf32> -> vector<20x160xf32>
    %80 = arith.addf %73, %79 : vector<20x160xf32>
    %81 = vector.extract_strided_slice %64 {offsets = [0, 2, 0], sizes = [2, 10, 84], strides = [1, 1, 1]} : vector<2x14x84xf32> to vector<2x10x84xf32>
    %82 = vector.shape_cast %81 : vector<2x10x84xf32> to vector<20x84xf32>
    %83 = arith.truncf %82 : vector<20x84xf32> to vector<20x84xbf16>
    %84 = vector.extract_strided_slice %65 {offsets = [2, 0, 0], sizes = [1, 84, 160], strides = [1, 1, 1]} : vector<5x84x160xbf16> to vector<1x84x160xbf16>
    %85 = vector.shape_cast %84 : vector<1x84x160xbf16> to vector<84x160xbf16>
    %cst_27 = arith.constant dense<0.000000e+00> : vector<20x160xf32>
    %86 = tpu.matmul %83, %85, %cst_27 {dimension_numbers = #tpu.dot_dimension_numbers<[1], [0], [0], [1], [0, 0, 1, 1], [], []>} : vector<20x84xbf16>, vector<84x160xbf16>, vector<20x160xf32> -> vector<20x160xf32>
    %87 = arith.addf %80, %86 : vector<20x160xf32>
    %88 = vector.extract_strided_slice %64 {offsets = [0, 3, 0], sizes = [2, 10, 84], strides = [1, 1, 1]} : vector<2x14x84xf32> to vector<2x10x84xf32>
    %89 = vector.shape_cast %88 : vector<2x10x84xf32> to vector<20x84xf32>
    %90 = arith.truncf %89 : vector<20x84xf32> to vector<20x84xbf16>
    %91 = vector.extract_strided_slice %65 {offsets = [3, 0, 0], sizes = [1, 84, 160], strides = [1, 1, 1]} : vector<5x84x160xbf16> to vector<1x84x160xbf16>
    %92 = vector.shape_cast %91 : vector<1x84x160xbf16> to vector<84x160xbf16>
    %cst_28 = arith.constant dense<0.000000e+00> : vector<20x160xf32>
    %93 = tpu.matmul %90, %92, %cst_28 {dimension_numbers = #tpu.dot_dimension_numbers<[1], [0], [0], [1], [0, 0, 1, 1], [], []>} : vector<20x84xbf16>, vector<84x160xbf16>, vector<20x160xf32> -> vector<20x160xf32>
    %94 = arith.addf %87, %93 : vector<20x160xf32>
    %95 = vector.extract_strided_slice %64 {offsets = [0, 4, 0], sizes = [2, 10, 84], strides = [1, 1, 1]} : vector<2x14x84xf32> to vector<2x10x84xf32>
    %96 = vector.shape_cast %95 : vector<2x10x84xf32> to vector<20x84xf32>
    %97 = arith.truncf %96 : vector<20x84xf32> to vector<20x84xbf16>
    %98 = vector.extract_strided_slice %65 {offsets = [4, 0, 0], sizes = [1, 84, 160], strides = [1, 1, 1]} : vector<5x84x160xbf16> to vector<1x84x160xbf16>
    %99 = vector.shape_cast %98 : vector<1x84x160xbf16> to vector<84x160xbf16>
    %cst_29 = arith.constant dense<0.000000e+00> : vector<20x160xf32>
    %100 = tpu.matmul %97, %99, %cst_29 {dimension_numbers = #tpu.dot_dimension_numbers<[1], [0], [0], [1], [0, 0, 1, 1], [], []>} : vector<20x84xbf16>, vector<84x160xbf16>, vector<20x160xf32> -> vector<20x160xf32>
    %101 = arith.addf %94, %100 : vector<20x160xf32>
    %c0_30 = arith.constant 0 : index
    %c0_31 = arith.constant 0 : index
    %102 = vector.load %arg5[%c0_30, %c0_31] : memref<1x160xf32, #tpu.memory_space<vmem>>, vector<1x160xf32>
    %103 = vector.broadcast %102 : vector<1x160xf32> to vector<20x160xf32>
    %104 = arith.addf %101, %103 : vector<20x160xf32>
    %cst_32 = arith.constant 5.000000e-01 : f32
    %105 = vector.broadcast %cst_32 : f32 to vector<20x160xf32>
    %106 = arith.mulf %105, %104 : vector<20x160xf32>
    %107 = math.tanh %106 : vector<20x160xf32>
    %cst_33 = arith.constant 5.000000e-01 : f32
    %108 = vector.broadcast %cst_33 : f32 to vector<20x160xf32>
    %109 = arith.mulf %108, %107 : vector<20x160xf32>
    %cst_34 = arith.constant 5.000000e-01 : f32
    %110 = vector.broadcast %cst_34 : f32 to vector<20x160xf32>
    %111 = arith.addf %109, %110 : vector<20x160xf32>
    %112 = vector.shape_cast %111 : vector<20x160xf32> to vector<10x2x160xf32>
    %113 = vector.extract_strided_slice %112 {offsets = [0, 0, 0], sizes = [10, 1, 160], strides = [1, 1, 1]} : vector<10x2x160xf32> to vector<10x1x160xf32>
    %114 = vector.shape_cast %113 : vector<10x1x160xf32> to vector<10x160xf32>
    %115 = vector.extract_strided_slice %112 {offsets = [0, 1, 0], sizes = [10, 1, 160], strides = [1, 1, 1]} : vector<10x2x160xf32> to vector<10x1x160xf32>
    %116 = vector.shape_cast %115 : vector<10x1x160xf32> to vector<10x160xf32>
    %117 = arith.addf %114, %116 : vector<10x160xf32>
    %118 = arith.truncf %117 : vector<10x160xf32> to vector<10x160xbf16>
    %c0_35 = arith.constant 0 : index
    %c0_36 = arith.constant 0 : index
    %119 = vector.load %arg7[%c0_35, %c0_36] : memref<160x80xbf16, #tpu.memory_space<vmem>>, vector<160x80xbf16>
    %cst_37 = arith.constant dense<0.000000e+00> : vector<10x80xf32>
    %120 = tpu.matmul %118, %119, %cst_37 {dimension_numbers = #tpu.dot_dimension_numbers<[1], [0], [0], [1], [0, 0, 1, 1], [], []>} : vector<10x160xbf16>, vector<160x80xbf16>, vector<10x80xf32> -> vector<10x80xf32>
    %121 = vector.shape_cast %120 : vector<10x80xf32> to vector<2x5x80xf32>
    %c0_38 = arith.constant 0 : index
    %c0_39 = arith.constant 0 : index
    %c0_40 = arith.constant 0 : index
    %122 = vector.load %arg8[%c0_38, %c0_39, %c0_40] : memref<5x80x120xbf16, #tpu.memory_space<vmem>>, vector<5x80x120xbf16>
    %cst_41 = arith.constant 0.000000e+00 : f32
    %123 = vector.broadcast %cst_41 : f32 to vector<2x120xf32>
    %124 = vector.extract_strided_slice %121 {offsets = [0, 0, 0], sizes = [2, 1, 80], strides = [1, 1, 1]} : vector<2x5x80xf32> to vector<2x1x80xf32>
    %125 = vector.shape_cast %124 : vector<2x1x80xf32> to vector<2x80xf32>
    %126 = arith.truncf %125 : vector<2x80xf32> to vector<2x80xbf16>
    %127 = vector.extract_strided_slice %122 {offsets = [0, 0, 0], sizes = [1, 80, 120], strides = [1, 1, 1]} : vector<5x80x120xbf16> to vector<1x80x120xbf16>
    %128 = vector.shape_cast %127 : vector<1x80x120xbf16> to vector<80x120xbf16>
    %cst_42 = arith.constant dense<0.000000e+00> : vector<2x120xf32>
    %129 = tpu.matmul %126, %128, %cst_42 {dimension_numbers = #tpu.dot_dimension_numbers<[1], [0], [0], [1], [0, 0, 1, 1], [], []>} : vector<2x80xbf16>, vector<80x120xbf16>, vector<2x120xf32> -> vector<2x120xf32>
    %130 = arith.addf %123, %129 : vector<2x120xf32>
    %131 = vector.extract_strided_slice %121 {offsets = [0, 1, 0], sizes = [2, 1, 80], strides = [1, 1, 1]} : vector<2x5x80xf32> to vector<2x1x80xf32>
    %132 = vector.shape_cast %131 : vector<2x1x80xf32> to vector<2x80xf32>
    %133 = arith.truncf %132 : vector<2x80xf32> to vector<2x80xbf16>
    %134 = vector.extract_strided_slice %122 {offsets = [1, 0, 0], sizes = [1, 80, 120], strides = [1, 1, 1]} : vector<5x80x120xbf16> to vector<1x80x120xbf16>
    %135 = vector.shape_cast %134 : vector<1x80x120xbf16> to vector<80x120xbf16>
    %cst_43 = arith.constant dense<0.000000e+00> : vector<2x120xf32>
    %136 = tpu.matmul %133, %135, %cst_43 {dimension_numbers = #tpu.dot_dimension_numbers<[1], [0], [0], [1], [0, 0, 1, 1], [], []>} : vector<2x80xbf16>, vector<80x120xbf16>, vector<2x120xf32> -> vector<2x120xf32>
    %137 = arith.addf %130, %136 : vector<2x120xf32>
    %138 = vector.extract_strided_slice %121 {offsets = [0, 2, 0], sizes = [2, 1, 80], strides = [1, 1, 1]} : vector<2x5x80xf32> to vector<2x1x80xf32>
    %139 = vector.shape_cast %138 : vector<2x1x80xf32> to vector<2x80xf32>
    %140 = arith.truncf %139 : vector<2x80xf32> to vector<2x80xbf16>
    %141 = vector.extract_strided_slice %122 {offsets = [2, 0, 0], sizes = [1, 80, 120], strides = [1, 1, 1]} : vector<5x80x120xbf16> to vector<1x80x120xbf16>
    %142 = vector.shape_cast %141 : vector<1x80x120xbf16> to vector<80x120xbf16>
    %cst_44 = arith.constant dense<0.000000e+00> : vector<2x120xf32>
    %143 = tpu.matmul %140, %142, %cst_44 {dimension_numbers = #tpu.dot_dimension_numbers<[1], [0], [0], [1], [0, 0, 1, 1], [], []>} : vector<2x80xbf16>, vector<80x120xbf16>, vector<2x120xf32> -> vector<2x120xf32>
    %144 = arith.addf %137, %143 : vector<2x120xf32>
    %145 = vector.extract_strided_slice %121 {offsets = [0, 3, 0], sizes = [2, 1, 80], strides = [1, 1, 1]} : vector<2x5x80xf32> to vector<2x1x80xf32>
    %146 = vector.shape_cast %145 : vector<2x1x80xf32> to vector<2x80xf32>
    %147 = arith.truncf %146 : vector<2x80xf32> to vector<2x80xbf16>
    %148 = vector.extract_strided_slice %122 {offsets = [3, 0, 0], sizes = [1, 80, 120], strides = [1, 1, 1]} : vector<5x80x120xbf16> to vector<1x80x120xbf16>
    %149 = vector.shape_cast %148 : vector<1x80x120xbf16> to vector<80x120xbf16>
    %cst_45 = arith.constant dense<0.000000e+00> : vector<2x120xf32>
    %150 = tpu.matmul %147, %149, %cst_45 {dimension_numbers = #tpu.dot_dimension_numbers<[1], [0], [0], [1], [0, 0, 1, 1], [], []>} : vector<2x80xbf16>, vector<80x120xbf16>, vector<2x120xf32> -> vector<2x120xf32>
    %151 = arith.addf %144, %150 : vector<2x120xf32>
    %152 = vector.extract_strided_slice %121 {offsets = [0, 4, 0], sizes = [2, 1, 80], strides = [1, 1, 1]} : vector<2x5x80xf32> to vector<2x1x80xf32>
    %153 = vector.shape_cast %152 : vector<2x1x80xf32> to vector<2x80xf32>
    %154 = arith.truncf %153 : vector<2x80xf32> to vector<2x80xbf16>
    %155 = vector.extract_strided_slice %122 {offsets = [4, 0, 0], sizes = [1, 80, 120], strides = [1, 1, 1]} : vector<5x80x120xbf16> to vector<1x80x120xbf16>
    %156 = vector.shape_cast %155 : vector<1x80x120xbf16> to vector<80x120xbf16>
    %cst_46 = arith.constant dense<0.000000e+00> : vector<2x120xf32>
    %157 = tpu.matmul %154, %156, %cst_46 {dimension_numbers = #tpu.dot_dimension_numbers<[1], [0], [0], [1], [0, 0, 1, 1], [], []>} : vector<2x80xbf16>, vector<80x120xbf16>, vector<2x120xf32> -> vector<2x120xf32>
    %158 = arith.addf %151, %157 : vector<2x120xf32>
    %c0_47 = arith.constant 0 : index
    %c0_48 = arith.constant 0 : index
    %159 = vector.load %arg9[%c0_47, %c0_48] : memref<1x120xf32, #tpu.memory_space<vmem>>, vector<1x120xf32>
    %160 = vector.broadcast %159 : vector<1x120xf32> to vector<2x120xf32>
    %161 = arith.addf %158, %160 : vector<2x120xf32>
    %cst_49 = arith.constant 5.000000e-01 : f32
    %162 = vector.broadcast %cst_49 : f32 to vector<2x120xf32>
    %163 = arith.mulf %162, %161 : vector<2x120xf32>
    %164 = math.tanh %163 : vector<2x120xf32>
    %cst_50 = arith.constant 5.000000e-01 : f32
    %165 = vector.broadcast %cst_50 : f32 to vector<2x120xf32>
    %166 = arith.mulf %165, %164 : vector<2x120xf32>
    %cst_51 = arith.constant 5.000000e-01 : f32
    %167 = vector.broadcast %cst_51 : f32 to vector<2x120xf32>
    %168 = arith.addf %166, %167 : vector<2x120xf32>
    %169 = arith.truncf %168 : vector<2x120xf32> to vector<2x120xbf16>
    %c0_52 = arith.constant 0 : index
    %c0_53 = arith.constant 0 : index
    %170 = vector.load %arg10[%c0_52, %c0_53] : memref<120x84xbf16, #tpu.memory_space<vmem>>, vector<120x84xbf16>
    %cst_54 = arith.constant dense<0.000000e+00> : vector<2x84xf32>
    %171 = tpu.matmul %169, %170, %cst_54 {dimension_numbers = #tpu.dot_dimension_numbers<[1], [0], [0], [1], [0, 0, 1, 1], [], []>} : vector<2x120xbf16>, vector<120x84xbf16>, vector<2x84xf32> -> vector<2x84xf32>
    %c0_55 = arith.constant 0 : index
    %c0_56 = arith.constant 0 : index
    %172 = vector.load %arg11[%c0_55, %c0_56] : memref<1x84xf32, #tpu.memory_space<vmem>>, vector<1x84xf32>
    %173 = vector.broadcast %172 : vector<1x84xf32> to vector<2x84xf32>
    %174 = arith.addf %171, %173 : vector<2x84xf32>
    %cst_57 = arith.constant 5.000000e-01 : f32
    %175 = vector.broadcast %cst_57 : f32 to vector<2x84xf32>
    %176 = arith.mulf %175, %174 : vector<2x84xf32>
    %177 = math.tanh %176 : vector<2x84xf32>
    %cst_58 = arith.constant 5.000000e-01 : f32
    %178 = vector.broadcast %cst_58 : f32 to vector<2x84xf32>
    %179 = arith.mulf %178, %177 : vector<2x84xf32>
    %cst_59 = arith.constant 5.000000e-01 : f32
    %180 = vector.broadcast %cst_59 : f32 to vector<2x84xf32>
    %181 = arith.addf %179, %180 : vector<2x84xf32>
    %182 = arith.truncf %181 : vector<2x84xf32> to vector<2x84xbf16>
    %c0_60 = arith.constant 0 : index
    %c0_61 = arith.constant 0 : index
    %183 = vector.load %arg12[%c0_60, %c0_61] : memref<84x10xbf16, #tpu.memory_space<vmem>>, vector<84x10xbf16>
    %cst_62 = arith.constant dense<0.000000e+00> : vector<2x10xf32>
    %184 = tpu.matmul %182, %183, %cst_62 {dimension_numbers = #tpu.dot_dimension_numbers<[1], [0], [0], [1], [0, 0, 1, 1], [], []>} : vector<2x84xbf16>, vector<84x10xbf16>, vector<2x10xf32> -> vector<2x10xf32>
    %c0_63 = arith.constant 0 : index
    %c0_64 = arith.constant 0 : index
    %185 = vector.load %arg13[%c0_63, %c0_64] : memref<1x10xf32, #tpu.memory_space<vmem>>, vector<1x10xf32>
    %186 = vector.broadcast %185 : vector<1x10xf32> to vector<2x10xf32>
    %187 = arith.addf %184, %186 : vector<2x10xf32>
    %cst_65 = arith.constant dense<0xFF800000> : vector<2xf32>
    %188 = vector.multi_reduction <maximumf>, %187, %cst_65 [1] : vector<2x10xf32> to vector<2xf32>
    %189 = vector.shape_cast %188 : vector<2xf32> to vector<2x1xf32>
    %190 = vector.broadcast %189 : vector<2x1xf32> to vector<2x10xf32>
    %191 = arith.subf %187, %190 : vector<2x10xf32>
    %192 = math.exp %191 : vector<2x10xf32>
    %cst_66 = arith.constant dense<0.000000e+00> : vector<2xf32>
    %193 = vector.multi_reduction <add>, %192, %cst_66 [1] : vector<2x10xf32> to vector<2xf32>
    %194 = vector.shape_cast %193 : vector<2xf32> to vector<2x1xf32>
    %195 = vector.broadcast %194 : vector<2x1xf32> to vector<2x10xf32>
    %196 = arith.divf %192, %195 : vector<2x10xf32>
    %197 = vector.shape_cast %196 : vector<2x10xf32> to vector<2x1x10xf32>
    %c0_67 = arith.constant 0 : index
    %c0_68 = arith.constant 0 : index
    %c0_69 = arith.constant 0 : index
    %198 = vector.load %arg14[%c0_67, %c0_68, %c0_69] : memref<2x1x10xf32, #tpu.memory_space<vmem>>, vector<2x1x10xf32>
    tpu.vector_store %arg14[%c0_67, %c0_68, %c0_69], %197 {strides = array<i32>} : memref<2x1x10xf32, #tpu.memory_space<vmem>>, vector<2x1x10xf32>,
    return
  }
  func.func @transform_0(%arg0: i32) -> (i32, i32, i32) {
    %c0_i32 = arith.constant 0 : i32
    %c0_i32_0 = arith.constant 0 : i32
    %c0_i32_1 = arith.constant 0 : i32
    return %arg0, %c0_i32, %c0_i32_0 : i32, i32, i32
  }
  func.func @transform_1(%arg0: i32) -> (i32, i32, i32) {
    %c0_i32 = arith.constant 0 : i32
    %c0_i32_0 = arith.constant 0 : i32
    %c0_i32_1 = arith.constant 0 : i32
    %c0_i32_2 = arith.constant 0 : i32
    return %c0_i32, %c0_i32_0, %c0_i32_1 : i32, i32, i32
  }
  func.func @transform_2(%arg0: i32) -> (i32, i32) {
    %c0_i32 = arith.constant 0 : i32
    %c0_i32_0 = arith.constant 0 : i32
    %c0_i32_1 = arith.constant 0 : i32
    return %c0_i32, %c0_i32_0 : i32, i32
  }
  func.func @transform_3(%arg0: i32) -> (i32, i32, i32) {
    %c0_i32 = arith.constant 0 : i32
    %c0_i32_0 = arith.constant 0 : i32
    %c0_i32_1 = arith.constant 0 : i32
    %c0_i32_2 = arith.constant 0 : i32
    return %c0_i32, %c0_i32_0, %c0_i32_1 : i32, i32, i32
  }
  func.func @transform_4(%arg0: i32) -> (i32, i32) {
    %c0_i32 = arith.constant 0 : i32
    %c0_i32_0 = arith.constant 0 : i32
    %c0_i32_1 = arith.constant 0 : i32
    return %c0_i32, %c0_i32_0 : i32, i32
  }
  func.func @transform_5(%arg0: i32) -> (i32, i32) {
    %c0_i32 = arith.constant 0 : i32
    %c0_i32_0 = arith.constant 0 : i32
    %c0_i32_1 = arith.constant 0 : i32
    return %c0_i32, %c0_i32_0 : i32, i32
  }
  func.func @transform_6(%arg0: i32) -> (i32, i32) {
    %c0_i32 = arith.constant 0 : i32
    %c0_i32_0 = arith.constant 0 : i32
    %c0_i32_1 = arith.constant 0 : i32
    return %c0_i32, %c0_i32_0 : i32, i32
  }
  func.func @transform_7(%arg0: i32) -> (i32, i32, i32) {
    %c0_i32 = arith.constant 0 : i32
    %c0_i32_0 = arith.constant 0 : i32
    %c0_i32_1 = arith.constant 0 : i32
    %c0_i32_2 = arith.constant 0 : i32
    return %c0_i32, %c0_i32_0, %c0_i32_1 : i32, i32, i32
  }
  func.func @transform_8(%arg0: i32) -> (i32, i32) {
    %c0_i32 = arith.constant 0 : i32
    %c0_i32_0 = arith.constant 0 : i32
    %c0_i32_1 = arith.constant 0 : i32
    return %c0_i32, %c0_i32_0 : i32, i32
  }
  func.func @transform_9(%arg0: i32) -> (i32, i32) {
    %c0_i32 = arith.constant 0 : i32
    %c0_i32_0 = arith.constant 0 : i32
    %c0_i32_1 = arith.constant 0 : i32
    return %c0_i32, %c0_i32_0 : i32, i32
  }
  func.func @transform_10(%arg0: i32) -> (i32, i32) {
    %c0_i32 = arith.constant 0 : i32
    %c0_i32_0 = arith.constant 0 : i32
    %c0_i32_1 = arith.constant 0 : i32
    return %c0_i32, %c0_i32_0 : i32, i32
  }
  func.func @transform_11(%arg0: i32) -> (i32, i32) {
    %c0_i32 = arith.constant 0 : i32
    %c0_i32_0 = arith.constant 0 : i32
    %c0_i32_1 = arith.constant 0 : i32
    return %c0_i32, %c0_i32_0 : i32, i32
  }
  func.func @transform_12(%arg0: i32) -> (i32, i32) {
    %c0_i32 = arith.constant 0 : i32
    %c0_i32_0 = arith.constant 0 : i32
    %c0_i32_1 = arith.constant 0 : i32
    return %c0_i32, %c0_i32_0 : i32, i32
  }
  func.func @transform_13(%arg0: i32) -> (i32, i32, i32) {
    %c0_i32 = arith.constant 0 : i32
    %c0_i32_0 = arith.constant 0 : i32
    %c0_i32_1 = arith.constant 0 : i32
    return %arg0, %c0_i32, %c0_i32_0 : i32, i32, i32
  }
}

</mosaic_0001>

<bundles_post_ra>
// kernel: lenet_forward.1
= control target key start
LH: loop header
LB: loop body
LE: loop exit
PB: predicated region body
PF: predicated region fallthrough
CT: control target
= control target key end

     0   :  { %vm235_vm0 = vcmask 261120   ;;  %vm129_vm1 = vcmask 1042432   ;;  %vm130_vm2 = vcmask 1046532   ;;  %vm392_vm4 = vcmask 1041408   ;;  %s6046_s0 = inlined_call_operand.vmem [shape: f32[2,32,32], index: 0, kind: input, shape index: {}]   ;;  %s6047_s1 = inlined_call_operand.vmem [shape: bf16[5,32,168], index: 1, kind: input, shape index: {}]   ;;  %s6048_s2 = inlined_call_operand.vmem [shape: f32[1,168], index: 2, kind: input, shape index: {}]   ;;  %s6049_s3 = inlined_call_operand.vmem [shape: bf16[5,84,160], index: 3, kind: input, shape index: {}]   ;;  %s6050_s4 = inlined_call_operand.vmem [shape: f32[1,160], index: 4, kind: input, shape index: {}]   ;;  %s6051_s5 = inlined_call_operand.vmem [shape: bf16[168,84], index: 5, kind: input, shape index: {}]   ;;  %s6052_s6 = inlined_call_operand.vmem [shape: bf16[160,80], index: 6, kind: input, shape index: {}]   ;;  %s6053_s7 = inlined_call_operand.vmem [shape: bf16[5,80,120], index: 7, kind: input, shape index: {}]   ;;  %s6054_s8 = inlined_call_operand.vmem [shape: f32[1,120], index: 8, kind: input, shape index: {}]   ;;  %s6055_s9 = inlined_call_operand.vmem [shape: bf16[120,84], index: 9, kind: input, shape index: {}]   ;;  %s6056_s10 = inlined_call_operand.vmem [shape: f32[1,84], index: 10, kind: input, shape index: {}]   ;;  %s6057_s11 = inlined_call_operand.vmem [shape: bf16[84,10], index: 11, kind: input, shape index: {}]   ;;  %s6058_s12 = inlined_call_operand.vmem [shape: f32[1,10], index: 12, kind: input, shape index: {}]   ;;  %s6059_s13 = inlined_call_operand.hbm [shape: f32[2,1,10], index: 13, kind: output, shape index: {}]  }
   0x1   :  { %v3526_v0 = vld [vmem:[%s6047_s1 + $0x10] sm:$0xf]  ;;  %v4117_v1 = vld [vmem:[%s6047_s1 + $0x14] sm:$0xf0]  ;;  %v4116_v2 = vld [vmem:[%s6047_s1 + $0x14] sm:$0xf] }
   0x2   :  { %v3527_v3 = vor.u32 %v4117_v1, %v3526_v0  ;;  %v3528_v4 = vld [vmem:[%s6047_s1 + $0x18] sm:$0xf0]  ;;  %v3518_v5 = vld [vmem:[%s6047_s1] sm:$0xf]  ;;  %v4115_v6 = vld [vmem:[%s6047_s1 + $0x4] sm:$0xf0] }
   0x3   :  { %v3531_v7 = vor.u32 %v4116_v2, %v3528_v4  ;;  %v4114_v8 = vld [vmem:[%s6047_s1 + $0x4] sm:$0xf]  ;;  %v3520_v9 = vld [vmem:[%s6047_s1 + $0x8] sm:$0xf0]  ;;  %v3502_v10 = vld [vmem:[%s6047_s1 + $0x30] sm:$0xf]  ;;  %v3519_v11 = vor.u32 %v4115_v6, %v3518_v5 }
   0x4   :  { %342 = vmatpush.bf16.msra.mxu2 %v3527_v3  ;;  %v4121_v12 = vld [vmem:[%s6047_s1 + $0x34] sm:$0xf0]  ;;  %v4120_v13 = vld [vmem:[%s6047_s1 + $0x34] sm:$0xf]  ;;  %v3504_v14 = vld [vmem:[%s6047_s1 + $0x38] sm:$0xf0]  ;;  %v3523_v15 = vor.u32 %v4114_v8, %v3520_v9 }
   0x5   :  { %370 = vmatpush.bf16.msra.mxu3 %v3531_v7  ;;  %v3503_v16 = vor.u32 %v4121_v12, %v3502_v10  ;;  %v3507_v17 = vor.u32 %v4120_v13, %v3504_v14  ;;  %v4441_v18 = vld [vmem:[%s6046_s0] sm:$0xff]  ;;  %v4446_v19 = vld [vmem:[%s6046_s0 + $0x8] sm:$0xff]  ;;  %v4472_v28 = vld [vmem:[%s6046_s0 + $0x10] sm:$0xff]  ;;  %vm393_vm5 = vcmask 1045508  }
   0x6   :  { %v3494_v20 = vld [vmem:[%s6047_s1 + $0x20] sm:$0xf]  ;;  %v4452_v21 = vrot.slane %v4441_v18, 4  ;;  %v4455_v22 = vrot.slane %v4446_v19, 4  ;;  %88 = vst [vmem:[#allocation1] ss:$2 sm:$0xff] %v4441_v18  ;;  %vm4547_vm3 = vmor %vm129_vm1, %vm130_vm2 }
   0x7   :  { %v4119_v23 = vld [vmem:[%s6047_s1 + $0x24] sm:$0xf0]  ;;  %254 = vmatpush.bf16.msra.mxu0 %v3503_v16  ;;  %282 = vmatpush.bf16.msra.mxu1 %v3507_v17  ;;  %92 = vst [vmem:[#allocation1 + $0x10] ss:$2 sm:$0xff] %v4446_v19  ;;  %v4118_v25 = vld [vmem:[%s6047_s1 + $0x24] sm:$0xf]  ;;  %vm4591_vm6 = vmor %vm392_vm4, %vm393_vm5 }
   0x8   :  { %v3495_v24 = vor.u32 %v4119_v23, %v3494_v20  ;;  %v3496_v26 = vld [vmem:[%s6047_s1 + $0x28] sm:$0xf0]  ;;  %343 = vmatpush.bf16.msra.mxu2 %v3519_v11  ;;  %90 = vst [vmem:[#allocation1 + $0x1] ss:$2 sm:$0xff] %v4452_v21  ;;  %v4478_v29 = vld [vmem:[%s6046_s0 + $0x20] sm:$0xff]  ;;  %v4486_v31 = vrot.slane %v4472_v28, 4 }
   0x9   :  { %v3499_v27 = vor.u32 %v4118_v25, %v3496_v26  ;;  %371 = vmatpush.bf16.msra.mxu3 %v3523_v15  ;;  %94 = vst [vmem:[#allocation1 + $0x11] ss:$2 sm:$0xff] %v4455_v22  ;;  %v4483_v30 = vld [vmem:[%s6046_s0 + $0x28] sm:$0xff]  ;;  %v4124_v32 = vld [vmem:[%s6047_s1 + $0x54] sm:$0xf]  ;;  %v4496_v33 = vld [vmem:[%s6046_s0 + $0x18] sm:$0xff] }
   0xa   :  { %96 = vst [vmem:[#allocation1 + $0x20] ss:$2 sm:$0xff] %v4472_v28  ;;  %v4499_v34 = vrot.slane %v4478_v29, 4  ;;  %v4502_v35 = vrot.slane %v4483_v30, 4  ;;  %v3490_v36 = vrot.slane %v4441_v18, 9  ;;  %v134_v37 = vrot.slane %v4452_v21, 5 }
   0xb   :  { %255 = vmatpush.bf16.msra.mxu0 %v3495_v24  ;;  %283 = vmatpush.bf16.msra.mxu1 %v3499_v27  ;;  %98 = vst [vmem:[#allocation1 + $0x21] ss:$2 sm:$0xff] %v4486_v31  ;;  %v4510_v38 = vld [vmem:[%s6046_s0 + $0x30] sm:$0xff]  ;;  %v3554_v39 = vld [vmem:[%s6047_s1 + $0x58] sm:$0xf0]  ;;  %v137_v44 = vrot.slane %v4446_v19, 5 }
   0xc   :  { %102 = vst [vmem:[#allocation1 + $0x31] ss:$2 sm:$0xff] %v4478_v29  ;;  %v3552_v40 = vld [vmem:[%s6047_s1 + $0x50] sm:$0xf]  ;;  %v4125_v41 = vld [vmem:[%s6047_s1 + $0x54] sm:$0xf0]  ;;  %v3557_v42 = vor.u32 %v4124_v32, %v3554_v39  ;;  %v135_v3 = vsel %vm4547_vm3, %v3490_v36, %v134_v37 }
   0xd   :  { %100 = vst [vmem:[#allocation1 + $0x30] ss:$2 sm:$0xff] %v4496_v33  ;;  %v140_v45 = vrot.slane %v4455_v22, 5  ;;  %v3553_v46 = vor.u32 %v4125_v41, %v3552_v40  ;;  %v4525_v47 = vrot.slane %v4496_v33, 4  ;;  %v4529_v49 = vrot.slane %v4510_v38, 4  ;;  %v4535_v51 = vld [vmem:[%s6046_s0 + $0x38] sm:$0xff] }
   0xe   :  { %v146_v52 = vrot.slane %v4486_v31, 5  ;;  %v149_v53 = vrot.slane %v4496_v33, 5  ;;  %v3491_v56 = vrot.slane %v4478_v29, 9  ;;  %v136_v58 = vrot.slane %v134_v37, 4 }
   0xf   :  { %v103_v43 = vld.sshfl [vmem:[#allocation1] sm:$0xff pattern:$0x75316420]  ;;  %544 = vmatpush.bf16.msrb.mxu1 %v3557_v42  ;;  %516 = vmatpush.bf16.msrb.mxu0 %v3553_v46  ;;  %v152_v54 = vrot.slane %v4525_v47, 5  ;;  %v156_v60 = vrot.slane %v4499_v34, 5  ;;  %v139_v61 = vrot.slane %v137_v44, 4 }
  0x10   :  { %v104_v48 = vld.sshfl [vmem:[#allocation1 + $0x10] sm:$0xff pattern:$0x75316420]  ;;  %107 = vst [vmem:[#allocation1] ss:$2 sm:$0xff] %v4499_v34  ;;  %v151_v59 = vrot.slane %v149_v53, 4  ;;  %v138_v6 = vsel %vm4547_vm3, %v136_v58, %v137_v44 }
  0x11   :  { %v123_v50 = vpack.c.bf16 %v104_v48, %v103_v43  ;;  %108 = vst [vmem:[#allocation1 + $0x1] ss:$2 sm:$0xff] %v4483_v30  ;;  %v143_v62 = vrot.slane %v4472_v28, 5  ;;  %v142_v63 = vrot.slane %v140_v45, 4  ;;  %v157_v2 = vsel %vm4547_vm3, %v3491_v56, %v156_v60 }
  0x12   :  { %109 = vst [vmem:[#allocation1 + $0x10] ss:$2 sm:$0xff] %v4502_v35  ;;  %v105_v55 = vld.sshfl [vmem:[#allocation1 + $0x20] sm:$0xff pattern:$0x75316420]  ;;  %v153_v1 = vsel %vm4547_vm3, %v151_v59, %v152_v54  ;;  %v148_v5 = vrot.slane %v146_v52, 4  ;;  %v141_v9 = vsel %vm4547_vm3, %v139_v61, %v140_v45 }
  0x13   :  { %3532 = vmatmul.msk.bf16.vlgmr.msra.gmra.mxu2 %vm235_vm0, %v123_v50  ;;  %3536 = vmatmul.msk.bf16.vlgmr.msra.gmra.mxu3 %vm235_vm0, %v123_v50  ;;  %110 = vst [vmem:[#allocation1 + $0x11] ss:$2 sm:$0xff] %v4510_v38  ;;  %v145_v4 = vrot.slane %v143_v62, 4  ;;  %v159_v7 = vrot.slane %v4483_v30, 5  ;;  %v144_v10 = vsel %vm4547_vm3, %v142_v63, %v143_v62  ;;  %v4571_v11 = vrot.slane %v4535_v51, 4 }
  0x14   :  { %111 = vst [vmem:[#allocation1 + $0x20] ss:$2 sm:$0xff] %v4529_v49  ;;  %v106_v0 = vld.sshfl [vmem:[#allocation1 + $0x30] sm:$0xff pattern:$0x75316420]  ;;  %v162_v12 = vrot.slane %v4502_v35, 5  ;;  %v150_v16 = vsel %vm4547_vm3, %v148_v5, %v149_v53 }
  0x15   :  { %112 = vst [vmem:[#allocation1 + $0x21] ss:$2 sm:$0xff] %v4535_v51  ;;  %v168_v13 = vrot.slane %v4529_v49, 5  ;;  %v147_v15 = vsel %vm4547_vm3, %v145_v4, %v146_v52  ;;  %v158_v17 = vrot.slane %v156_v60, 4  ;;  %v161_v20 = vrot.slane %v159_v7, 4 }
  0x16   :  { %188 = vst [vmem:[#allocation1 + $0x30] ss:$2 sm:$0xff] %v153_v1  ;;  %v412_v23 = vrot.slane %v4496_v33, 6  ;;  %v171_v25 = vrot.slane %v4535_v51, 5  ;;  %v415_v27 = vrot.slane %v4525_v47, 6  ;;  %v165_v32 = vrot.slane %v4510_v38, 5 }
  0x17   :  { %190 = vst [vmem:[#allocation1 + $0x31] ss:$2 sm:$0xff] %v157_v2  ;;  %v170_v36 = vrot.slane %v168_v13, 4  ;;  %v3541_v39 = vrot.slane %v4478_v29, 10  ;;  %v124_v40 = vpack.c.bf16 %v106_v0, %v105_v55  ;;  %v160_v41 = vsel %vm4547_vm3, %v158_v17, %v159_v7 }
  0x18   :  { %v4564_v8 = vld.sshfl [vmem:[#allocation1] sm:$0xff pattern:$0x75316420]  ;;  %v414_v26 = vrot.slane %v412_v23, 4  ;;  %v419_v44 = vrot.slane %v4499_v34, 6 }
  0x19   :  { %176 = vst [vmem:[#allocation1] ss:$2 sm:$0xff] %v135_v3 }
  0x1a   :  { %v4575_v14 = vld.sshfl [vmem:[#allocation1 + $0x10] sm:$0xff pattern:$0x75316420]  ;;  %178 = vst [vmem:[#allocation1 + $0x1] ss:$2 sm:$0xff] %v138_v6  ;;  %v416_v43 = vsel %vm4591_vm6, %v414_v26, %v415_v27 }
  0x1b   :  { %180 = vst [vmem:[#allocation1 + $0x10] ss:$2 sm:$0xff] %v141_v9 }
  0x1c   :  { %182 = vst [vmem:[#allocation1 + $0x11] ss:$2 sm:$0xff] %v144_v10  ;;  %v4582_v24 = vld.sshfl [vmem:[#allocation1 + $0x20] sm:$0xff pattern:$0x75316420] }
  0x1d   :  { %184 = vst [vmem:[#allocation1 + $0x20] ss:$2 sm:$0xff] %v147_v15 }
  0x1e   :  { %186 = vst [vmem:[#allocation1 + $0x21] ss:$2 sm:$0xff] %v150_v16  ;;  %v4598_v42 = vld.sshfl [vmem:[#allocation1 + $0x30] sm:$0xff pattern:$0x75316420] }
  0x1f   :  { %18 = vsyncpa [#allocation3], 0  ;;  %v163_v45 = vsel %vm4547_vm3, %v161_v20, %v162_v12  ;;  %v173_v46 = vrot.slane %v171_v25, 4  ;;  %v174_v48 = vrot.slane %v4571_v11, 5  ;;  %451 = vst [vmem:[#allocation1 + $0x30] ss:$2 sm:$0xff] %v416_v43  ;;  %v420_v53 = vsel %vm4591_vm6, %v3541_v39, %v419_v44 }
  0x20   :  { %v164_v52 = vrot.slane %v162_v12, 4  ;;  %v167_v54 = vrot.slane %v165_v32, 4  ;;  %v172_v56 = vsel %vm4547_vm3, %v170_v36, %v171_v25  ;;  %v403_v60 = vrot.slane %v4455_v22, 6  ;;  %453 = vst [vmem:[#allocation1 + $0x31] ss:$2 sm:$0xff] %v420_v53  ;;  %s3478_s22 = sshll.u32 %s6059_s13, 4  ;;  %s3479_s22 = int_to_ptr.hbm [resolvable:$true] %s3478_s22 }
  0x21   :  { %v191_v50 = vld.sshfl [vmem:[#allocation1] sm:$0xff pattern:$0x75316420]  ;;  %v175_v59 = vsel %vm4547_vm3, %v173_v46, %v174_v48  ;;  %vm580_vm7 = vcmask 1040384   ;;  %vm581_vm8 = vcmask 1044484   ;;  %v600_v63 = vrot.slane %v4496_v33, 7 }
  0x22   :  { %195 = vst [vmem:[#allocation1] ss:$2 sm:$0xff] %v160_v41  ;;  %v166_v61 = vsel %vm4547_vm3, %v164_v52, %v165_v32  ;;  %v603_v0 = vrot.slane %v4525_v47, 7  ;;  %v406_v1 = vrot.slane %v4472_v28, 6  ;;  %v3567_v2 = vrot.slane %v4478_v29, 11  ;;  %vm4634_vm9 = vmor %vm580_vm7, %vm581_vm8  ;;  %s4330_s23 = smov 16  }
  0x23   :  { %v192_v55 = vld.sshfl [vmem:[#allocation1 + $0x10] sm:$0xff pattern:$0x75316420]  ;;  %3533 = vmatmul.msk.bf16.gmra.mxu2 %vm235_vm0, %v124_v40  ;;  %3537 = vmatmul.msk.bf16.gmra.mxu3 %vm235_vm0, %v124_v40  ;;  %196 = vst [vmem:[#allocation1 + $0x1] ss:$2 sm:$0xff] %v163_v45  ;;  %v607_v3 = vrot.slane %v4499_v34, 7  ;;  %v169_v4 = vsel %vm4547_vm3, %v167_v54, %v168_v13  ;;  %v125_v52 = vpack.c.bf16 %v4575_v14, %v4564_v8 }
  0x24   :  { %v211_v58 = vpack.c.bf16 %v192_v55, %v191_v50  ;;  %v409_v5 = vrot.slane %v4486_v31, 6  ;;  %v602_v47 = vrot.slane %v600_v63, 4  ;;  %v3540_v6 = vrot.slane %v4441_v18, 10  ;;  %197 = vst [vmem:[#allocation1 + $0x10] ss:$2 sm:$0xff] %v166_v61  ;;  %s4331_s24 = smov 1  }
  0x25   :  { %v193_v62 = vld.sshfl [vmem:[#allocation1 + $0x20] sm:$0xff pattern:$0x75316420]  ;;  %v408_v7 = vrot.slane %v406_v1, 4  ;;  %198 = vst [vmem:[#allocation1 + $0x11] ss:$2 sm:$0xff] %v169_v4  ;;  %v608_v16 = vsel %vm4634_vm9, %v3567_v2, %v607_v3 }
  0x26   :  { %3508 = vmatmul.msk.bf16.vlgmr.msra.gmra.mxu0 %vm235_vm0, %v211_v58  ;;  %3512 = vmatmul.msk.bf16.vlgmr.msra.gmra.mxu1 %vm235_vm0, %v211_v58  ;;  %199 = vst [vmem:[#allocation1 + $0x20] ss:$2 sm:$0xff] %v172_v56  ;;  %v604_v57 = vsel %vm4634_vm9, %v602_v47, %v603_v0  ;;  %v397_v10 = vrot.slane %v4452_v21, 6  ;;  %v400_v12 = vrot.slane %v4446_v19, 6  ;;  %v4122_v13 = vld [vmem:[%s6047_s1 + $0x44] sm:$0xf]  ;;  %v212_v8 = vpack.c.bf16 %v4598_v42, %v193_v62 }
  0x27   :  { %200 = vst [vmem:[#allocation1 + $0x21] ss:$2 sm:$0xff] %v175_v59  ;;  %v405_v15 = vrot.slane %v403_v60, 4  ;;  %v3546_v17 = vld [vmem:[%s6047_s1 + $0x48] sm:$0xf0]  ;;  %v411_v20 = vrot.slane %v409_v5, 4  ;;  %v410_v41 = vsel %vm4591_vm6, %v408_v7, %v409_v5 }
  0x28   :  { %v4652_v25 = vld.sshfl [vmem:[#allocation1 + $0x30] sm:$0xff pattern:$0x75316420]  ;;  %v398_v26 = vsel %vm4591_vm6, %v3540_v6, %v397_v10  ;;  %v399_v27 = vrot.slane %v397_v10, 4  ;;  %v402_v32 = vrot.slane %v400_v12, 4  ;;  %v3549_v36 = vor.u32 %v4122_v13, %v3546_v17 }
  0x29   :  { %639 = vst [vmem:[#allocation1 + $0x30] ss:$2 sm:$0xff] %v604_v57  ;;  %v3544_v39 = vld [vmem:[%s6047_s1 + $0x40] sm:$0xf]  ;;  %v4123_v40 = vld [vmem:[%s6047_s1 + $0x44] sm:$0xf0]  ;;  %v407_v50 = vsel %vm4591_vm6, %v405_v15, %v406_v1  ;;  %v413_v54 = vsel %vm4591_vm6, %v411_v20, %v412_v23 }
  0x2a   :  { %641 = vst [vmem:[#allocation1 + $0x31] ss:$2 sm:$0xff] %v608_v16  ;;  %v4664_v43 = vld.sshfl [vmem:[#allocation1] sm:$0xff pattern:$0x75316420]  ;;  %v401_v45 = vsel %vm4591_vm6, %v399_v27, %v400_v12  ;;  %v3545_v46 = vor.u32 %v4123_v40, %v3544_v39  ;;  %v404_v48 = vsel %vm4591_vm6, %v402_v32, %v403_v60  ;;  %545 = vmatpush.bf16.msrb.mxu1 %v3549_v36  ;;  %v422_v55 = vrot.slane %v4483_v30, 6 }
  0x2b   :  { %439 = vst [vmem:[#allocation1] ss:$2 sm:$0xff] %v398_v26  ;;  %v425_v58 = vrot.slane %v4502_v35, 6  ;;  %v428_v59 = vrot.slane %v4510_v38, 6  ;;  %v421_v14 = vrot.slane %v419_v44, 4  ;;  %v431_v0 = vrot.slane %v4529_v49, 6 }
  0x2c   :  { %441 = vst [vmem:[#allocation1 + $0x1] ss:$2 sm:$0xff] %v401_v45  ;;  %517 = vmatpush.bf16.msrb.mxu0 %v3545_v46  ;;  %v4681_v56 = vld.sshfl [vmem:[#allocation1 + $0x10] sm:$0xff pattern:$0x75316420]  ;;  %v424_v23 = vrot.slane %v422_v55, 4 }
  0x2d   :  { %443 = vst [vmem:[#allocation1 + $0x10] ss:$2 sm:$0xff] %v404_v48  ;;  %v427_v60 = vrot.slane %v425_v58, 4  ;;  %v430_v61 = vrot.slane %v428_v59, 4  ;;  %v434_v1 = vrot.slane %v4535_v51, 6  ;;  %v423_v2 = vsel %vm4591_vm6, %v421_v14, %v422_v55 }
  0x2e   :  { %v4674_v53 = vld.sshfl [vmem:[#allocation1 + $0x20] sm:$0xff pattern:$0x75316420]  ;;  %445 = vst [vmem:[#allocation1 + $0x11] ss:$2 sm:$0xff] %v407_v50  ;;  %v426_v7 = vsel %vm4591_vm6, %v424_v23, %v425_v58  ;;  %v585_v13 = vrot.slane %v4452_v21, 7  ;;  %v213_v14 = vpack.c.bf16 %v4681_v56, %v4664_v43 }
  0x2f   :  { %447 = vst [vmem:[#allocation1 + $0x20] ss:$2 sm:$0xff] %v410_v41  ;;  %v3578_v42 = vld [vmem:[%s6047_s1 + $0x70] sm:$0xf]  ;;  %v4129_v44 = vld [vmem:[%s6047_s1 + $0x74] sm:$0xf0]  ;;  %v429_v15 = vsel %vm4591_vm6, %v427_v60, %v428_v59  ;;  %v432_v26 = vsel %vm4591_vm6, %v430_v61, %v431_v0 }
  0x30   :  { %449 = vst [vmem:[#allocation1 + $0x21] ss:$2 sm:$0xff] %v413_v54  ;;  %v4128_v62 = vld [vmem:[%s6047_s1 + $0x74] sm:$0xf]  ;;  %v3579_v4 = vor.u32 %v4129_v44, %v3578_v42  ;;  %v3580_v5 = vld [vmem:[%s6047_s1 + $0x78] sm:$0xf0] }
  0x31   :  { %v3570_v47 = vld [vmem:[%s6047_s1 + $0x60] sm:$0xf]  ;;  %v4127_v6 = vld [vmem:[%s6047_s1 + $0x64] sm:$0xf0]  ;;  %v3583_v57 = vor.u32 %v4128_v62, %v3580_v5  ;;  %v4126_v10 = vld [vmem:[%s6047_s1 + $0x64] sm:$0xf] }
  0x32   :  { %v3572_v12 = vld [vmem:[%s6047_s1 + $0x68] sm:$0xf0]  ;;  %704 = vmatpush.bf16.msrb.mxu2 %v3579_v4  ;;  %v3571_v16 = vor.u32 %v4127_v6, %v3570_v47  ;;  %v588_v32 = vrot.slane %v4446_v19, 7  ;;  %v436_v36 = vrot.slane %v434_v1, 4  ;;  %v437_v21 = vrot.slane %v4571_v11, 6 }
  0x33   :  { %3534 = vmatmul.msk.bf16.gmra.mxu2 %vm235_vm0, %v125_v52  ;;  %3538 = vmatmul.msk.bf16.gmra.mxu3 %vm235_vm0, %v125_v52  ;;  %v4725_v17 = vld.sshfl [vmem:[#allocation1] sm:$0xff pattern:$0x75316420]  ;;  %v3575_v27 = vor.u32 %v4126_v10, %v3572_v12  ;;  %v591_v39 = vrot.slane %v4455_v22, 7  ;;  %v3566_v40 = vrot.slane %v4441_v18, 11  ;;  %v587_v41 = vrot.slane %v585_v13, 4 }
  0x34   :  { %732 = vmatpush.bf16.msrb.mxu3 %v3583_v57  ;;  %458 = vst [vmem:[#allocation1] ss:$2 sm:$0xff] %v423_v2  ;;  %v433_v45 = vrot.slane %v431_v0, 4  ;;  %v594_v46 = vrot.slane %v4472_v28, 7  ;;  %v597_v48 = vrot.slane %v4486_v31, 7  ;;  %v590_v50 = vrot.slane %v588_v32, 4 }
  0x35   :  { %v4727_v20 = vld.sshfl [vmem:[#allocation1 + $0x10] sm:$0xff pattern:$0x75316420]  ;;  %459 = vst [vmem:[#allocation1 + $0x1] ss:$2 sm:$0xff] %v426_v7  ;;  %v126_v52 = vpack.c.bf16 %v4582_v24, %v4582_v24  ;;  %v593_v54 = vrot.slane %v591_v39, 4  ;;  %v438_v55 = vsel %vm4591_vm6, %v436_v36, %v437_v21  ;;  %v586_v59 = vsel %vm4634_vm9, %v3566_v40, %v585_v13 }
  0x36   :  { %3509 = vmatmul.msk.bf16.gmra.mxu0 %vm235_vm0, %v212_v8  ;;  %3513 = vmatmul.msk.bf16.gmra.mxu1 %vm235_vm0, %v212_v8  ;;  %460 = vst [vmem:[#allocation1 + $0x10] ss:$2 sm:$0xff] %v429_v15  ;;  %v435_v22 = vsel %vm4591_vm6, %v433_v45, %v434_v1  ;;  %v610_v31 = vrot.slane %v4483_v30, 7  ;;  %v589_v8 = vsel %vm4634_vm9, %v587_v41, %v588_v32  ;;  %v596_v24 = vrot.slane %v594_v46, 4  ;;  %v4132_v44 = vld [vmem:[%s6047_s1 + $0x94] sm:$0xf] }
  0x37   :  { %705 = vmatpush.bf16.msrb.mxu2 %v3571_v16  ;;  %461 = vst [vmem:[#allocation1 + $0x11] ss:$2 sm:$0xff] %v432_v26  ;;  %v4743_v58 = vld.sshfl [vmem:[#allocation1 + $0x20] sm:$0xff pattern:$0x75316420]  ;;  %v592_v37 = vsel %vm4634_vm9, %v590_v50, %v591_v39  ;;  %v599_v60 = vrot.slane %v597_v48, 4  ;;  %v595_v0 = vsel %vm4634_vm9, %v593_v54, %v594_v46 }
  0x38   :  { %733 = vmatpush.bf16.msrb.mxu3 %v3575_v27  ;;  %462 = vst [vmem:[#allocation1 + $0x20] ss:$2 sm:$0xff] %v435_v22  ;;  %v613_v61 = vrot.slane %v4502_v35, 7  ;;  %v616_v43 = vrot.slane %v4510_v38, 7  ;;  %v609_v56 = vrot.slane %v607_v3, 4  ;;  %v612_v42 = vrot.slane %v610_v31, 4 }
  0x39   :  { %463 = vst [vmem:[#allocation1 + $0x21] ss:$2 sm:$0xff] %v438_v55  ;;  %v598_v35 = vsel %vm4634_vm9, %v596_v24, %v597_v48  ;;  %v3604_v62 = vld [vmem:[%s6047_s1 + $0x98] sm:$0xf0]  ;;  %v601_v34 = vsel %vm4634_vm9, %v599_v60, %v600_v63  ;;  %v3602_v4 = vld [vmem:[%s6047_s1 + $0x90] sm:$0xf] }
  0x3a   :  { %v615_v3 = vrot.slane %v613_v61, 4  ;;  %v3607_v2 = vor.u32 %v4132_v44, %v3604_v62  ;;  %v4133_v5 = vld [vmem:[%s6047_s1 + $0x94] sm:$0xf0]  ;;  %v618_v47 = vrot.slane %v616_v43, 4  ;;  %v619_v6 = vrot.slane %v4529_v49, 7 }
  0x3b   :  { %v3603_v7 = vor.u32 %v4133_v5, %v3602_v4  ;;  %v622_v10 = vrot.slane %v4535_v51, 7  ;;  %v611_v63 = vsel %vm4634_vm9, %v609_v56, %v610_v31  ;;  %v614_v12 = vsel %vm4634_vm9, %v612_v42, %v613_v61  ;;  %v645_v15 = vld.sshfl [vmem:[#allocation1 + $0x30] sm:$0xff pattern:$0x75316420]  ;;  %v4131_v22 = vld [vmem:[%s6047_s1 + $0x84] sm:$0xf0] }
  0x3c   :  { %v4752_v23 = vld.sshfl [vmem:[#allocation1] sm:$0xff pattern:$0x75316420]  ;;  %902 = vmatpush.bf16.msra.mxu1 %v3607_v2  ;;  %v621_v13 = vrot.slane %v619_v6, 4  ;;  %v617_v49 = vsel %vm4634_vm9, %v615_v3, %v616_v43  ;;  %v620_v26 = vsel %vm4634_vm9, %v618_v47, %v619_v6  ;;  %v625_v32 = vrot.slane %v4571_v11, 7 }
  0x3d   :  { %627 = vst [vmem:[#allocation1] ss:$2 sm:$0xff] %v586_v59  ;;  %874 = vmatpush.bf16.msra.mxu0 %v3603_v7  ;;  %v624_v27 = vrot.slane %v622_v10, 4  ;;  %vm1733_vm10 = vcmask 1043456   ;;  %vm1036_vm11 = vcmask 1043458   ;;  %vm1041_vm12 = vcmask 1045504  }
  0x3e   :  { %v4761_v1 = vld.sshfl [vmem:[#allocation1 + $0x10] sm:$0xff pattern:$0x75316420]  ;;  %629 = vst [vmem:[#allocation1 + $0x1] ss:$2 sm:$0xff] %v589_v8  ;;  %v623_v39 = vsel %vm4634_vm9, %v621_v13, %v622_v10  ;;  %vm1556_vm13 = vcmask 1041409  }
  0x3f   :  { %631 = vst [vmem:[#allocation1 + $0x10] ss:$2 sm:$0xff] %v592_v37  ;;  %v626_v40 = vsel %vm4634_vm9, %v624_v27, %v625_v32  ;;  %v475_v37 = vpack.c.bf16 %v4652_v25, %v4743_v58  ;;  %v476_v58 = vpack.c.bf16 %v4761_v1, %v4752_v23  ;;  %vm1559_vm14 = vcmask 1042434  }
  0x40   :  { %633 = vst [vmem:[#allocation1 + $0x11] ss:$2 sm:$0xff] %v595_v0  ;;  %v4787_v57 = vld.sshfl [vmem:[#allocation1 + $0x20] sm:$0xff pattern:$0x75316420]  ;;  %vm1562_vm15 = vcmask 1043459   ;;  %vm1885_vm9 = vmor %vm580_vm7, %vm1559_vm14 }
  0x41   :  { %635 = vst [vmem:[#allocation1 + $0x20] ss:$2 sm:$0xff] %v598_v35  ;;  %vm1567_vm1 = vcmask 1045509   ;;  %vm1570_vm2 = vcmask 1046534   ;;  %vm1573_vm3 = vcmask 1047559   ;;  %vm1726_vm6 = vcmask 326656   ;;  %vm1886_vm7 = vmor %vm1885_vm9, %vm581_vm8 }
  0x42   :  { %637 = vst [vmem:[#allocation1 + $0x21] ss:$2 sm:$0xff] %v601_v34  ;;  %vm2000_vm9 = vcmask 687104  }
  0x43   :  { %3539 = vmatmul.msk.bf16.gmra.mxu3 %vm235_vm0, %v126_v52  ;;  %3535 = vmatmul.msk.bf16.gmra.mxu2 %vm235_vm0, %v126_v52  ;;  %771 = vst.sshfl [vmem:[#allocation1 + $0x30] sm:$0xff pattern:$0x75316420] %v4496_v33  ;;  %v214_v33 = vpack.c.bf16 %v4674_v53, %v4674_v53 }
  0x45   :  { %v642_v16 = vld.sshfl [vmem:[#allocation1] sm:$0xff pattern:$0x75316420] }
  0x46   :  { %3510 = vmatmul.msk.bf16.gmra.mxu0 %vm235_vm0, %v213_v14  ;;  %3514 = vmatmul.msk.bf16.gmra.mxu1 %vm235_vm0, %v213_v14  ;;  %646 = vst [vmem:[#allocation1] ss:$2 sm:$0xff] %v611_v63 }
  0x47   :  { %v643_v36 = vld.sshfl [vmem:[#allocation1 + $0x10] sm:$0xff pattern:$0x75316420]  ;;  %647 = vst [vmem:[#allocation1 + $0x1] ss:$2 sm:$0xff] %v614_v12 }
  0x48   :  { %648 = vst [vmem:[#allocation1 + $0x10] ss:$2 sm:$0xff] %v617_v49  ;;  %v662_v21 = vpack.c.bf16 %v643_v36, %v642_v16 }
  0x49   :  { %649 = vst [vmem:[#allocation1 + $0x11] ss:$2 sm:$0xff] %v620_v26  ;;  %v644_v41 = vld.sshfl [vmem:[#allocation1 + $0x20] sm:$0xff pattern:$0x75316420] }
  0x4a   :  { %650 = vst [vmem:[#allocation1 + $0x20] ss:$2 sm:$0xff] %v623_v39  ;;  %v783_v45 = vld [vmem:[#allocation1 + $0x30] ss:$2 sm:$0xff]  ;;  %v785_v46 = vld [vmem:[#allocation1 + $0x31] ss:$2 sm:$0xff]  ;;  %v663_v50 = vpack.c.bf16 %v645_v15, %v644_v41 }
  0x4b   :  { %651 = vst [vmem:[#allocation1 + $0x21] ss:$2 sm:$0xff] %v626_v40 }
  0x4c   :  { %789 = vst.sshfl [vmem:[#allocation1 + $0x30] sm:$0xff pattern:$0x75316420] %v4535_v51  ;;  %v474_v51 = vpack.c.bf16 %v4727_v20, %v4725_v17 }
  0x4e   :  { %v652_v11 = vld.sshfl [vmem:[#allocation1] sm:$0xff pattern:$0x75316420] }
  0x4f   :  { %768 = vst.sshfl [vmem:[#allocation1] sm:$0xff pattern:$0x75316420] %v4441_v18  ;;  %v4130_v18 = vld [vmem:[%s6047_s1 + $0x84] sm:$0xf] }
  0x50   :  { %v653_v9 = vld.sshfl [vmem:[#allocation1 + $0x10] sm:$0xff pattern:$0x75316420] }
  0x51   :  { %769 = vst.sshfl [vmem:[#allocation1 + $0x10] sm:$0xff pattern:$0x75316420] %v4446_v19  ;;  %v3596_v19 = vld [vmem:[%s6047_s1 + $0x88] sm:$0xf0]  ;;  %v664_v8 = vpack.c.bf16 %v653_v9, %v652_v11 }
  0x52   :  { %v3599_v20 = vor.u32 %v4130_v18, %v3596_v19  ;;  %v654_v31 = vld.sshfl [vmem:[#allocation1 + $0x20] sm:$0xff pattern:$0x75316420] }
  0x53   :  { %3584 = vmatmul.msk.bf16.vlgmr.msrb.gmra.mxu2 %vm235_vm0, %v662_v21  ;;  %3588 = vmatmul.msk.bf16.vlgmr.msrb.gmra.mxu3 %vm235_vm0, %v662_v21  ;;  %v795_v53 = vld [vmem:[#allocation1 + $0x30] ss:$2 sm:$0xff]  ;;  %770 = vst.sshfl [vmem:[#allocation1 + $0x20] sm:$0xff pattern:$0x75316420] %v4472_v28  ;;  %v665_v25 = vpack.c.bf16 %v654_v31, %v654_v31 }
  0x54   :  { %809 = vst [vmem:[#allocation1 + $0x30] ss:$2 sm:$0xff] %v785_v46  ;;  %903 = vmatpush.bf16.msra.mxu1 %v3599_v20 }
  0x56   :  { %3511 = vmatmul.msk.bf16.gmra.mxu0 %vm235_vm0, %v214_v33  ;;  %3515 = vmatmul.msk.bf16.gmra.mxu1 %vm235_vm0, %v214_v33  ;;  %v773_v48 = vld [vmem:[#allocation1 + $0x1] ss:$2 sm:$0xff] }
  0x57   :  { %786 = vst.sshfl [vmem:[#allocation1] sm:$0xff pattern:$0x75316420] %v4478_v29  ;;  %v3594_v29 = vld [vmem:[%s6047_s1 + $0x80] sm:$0xf] }
  0x58   :  { %v775_v52 = vld [vmem:[#allocation1 + $0x10] ss:$2 sm:$0xff]  ;;  %v777_v54 = vld [vmem:[#allocation1 + $0x11] ss:$2 sm:$0xff]  ;;  %797 = vst [vmem:[#allocation1] ss:$2 sm:$0xff] %v773_v48  ;;  %v3595_v59 = vor.u32 %v4131_v22, %v3594_v29 }
  0x59   :  { %787 = vst.sshfl [vmem:[#allocation1 + $0x10] sm:$0xff pattern:$0x75316420] %v4483_v30  ;;  %v796_v30 = vld [vmem:[#allocation1 + $0x31] ss:$2 sm:$0xff] }
  0x5a   :  { %875 = vmatpush.bf16.msra.mxu0 %v3595_v59  ;;  %v779_v60 = vld [vmem:[#allocation1 + $0x20] ss:$2 sm:$0xff]  ;;  %v781_v61 = vld [vmem:[#allocation1 + $0x21] ss:$2 sm:$0xff] }
  0x5b   :  { %788 = vst.sshfl [vmem:[#allocation1 + $0x20] sm:$0xff pattern:$0x75316420] %v4510_v38  ;;  %v477_v38 = vpack.c.bf16 %v4787_v57, %v4787_v57 }
  0x5e   :  { %v790_v17 = vld [vmem:[#allocation1 + $0x1] ss:$2 sm:$0xff] }
  0x5f   :  { %799 = vst [vmem:[#allocation1 + $0x1] ss:$2 sm:$0xff] %v775_v52 }
  0x60   :  { %v791_v55 = vld [vmem:[#allocation1 + $0x10] ss:$2 sm:$0xff]  ;;  %811 = vst [vmem:[#allocation1 + $0x31] ss:$2 sm:$0xff] %v790_v17  ;;  %v792_v14 = vld [vmem:[#allocation1 + $0x11] ss:$2 sm:$0xff] }
  0x61   :  { %801 = vst [vmem:[#allocation1 + $0x10] ss:$2 sm:$0xff] %v777_v54 }
  0x62   :  { %803 = vst [vmem:[#allocation1 + $0x11] ss:$2 sm:$0xff] %v779_v60  ;;  %v793_v28 = vld [vmem:[#allocation1 + $0x20] ss:$2 sm:$0xff]  ;;  %v794_v0 = vld [vmem:[#allocation1 + $0x21] ss:$2 sm:$0xff] }
  0x63   :  { %3585 = vmatmul.msk.bf16.gmra.mxu2 %vm235_vm0, %v663_v50  ;;  %3589 = vmatmul.msk.bf16.gmra.mxu3 %vm235_vm0, %v663_v50  ;;  %805 = vst [vmem:[#allocation1 + $0x20] ss:$2 sm:$0xff] %v781_v61 }
  0x64   :  { %807 = vst [vmem:[#allocation1 + $0x21] ss:$2 sm:$0xff] %v783_v45 }
  0x66   :  { %3558 = vmatmul.msk.bf16.vlgmr.msrb.gmra.mxu0 %vm235_vm0, %v474_v51  ;;  %3562 = vmatmul.msk.bf16.vlgmr.msrb.gmra.mxu1 %vm235_vm0, %v474_v51  ;;  %v812_v24 = vld.sshfl [vmem:[#allocation1] sm:$0xff pattern:$0x75316420] }
  0x67   :  { %816 = vst [vmem:[#allocation1] ss:$2 sm:$0xff] %v791_v55  ;;  %v815_v10 = vld.sshfl [vmem:[#allocation1 + $0x30] sm:$0xff pattern:$0x75316420] }
  0x68   :  { %817 = vst [vmem:[#allocation1 + $0x1] ss:$2 sm:$0xff] %v792_v14 }
  0x69   :  { %v813_v43 = vld.sshfl [vmem:[#allocation1 + $0x10] sm:$0xff pattern:$0x75316420] }
  0x6a   :  { %818 = vst [vmem:[#allocation1 + $0x10] ss:$2 sm:$0xff] %v793_v28  ;;  %v832_v44 = vpack.c.bf16 %v813_v43, %v812_v24 }
  0x6b   :  { %819 = vst [vmem:[#allocation1 + $0x11] ss:$2 sm:$0xff] %v794_v0  ;;  %v814_v56 = vld.sshfl [vmem:[#allocation1 + $0x20] sm:$0xff pattern:$0x75316420] }
  0x6c   :  { %820 = vst [vmem:[#allocation1 + $0x20] ss:$2 sm:$0xff] %v795_v53  ;;  %v833_v63 = vpack.c.bf16 %v815_v10, %v814_v56 }
  0x6d   :  { %821 = vst [vmem:[#allocation1 + $0x21] ss:$2 sm:$0xff] %v796_v30 }
  0x6f   :  { %v822_v39 = vld.sshfl [vmem:[#allocation1] sm:$0xff pattern:$0x75316420] }
  0x72   :  { %v823_v40 = vld.sshfl [vmem:[#allocation1 + $0x10] sm:$0xff pattern:$0x75316420] }
  0x73   :  { %3586 = vmatmul.msk.bf16.gmra.mxu2 %vm235_vm0, %v664_v8  ;;  %3590 = vmatmul.msk.bf16.gmra.mxu3 %vm235_vm0, %v664_v8  ;;  %v834_v41 = vpack.c.bf16 %v823_v40, %v822_v39 }
  0x74   :  { %v824_v51 = vld.sshfl [vmem:[#allocation1 + $0x20] sm:$0xff pattern:$0x75316420] }
  0x75   :  { %v835_v18 = vpack.c.bf16 %v824_v51, %v824_v51 }
  0x76   :  { %3559 = vmatmul.msk.bf16.gmra.mxu0 %vm235_vm0, %v475_v37  ;;  %3563 = vmatmul.msk.bf16.gmra.mxu1 %vm235_vm0, %v475_v37 }
  0x83   :  { %3587 = vmatmul.msk.bf16.gmra.mxu2 %vm235_vm0, %v665_v25  ;;  %3591 = vmatmul.msk.bf16.gmra.mxu3 %vm235_vm0, %v665_v25 }
  0x86   :  { %3560 = vmatmul.msk.bf16.gmra.mxu0 %vm235_vm0, %v476_v58  ;;  %3564 = vmatmul.msk.bf16.gmra.mxu1 %vm235_vm0, %v476_v58 }
  0x96   :  { %3561 = vmatmul.msk.bf16.gmra.mxu0 %vm235_vm0, %v477_v38  ;;  %3565 = vmatmul.msk.bf16.gmra.mxu1 %vm235_vm0, %v477_v38  ;;  %v345_v42 = vpop.f32.mrf.mxu2  ;;  %v373_v23 = vpop.f32.mrf.mxu3 }
  0x9e   :  { %v4851_v1 = vpop.f32.mrf.mxu2  ;;  %v4853_v35 = vpop.f32.mrf.mxu3 }
  0xa3   :  { %v257_v62 = vpop.f32.mrf.mxu0  ;;  %v285_v34 = vpop.f32.mrf.mxu1 }
  0xa4   :  { %v346_v3 = vadd.f32 %v345_v42, %v257_v62  ;;  %v374_v2 = vadd.f32 %v373_v23, %v285_v34 }
  0xa6   :  { %3608 = vmatmul.msk.bf16.vlgmr.msra.gmra.mxu0 %vm235_vm0, %v832_v44  ;;  %3612 = vmatmul.msk.bf16.vlgmr.msra.gmra.mxu1 %vm235_vm0, %v832_v44  ;;  %v350_v4 = vpop.f32.mrf.mxu2  ;;  %v378_v5 = vpop.f32.mrf.mxu3 }
  0xab   :  { %v4857_v47 = vpop.f32.mrf.mxu0  ;;  %v4859_v6 = vpop.f32.mrf.mxu1 }
  0xae   :  { %v4861_v7 = vpop.f32.mrf.mxu2  ;;  %v4863_v57 = vpop.f32.mrf.mxu3 }
  0xb3   :  { %v262_v12 = vpop.f32.mrf.mxu0  ;;  %v290_v13 = vpop.f32.mrf.mxu1 }
  0xb4   :  { %v351_v15 = vadd.f32 %v350_v4, %v262_v12  ;;  %v379_v49 = vadd.f32 %v378_v5, %v290_v13 }
  0xb6   :  { %3609 = vmatmul.msk.bf16.gmra.mxu0 %vm235_vm0, %v833_v63  ;;  %3613 = vmatmul.msk.bf16.gmra.mxu1 %vm235_vm0, %v833_v63  ;;  %v355_v16 = vpop.f32.mrf.mxu2  ;;  %v383_v26 = vpop.f32.mrf.mxu3 }
  0xbb   :  { %v4867_v27 = vpop.f32.mrf.mxu0  ;;  %v4869_v32 = vpop.f32.mrf.mxu1 }
  0xbe   :  { %v4871_v36 = vpop.f32.mrf.mxu2  ;;  %v4873_v21 = vpop.f32.mrf.mxu3 }
  0xc3   :  { %v267_v33 = vpop.f32.mrf.mxu0  ;;  %v295_v45 = vpop.f32.mrf.mxu1 }
  0xc4   :  { %v356_v46 = vadd.f32 %v355_v16, %v267_v33  ;;  %v384_v11 = vadd.f32 %v383_v26, %v295_v45 }
  0xc6   :  { %3610 = vmatmul.msk.bf16.gmra.mxu0 %vm235_vm0, %v834_v41  ;;  %3614 = vmatmul.msk.bf16.gmra.mxu1 %vm235_vm0, %v834_v41  ;;  %v388_v9 = vpop.f32.mrf.mxu3  ;;  %v360_v53 = vpop.f32.mrf.mxu2 }
  0xcb   :  { %v269_v48 = vpop.f32.mrf.mxu0  ;;  %v4877_v50 = vpop.f32.mrf.mxu1 }
  0xcc   :  { %v358_v33 = vadd.f32 %v4871_v36, %v269_v48  ;;  %v938_v36 = vld [vmem:[%s6048_s2] sm:$0x3] }
  0xcd   :  { %v4913_v48 = vperm.slane %v938_v36, 0 }
  0xce   :  { %v362_v52 = vpop.f32.mrf.mxu2  ;;  %v390_v54 = vpop.f32.mrf.mxu3 }
  0xd3   :  { %v272_v19 = vpop.f32.mrf.mxu0  ;;  %v300_v29 = vpop.f32.mrf.mxu1 }
  0xd4   :  { %v389_v30 = vadd.f32 %v388_v9, %v300_v29  ;;  %v361_v17 = vadd.f32 %v360_v53, %v272_v19 }
  0xd6   :  { %3611 = vmatmul.msk.bf16.gmra.mxu0 %vm235_vm0, %v835_v18  ;;  %3615 = vmatmul.msk.bf16.gmra.mxu1 %vm235_vm0, %v835_v18  ;;  %v707_v20 = vpop.f32.mrf.mxu2  ;;  %v735_v22 = vpop.f32.mrf.mxu3 }
  0xdb   :  { %v274_v55 = vpop.f32.mrf.mxu0  ;;  %v302_v59 = vpop.f32.mrf.mxu1 }
  0xdc   :  { %v4915_v59 = vperm.slane %v938_v36, 1 }
  0xde   :  { %v4881_v31 = vpop.f32.mrf.mxu2  ;;  %v4883_v8 = vpop.f32.mrf.mxu3 }
  0xe3   :  { %v519_v24 = vpop.f32.mrf.mxu0  ;;  %v547_v14 = vpop.f32.mrf.mxu1 }
  0xe4   :  { %v566_v37 = vadd.f32 %v519_v24, %v346_v3  ;;  %v567_v60 = vadd.f32 %v547_v14, %v374_v2 }
  0xe6   :  { %v754_v61 = vadd.f32 %v707_v20, %v566_v37  ;;  %v755_v28 = vadd.f32 %v735_v22, %v567_v60  ;;  %v712_v0 = vpop.f32.mrf.mxu2  ;;  %v740_v43 = vpop.f32.mrf.mxu3 }
  0xeb   :  { %v521_v25 = vpop.f32.mrf.mxu0  ;;  %v549_v58 = vpop.f32.mrf.mxu1 }
  0xee   :  { %v4885_v56 = vpop.f32.mrf.mxu2  ;;  %v4887_v38 = vpop.f32.mrf.mxu3 }
  0xf3   :  { %v524_v42 = vpop.f32.mrf.mxu0  ;;  %v552_v23 = vpop.f32.mrf.mxu1 }
  0xf4   :  { %v570_v44 = vadd.f32 %v524_v42, %v351_v15  ;;  %v571_v62 = vadd.f32 %v552_v23, %v379_v49 }
  0xf6   :  { %v4889_v34 = vadd.f32 %v712_v0, %v570_v44  ;;  %v4891_v4 = vadd.f32 %v740_v43, %v571_v62  ;;  %v717_v3 = vpop.f32.mrf.mxu2  ;;  %v745_v2 = vpop.f32.mrf.mxu3 }
  0xfb   :  { %v4893_v5 = vpop.f32.mrf.mxu0  ;;  %v4895_v10 = vpop.f32.mrf.mxu1 }
  0xfe   :  { %v719_v63 = vpop.f32.mrf.mxu2  ;;  %v4897_v12 = vpop.f32.mrf.mxu3 }
 0x103   :  { %v529_v13 = vpop.f32.mrf.mxu0  ;;  %v557_v16 = vpop.f32.mrf.mxu1 }
 0x104   :  { %v574_v26 = vadd.f32 %v529_v13, %v356_v46  ;;  %v575_v39 = vadd.f32 %v557_v16, %v384_v11 }
 0x106   :  { %v4899_v40 = vadd.f32 %v717_v3, %v574_v26  ;;  %v4901_v15 = vadd.f32 %v745_v2, %v575_v39  ;;  %v722_v49 = vpop.f32.mrf.mxu2  ;;  %v750_v41 = vpop.f32.mrf.mxu3  ;;  %v381_v26 = vadd.f32 %v4863_v57, %v4869_v32  ;;  %v386_v39 = vadd.f32 %v4873_v21, %v4877_v50 }
 0x10b   :  { %v531_v45 = vpop.f32.mrf.mxu0  ;;  %v559_v9 = vpop.f32.mrf.mxu1 }
 0x10c   :  { %v576_v53 = vadd.f32 %v531_v45, %v358_v33  ;;  %v1442_v45 = vld [vmem:[%s6051_s5 + $0x50] sm:$0xf] }
 0x10e   :  { %v4904_v52 = vadd.f32 %v719_v63, %v576_v53  ;;  %v752_v54 = vpop.f32.mrf.mxu3  ;;  %v724_v51 = vpop.f32.mrf.mxu2  ;;  %v1704_v53 = vunpack.c.l.b16 %v1442_v45 }
 0x113   :  { %v534_v18 = vpop.f32.mrf.mxu0  ;;  %v562_v19 = vpop.f32.mrf.mxu1 }
 0x114   :  { %v578_v29 = vadd.f32 %v534_v18, %v361_v17  ;;  %v579_v46 = vadd.f32 %v562_v19, %v389_v30  ;;  %v348_v17 = vadd.f32 %v4851_v1, %v4857_v47  ;;  %v376_v30 = vadd.f32 %v4853_v35, %v4859_v6  ;;  %v4141_v1 = vld [vmem:[%s6051_s5 + $0x38] sm:$0xff] }
 0x115   :  { %1737 = vmatpush.bf16.msra.mxu2 %v4141_v1 }
 0x116   :  { %v4906_v11 = vadd.f32 %v722_v49, %v578_v29  ;;  %v4908_v20 = vadd.f32 %v750_v41, %v579_v46  ;;  %v568_v0 = vadd.f32 %v521_v25, %v348_v17  ;;  %v569_v43 = vadd.f32 %v549_v58, %v376_v30 }
 0x117   :  { %v353_v58 = vadd.f32 %v4861_v7, %v4867_v27  ;;  %v573_v7 = vadd.f32 %v4895_v10, %v381_v26  ;;  %v577_v27 = vadd.f32 %v559_v9, %v386_v39  ;;  %v4139_v26 = vld [vmem:[%s6051_s5 + $0x28] sm:$0xff] }
 0x118   :  { %v756_v3 = vadd.f32 %v4881_v31, %v568_v0  ;;  %v757_v2 = vadd.f32 %v4883_v8, %v569_v43  ;;  %v4140_v31 = vld [vmem:[%s6051_s5 + $0x30] sm:$0xff] }
 0x119   :  { %1738 = vmatpush.bf16.msra.mxu2 %v4140_v31  ;;  %v572_v49 = vadd.f32 %v4893_v5, %v353_v58  ;;  %v1715_v5 = vpack.c.b16 %v1704_v53, %v1704_v53  ;;  %v4950_v29 = vadd.f32 %v4887_v38, %v573_v7  ;;  %v4953_v46 = vadd.f32 %v4897_v12, %v577_v27 }
 0x11b   :  { %v536_v22 = vpop.f32.mrf.mxu0  ;;  %v564_v55 = vpop.f32.mrf.mxu1  ;;  %v760_v9 = vadd.f32 %v4885_v56, %v572_v49 }
 0x11d   :  { %1739 = vmatpush.bf16.msra.mxu2 %v4139_v26 }
 0x123   :  { %v877_v24 = vpop.f32.mrf.mxu0  ;;  %v905_v14 = vpop.f32.mrf.mxu1 }
 0x124   :  { %v924_v37 = vadd.f32 %v877_v24, %v754_v61  ;;  %v925_v60 = vadd.f32 %v905_v14, %v755_v28 }
 0x126   :  { %v944_v42 = vadd.f32 %v4913_v48, %v924_v37  ;;  %v945_v23 = vadd.f32 %v4915_v59, %v925_v60 }
 0x128   :  { %v958_v44 = vmul.f32 0.5, %v944_v42  ;;  %v959_v62 = vmul.f32 0.5, %v945_v23 }
 0x12a   :  { %4247 = vtanh.f32 %v958_v44 }
 0x12b   :  { %4249 = vtanh.f32 %v959_v62  ;;  %v879_v35 = vpop.f32.mrf.mxu0  ;;  %v907_v47 = vpop.f32.mrf.mxu1 }
 0x12c   :  { %v926_v6 = vadd.f32 %v879_v35, %v756_v3  ;;  %v927_v61 = vadd.f32 %v907_v47, %v757_v2 }
 0x12e   :  { %v946_v28 = vadd.f32 %v4913_v48, %v926_v6  ;;  %v947_v25 = vadd.f32 %v4915_v59, %v927_v61 }
 0x130   :  { %v4248_v8 = vpop.eup %4247  ;;  %v960_v63 = vmul.f32 0.5, %v946_v28  ;;  %v961_v13 = vmul.f32 0.5, %v947_v25 }
 0x131   :  { %v4250_v16 = vpop.eup %4249  ;;  %v986_v41 = vmul.f32 0.5, %v4248_v8 }
 0x132   :  { %v987_v33 = vmul.f32 0.5, %v4250_v16  ;;  %4251 = vtanh.f32 %v960_v63 }
 0x133   :  { %4253 = vtanh.f32 %v961_v13  ;;  %v882_v54 = vpop.f32.mrf.mxu0  ;;  %v910_v57 = vpop.f32.mrf.mxu1  ;;  %v1000_v51 = vadd.f32 0.5, %v986_v41 }
 0x134   :  { %v1001_v32 = vadd.f32 0.5, %v987_v33  ;;  %v928_v21 = vadd.f32 %v882_v54, %v4889_v34  ;;  %v929_v50 = vadd.f32 %v910_v57, %v4891_v4  ;;  %v1735_v34 = vsel %vm1733_vm10, %v1715_v5, 0 }
 0x135   :  { %1761 = vmatpush.bf16.msra.mxu3 %v1735_v34 }
 0x136   :  { %v1028_v18 = vrot.slane %v1001_v32, 6  ;;  %v948_v19 = vadd.f32 %v4913_v48, %v928_v21  ;;  %v949_v10 = vadd.f32 %v4915_v59, %v929_v50 }
 0x138   :  { %v4252_v4 = vpop.eup %4251  ;;  %v1035_v22 = vsel %vm392_vm4, %v1000_v51, %v1028_v18  ;;  %v1037_v55 = vsel %vm1036_vm11, %v1000_v51, %v1028_v18  ;;  %v1039_v36 = vsel %vm393_vm5, %v1000_v51, %v1028_v18  ;;  %v1042_v24 = vsel %vm1041_vm12, %v1028_v18, %v1000_v51 }
 0x139   :  { %v4254_v14 = vpop.eup %4253  ;;  %v1038_v56 = vrot.slane %v1037_v55, 2  ;;  %v1040_v17 = vrot.slane %v1039_v36, 4  ;;  %v1043_v38 = vrot.slane %v1042_v24, 6  ;;  %v3616_v30 = vrot.slane %v1035_v22, 9 }
 0x13a   :  { %v988_v37 = vmul.f32 0.5, %v4252_v4  ;;  %v989_v12 = vmul.f32 0.5, %v4254_v14  ;;  %v962_v60 = vmul.f32 0.5, %v948_v19  ;;  %v963_v0 = vmul.f32 0.5, %v949_v10 }
 0x13b   :  { %v3617_v43 = vrot.slane %v1038_v56, 9  ;;  %v3618_v42 = vrot.slane %v1040_v17, 9  ;;  %v3619_v23 = vrot.slane %v1043_v38, 9  ;;  %v1198_v44 = vadd.f32 %v3616_v30, %v1035_v22  ;;  %v884_v62 = vpop.f32.mrf.mxu0  ;;  %v4960_v3 = vpop.f32.mrf.mxu1 }
 0x13c   :  { %v1002_v2 = vadd.f32 0.5, %v988_v37  ;;  %v1003_v1 = vadd.f32 0.5, %v989_v12  ;;  %4255 = vtanh.f32 %v962_v60  ;;  %v930_v35 = vadd.f32 %v884_v62, %v760_v9 }
 0x13d   :  { %v1199_v47 = vadd.f32 %v3617_v43, %v1038_v56  ;;  %v1200_v6 = vadd.f32 %v3618_v42, %v1040_v17  ;;  %v1201_v61 = vadd.f32 %v3619_v23, %v1043_v38  ;;  %v1254_v28 = vperm.slane %v1198_v44, 0  ;;  %v4138_v23 = vld [vmem:[%s6051_s5 + $0x20] sm:$0xff] }
 0x13e   :  { %v1255_v25 = vperm.slane %v1198_v44, 2  ;;  %v1029_v31 = vrot.slane %v1003_v1, 6  ;;  %4257 = vtanh.f32 %v963_v0  ;;  %v950_v8 = vadd.f32 %v4913_v48, %v930_v35  ;;  %1740 = vmatpush.bf16.msra.mxu2 %v4138_v23 }
 0x13f   :  { %v1256_v58 = vperm.slane %v1199_v47, 0  ;;  %v1257_v63 = vperm.slane %v1199_v47, 2  ;;  %v1258_v13 = vperm.slane %v1200_v6, 0  ;;  %v1259_v16 = vperm.slane %v1200_v6, 2 }
 0x140   :  { %v1260_v39 = vperm.slane %v1201_v61, 0  ;;  %v1261_v49 = vperm.slane %v1201_v61, 2  ;;  %v4966_v41 = vpack.c.bf16 %v1254_v28, %v1254_v28  ;;  %v1367_v33 = vpack.c.bf16 %v1255_v25, %v1255_v25 }
 0x141   :  { %v1368_v45 = vpack.c.bf16 %v1256_v58, %v1256_v58  ;;  %v1369_v7 = vpack.c.bf16 %v1257_v63, %v1257_v63  ;;  %v1370_v27 = vpack.c.bf16 %v1258_v13, %v1258_v13  ;;  %v1371_v53 = vpack.c.bf16 %v1259_v16, %v1259_v16 }
 0x142   :  { %v4256_v54 = vpop.eup %4255  ;;  %v1372_v57 = vpack.c.bf16 %v1260_v39, %v1260_v39  ;;  %v1373_v32 = vpack.c.bf16 %v1261_v49, %v1261_v49  ;;  %v1499_v21 = vunpack.c.l.b16 %v4966_v41  ;;  %v1500_v50 = vunpack.c.l.b16 %v1367_v33 }
 0x143   :  { %v1501_v5 = vunpack.c.l.b16 %v1368_v45  ;;  %v1502_v51 = vunpack.c.l.b16 %v1369_v7  ;;  %v1503_v18 = vunpack.c.l.b16 %v1370_v27  ;;  %v1504_v19 = vunpack.c.l.b16 %v1371_v53  ;;  %v887_v10 = vpop.f32.mrf.mxu0  ;;  %v4969_v9 = vpop.f32.mrf.mxu1 }
 0x144   :  { %v4258_v34 = vpop.eup %4257  ;;  %v1505_v4 = vunpack.c.l.b16 %v1372_v57  ;;  %v1506_v22 = vunpack.c.l.b16 %v1373_v32  ;;  %v1044_v55 = vsel %vm392_vm4, %v1002_v2, %v1029_v31  ;;  %v1045_v36 = vsel %vm1036_vm11, %v1002_v2, %v1029_v31 }
 0x145   :  { %v4973_v24 = vrot.slane %v1501_v5, 7  ;;  %v4975_v14 = vrot.slane %v1503_v18, 6  ;;  %v1575_v56 = vrot.slane %v1502_v51, 7  ;;  %v4977_v17 = vrot.slane %v1504_v19, 6 }
 0x146   :  { %v4979_v38 = vrot.slane %v1505_v4, 5  ;;  %v4981_v30 = vrot.slane %v1506_v22, 5  ;;  %v1046_v37 = vrot.slane %v1045_v36, 2  ;;  %v1047_v12 = vsel %vm393_vm5, %v1002_v2, %v1029_v31 }
 0x147   :  { %v4985_v60 = vsel %vm1556_vm13, %v1575_v56, %v1500_v50  ;;  %v1048_v0 = vrot.slane %v1047_v12, 4  ;;  %v4988_v43 = vsel %vm1041_vm12, %v1029_v31, %v1002_v2  ;;  %v3620_v42 = vrot.slane %v1044_v55, 9  ;;  %v4137_v50 = vld [vmem:[%s6051_s5 + $0x18] sm:$0xff] }
 0x148   :  { %v1050_v44 = vrot.slane %v4988_v43, 6  ;;  %v3621_v62 = vrot.slane %v1046_v37, 9  ;;  %v990_v1 = vmul.f32 0.5, %v4256_v54  ;;  %v991_v35 = vmul.f32 0.5, %v4258_v34  ;;  %1741 = vmatpush.bf16.msra.mxu2 %v4137_v50 }
 0x149   :  { %v3622_v47 = vrot.slane %v1048_v0, 9  ;;  %v1202_v6 = vadd.f32 %v3620_v42, %v1044_v55  ;;  %v964_v61 = vmul.f32 0.5, %v950_v8  ;;  %v931_v28 = vadd.f32 %v4960_v3, %v4950_v29 }
 0x14a   :  { %v4998_v2 = vrot.slane %v1050_v44, 9  ;;  %v5000_v25 = vadd.f32 %v3621_v62, %v1046_v37  ;;  %v1004_v31 = vadd.f32 0.5, %v990_v1  ;;  %v1005_v58 = vadd.f32 0.5, %v991_v35  ;;  %v4136_v1 = vld [vmem:[%s6051_s5 + $0x10] sm:$0xff] }
 0x14b   :  { %v5002_v63 = vadd.f32 %v3622_v47, %v1048_v0  ;;  %v1262_v13 = vperm.slane %v1202_v6, 0  ;;  %v1263_v16 = vperm.slane %v1202_v6, 2  ;;  %4259 = vtanh.f32 %v964_v61  ;;  %v5004_v26 = vpop.f32.mrf.mxu0  ;;  %v5006_v8 = vpop.f32.mrf.mxu1 }
 0x14c   :  { %v1264_v29 = vperm.slane %v5000_v25, 0  ;;  %v1265_v3 = vperm.slane %v5000_v25, 2  ;;  %v1030_v39 = vrot.slane %v1005_v58, 6  ;;  %v951_v49 = vadd.f32 %v4915_v59, %v931_v28  ;;  %1742 = vmatpush.bf16.msra.mxu2 %v4136_v1  ;;  %v4142_v1 = vld [vmem:[%s6051_s5 + $0x40] sm:$0xff] }
 0x14d   :  { %v1267_v33 = vperm.slane %v5002_v63, 2  ;;  %v1374_v45 = vpack.c.bf16 %v1262_v13, %v1262_v13  ;;  %v1375_v7 = vpack.c.bf16 %v1263_v16, %v1263_v16  ;;  %v932_v27 = vadd.f32 %v887_v10, %v4899_v40  ;;  %v4143_v40 = vld [vmem:[%s6051_s5 + $0x48] sm:$0xff] }
 0x14e   :  { %v1377_v53 = vpack.c.bf16 %v1265_v3, %v1265_v3  ;;  %v1051_v54 = vsel %vm392_vm4, %v1004_v31, %v1030_v39  ;;  %v1052_v57 = vsel %vm1036_vm11, %v1004_v31, %v1030_v39  ;;  %v1054_v32 = vsel %vm393_vm5, %v1004_v31, %v1030_v39  ;;  %1762 = vmatpush.bf16.msra.mxu3 %v4143_v40 }
 0x14f   :  { %v5019_v5 = vpack.c.bf16 %v1267_v33, %v1267_v33  ;;  %v1507_v51 = vunpack.c.l.b16 %v1374_v45  ;;  %v1508_v18 = vunpack.c.l.b16 %v1375_v7  ;;  %v1053_v19 = vrot.slane %v1052_v57, 2 }
 0x150   :  { %v1510_v10 = vunpack.c.l.b16 %v1377_v53  ;;  %v1055_v34 = vrot.slane %v1054_v32, 4  ;;  %v1056_v4 = vsel %vm1041_vm12, %v1030_v39, %v1004_v31  ;;  %v3624_v22 = vrot.slane %v1051_v54, 9 }
 0x151   :  { %v4260_v55 = vpop.eup %4259  ;;  %v5026_v56 = vrot.slane %v1507_v51, 4  ;;  %v5028_v37 = vrot.slane %v1508_v18, 4  ;;  %v1057_v12 = vrot.slane %v1056_v4, 6  ;;  %v3625_v42 = vrot.slane %v1053_v19, 9 }
 0x152   :  { %v5030_v0 = vrot.slane %v1510_v10, 3  ;;  %v3626_v23 = vrot.slane %v1055_v34, 9  ;;  %v1206_v62 = vadd.f32 %v3624_v22, %v1051_v54  ;;  %v992_v47 = vmul.f32 0.5, %v4260_v55  ;;  %1763 = vmatpush.bf16.msra.mxu3 %v4142_v1 }
 0x153   :  { %v3627_v35 = vrot.slane %v1057_v12, 9  ;;  %v965_v6 = vmul.f32 0.5, %v951_v49  ;;  %v952_v61 = vadd.f32 %v4913_v48, %v932_v27  ;;  %v892_v28 = vpop.f32.mrf.mxu0  ;;  %v920_v31 = vpop.f32.mrf.mxu1  ;;  %v1207_v58 = vadd.f32 %v3625_v42, %v1053_v19  ;;  %v4135_v49 = vld [vmem:[%s6051_s5 + $0x8] sm:$0xff] }
 0x154   :  { %v1208_v13 = vadd.f32 %v3626_v23, %v1055_v34  ;;  %v1270_v16 = vperm.slane %v1206_v62, 0  ;;  %v1271_v3 = vperm.slane %v1206_v62, 2  ;;  %v5036_v33 = vadd.f32 0.5, %v992_v47  ;;  %1743 = vmatpush.bf16.msra.mxu2 %v4135_v49 }
 0x155   :  { %v1209_v39 = vadd.f32 %v3627_v35, %v1057_v12  ;;  %4261 = vtanh.f32 %v965_v6  ;;  %v966_v45 = vmul.f32 0.5, %v952_v61  ;;  %v1272_v7 = vperm.slane %v1207_v58, 0  ;;  %v4134_v35 = vld [vmem:[%s6051_s5] sm:$0xff] }
 0x156   :  { %v1273_v53 = vperm.slane %v1207_v58, 2  ;;  %v1274_v54 = vperm.slane %v1208_v13, 0  ;;  %v1275_v57 = vperm.slane %v1208_v13, 2  ;;  %v5041_v50 = vpack.c.bf16 %v1270_v16, %v1270_v16 }
 0x157   :  { %v1276_v27 = vperm.slane %v1209_v39, 0  ;;  %v1277_v32 = vperm.slane %v1209_v39, 2  ;;  %v1383_v51 = vpack.c.bf16 %v1271_v3, %v1271_v3  ;;  %v1384_v18 = vpack.c.bf16 %v1272_v7, %v1272_v7 }
 0x158   :  { %v1385_v19 = vpack.c.bf16 %v1273_v53, %v1273_v53  ;;  %v1386_v40 = vpack.c.bf16 %v1274_v54, %v1274_v54  ;;  %v1387_v10 = vpack.c.bf16 %v1275_v57, %v1275_v57  ;;  %v1515_v22 = vunpack.c.l.b16 %v5041_v50  ;;  %1744 = vmatpush.bf16.msra.mxu2 %v4134_v35 }
 0x159   :  { %v1388_v34 = vpack.c.bf16 %v1276_v27, %v1276_v27  ;;  %v1389_v4 = vpack.c.bf16 %v1277_v32, %v1277_v32  ;;  %v1516_v55 = vunpack.c.l.b16 %v1383_v51  ;;  %v1517_v12 = vunpack.c.l.b16 %v1384_v18 }
 0x15a   :  { %v1518_v42 = vunpack.c.l.b16 %v1385_v19  ;;  %v1519_v23 = vunpack.c.l.b16 %v1386_v40  ;;  %v1520_v62 = vunpack.c.l.b16 %v1387_v10  ;;  %4263 = vtanh.f32 %v966_v45 }
 0x15b   :  { %v4262_v47 = vpop.eup %4261  ;;  %v1521_v6 = vunpack.c.l.b16 %v1388_v34  ;;  %v1522_v61 = vunpack.c.l.b16 %v1389_v4  ;;  %v933_v58 = vadd.f32 %v4969_v9, %v4901_v15  ;;  %v894_v13 = vpop.f32.mrf.mxu0  ;;  %v5052_v3 = vrot.slane %v1517_v12, 7 }
 0x15c   :  { %v922_v16 = vpop.f32.mrf.mxu1  ;;  %v5054_v39 = vrot.slane %v1519_v23, 6  ;;  %v1603_v7 = vrot.slane %v1518_v42, 7  ;;  %v5056_v53 = vrot.slane %v1520_v62, 6  ;;  %v993_v49 = vmul.f32 0.5, %v4262_v47 }
 0x15d   :  { %v5058_v54 = vrot.slane %v1521_v6, 5  ;;  %v5060_v57 = vrot.slane %v1522_v61, 5  ;;  %v953_v45 = vadd.f32 %v4915_v59, %v933_v58  ;;  %v934_v9 = vadd.f32 %v5004_v26, %v4904_v52 }
 0x15e   :  { %v5064_v15 = vsel %vm1556_vm13, %v1603_v7, %v1516_v55  ;;  %v935_v27 = vadd.f32 %v5006_v8, %v4953_v46  ;;  %v936_v32 = vadd.f32 %v892_v28, %v4906_v11  ;;  %v1007_v51 = vadd.f32 0.5, %v993_v49 }
 0x15f   :  { %v967_v18 = vmul.f32 0.5, %v953_v45  ;;  %v937_v19 = vadd.f32 %v920_v31, %v4908_v20  ;;  %v5075_v40 = vadd.f32 %v4998_v2, %v1050_v44  ;;  %v954_v10 = vadd.f32 %v4913_v48, %v934_v9 }
 0x160   :  { %v955_v34 = vadd.f32 %v4915_v59, %v935_v27  ;;  %v956_v52 = vadd.f32 %v4913_v48, %v936_v32  ;;  %v1266_v26 = vperm.slane %v5002_v63, 0  ;;  %v4264_v46 = vpop.eup %4263  ;;  %v1031_v8 = vrot.slane %v1007_v51, 6 }
 0x161   :  { %4265 = vtanh.f32 %v967_v18  ;;  %v957_v11 = vadd.f32 %v4915_v59, %v937_v19  ;;  %v1268_v20 = vperm.slane %v5075_v40, 0  ;;  %v994_v28 = vmul.f32 0.5, %v4264_v46 }
 0x162   :  { %v968_v43 = vmul.f32 0.5, %v954_v10  ;;  %v969_v31 = vmul.f32 0.5, %v955_v34  ;;  %v970_v44 = vmul.f32 0.5, %v956_v52  ;;  %v1058_v2 = vsel %vm392_vm4, %v5036_v33, %v1031_v8 }
 0x163   :  { %v1059_v4 = vsel %vm1036_vm11, %v5036_v33, %v1031_v8  ;;  %v1061_v48 = vsel %vm393_vm5, %v5036_v33, %v1031_v8  ;;  %v1063_v63 = vsel %vm1041_vm12, %v1031_v8, %v5036_v33  ;;  %v3628_v42 = vrot.slane %v1058_v2, 9 }
 0x164   :  { %v1060_v55 = vrot.slane %v1059_v4, 2  ;;  %v1062_v59 = vrot.slane %v1061_v48, 4  ;;  %v1064_v12 = vrot.slane %v1063_v63, 6  ;;  %v1008_v23 = vadd.f32 0.5, %v994_v28 }
 0x165   :  { %4267 = vtanh.f32 %v968_v43  ;;  %v971_v62 = vmul.f32 0.5, %v957_v11  ;;  %v1269_v1 = vperm.slane %v5075_v40, 2  ;;  %v1210_v61 = vadd.f32 %v3628_v42, %v1058_v2 }
 0x166   :  { %v3629_v35 = vrot.slane %v1060_v55, 9  ;;  %v3630_v47 = vrot.slane %v1062_v59, 9  ;;  %v3631_v6 = vrot.slane %v1064_v12, 9  ;;  %4269 = vtanh.f32 %v969_v31 }
 0x167   :  { %v4266_v58 = vpop.eup %4265  ;;  %v5095_v13 = vpack.c.bf16 %v1264_v29, %v1264_v29  ;;  %v5097_v33 = vpack.c.bf16 %v1266_v26, %v1266_v26  ;;  %v5099_v16 = vpack.c.bf16 %v1268_v20, %v1268_v20  ;;  %v1278_v45 = vperm.slane %v1210_v61, 0 }
 0x168   :  { %v1211_v7 = vadd.f32 %v3629_v35, %v1060_v55  ;;  %v1212_v49 = vadd.f32 %v3630_v47, %v1062_v59  ;;  %v1279_v9 = vperm.slane %v1210_v61, 2  ;;  %v995_v27 = vmul.f32 0.5, %v4266_v58 }
 0x169   :  { %4271 = vtanh.f32 %v970_v44  ;;  %v5101_v32 = vadd.f32 %v3631_v6, %v1064_v12  ;;  %v1509_v51 = vunpack.c.l.b16 %v5095_v13  ;;  %v1390_v10 = vpack.c.bf16 %v1278_v45, %v1278_v45 }
 0x16a   :  { %v1280_v18 = vperm.slane %v1211_v7, 0  ;;  %v1281_v19 = vperm.slane %v1211_v7, 2  ;;  %v1283_v25 = vperm.slane %v1212_v49, 2  ;;  %v1391_v34 = vpack.c.bf16 %v1279_v9, %v1279_v9 }
 0x16b   :  { %v4268_v29 = vpop.eup %4267  ;;  %v1009_v52 = vadd.f32 0.5, %v995_v27  ;;  %4273 = vtanh.f32 %v971_v62  ;;  %v1282_v26 = vperm.slane %v1212_v49, 0  ;;  %v1523_v11 = vunpack.c.l.b16 %v1390_v10 }
 0x16c   :  { %v1393_v46 = vpack.c.bf16 %v1281_v19, %v1281_v19  ;;  %v5104_v8 = vpack.c.bf16 %v1283_v25, %v1283_v25  ;;  %v996_v20 = vmul.f32 0.5, %v4268_v29  ;;  %v4270_v28 = vpop.eup %4269  ;;  %v1524_v43 = vunpack.c.l.b16 %v1391_v34 }
 0x16d   :  { %v1032_v31 = vrot.slane %v1009_v52, 6  ;;  %v1284_v44 = vperm.slane %v5101_v32, 0  ;;  %v1285_v2 = vperm.slane %v5101_v32, 2  ;;  %v5109_v63 = vrot.slane %v1523_v11, 4 }
 0x16e   :  { %v1526_v4 = vunpack.c.l.b16 %v1393_v46  ;;  %v5111_v55 = vadd.f32 0.5, %v996_v20  ;;  %v5113_v12 = vrot.slane %v1524_v43, 4  ;;  %v997_v9 = vmul.f32 0.5, %v4270_v28 }
 0x16f   :  { %v4272_v59 = vpop.eup %4271  ;;  %v1065_v42 = vsel %vm392_vm4, %v1008_v23, %v1032_v31  ;;  %v1066_v62 = vsel %vm1036_vm11, %v1008_v23, %v1032_v31  ;;  %v1068_v35 = vsel %vm393_vm5, %v1008_v23, %v1032_v31  ;;  %v1070_v58 = vsel %vm1041_vm12, %v1032_v31, %v1008_v23 }
 0x170   :  { %v5118_v47 = vrot.slane %v1526_v4, 3  ;;  %v1067_v6 = vrot.slane %v1066_v62, 2  ;;  %v1069_v61 = vrot.slane %v1068_v35, 4  ;;  %v1071_v49 = vrot.slane %v1070_v58, 6 }
 0x171   :  { %v4274_v7 = vpop.eup %4273  ;;  %v3632_v45 = vrot.slane %v1065_v42, 9  ;;  %v998_v27 = vmul.f32 0.5, %v4272_v59  ;;  %v5121_v29 = vpack.c.bf16 %v1280_v18, %v1280_v18  ;;  %v1011_v46 = vadd.f32 0.5, %v997_v9 }
 0x172   :  { %v3633_v19 = vrot.slane %v1067_v6, 9  ;;  %v3634_v25 = vrot.slane %v1069_v61, 9  ;;  %v999_v10 = vmul.f32 0.5, %v4274_v7  ;;  %v3635_v34 = vrot.slane %v1071_v49, 9 }
 0x173   :  { %v1214_v52 = vadd.f32 %v3632_v45, %v1065_v42  ;;  %v5123_v11 = vadd.f32 0.5, %v998_v27  ;;  %v5125_v62 = vpack.c.bf16 %v1282_v26, %v1282_v26  ;;  %v5129_v59 = vrot.slane %v1011_v46, 6 }
 0x174   :  { %v1215_v20 = vadd.f32 %v3633_v19, %v1067_v6  ;;  %v1216_v43 = vadd.f32 %v3634_v25, %v1069_v61  ;;  %v1013_v4 = vadd.f32 0.5, %v999_v10  ;;  %v5127_v23 = vadd.f32 %v3635_v34, %v1071_v49 }
 0x175   :  { %v1286_v31 = vperm.slane %v1214_v52, 0  ;;  %v1287_v28 = vperm.slane %v1214_v52, 2  ;;  %v1072_v26 = vsel %vm392_vm4, %v5111_v55, %v5129_v59  ;;  %v5148_v34 = vsel %vm1036_vm11, %v5111_v55, %v5129_v59 }
 0x176   :  { %v1288_v35 = vperm.slane %v1215_v20, 0  ;;  %v1289_v58 = vperm.slane %v1215_v20, 2  ;;  %v1290_v18 = vperm.slane %v1216_v43, 0  ;;  %v1291_v7 = vperm.slane %v1216_v43, 2 }
 0x177   :  { %v1293_v42 = vperm.slane %v5127_v23, 2  ;;  %v5132_v45 = vpack.c.bf16 %v1286_v31, %v1286_v31  ;;  %v5134_v9 = vpack.c.bf16 %v1287_v28, %v1287_v28  ;;  %v6060_v43 = vrot.slane %v5148_v34, 2 }
 0x178   :  { %v1400_v6 = vpack.c.bf16 %v1288_v35, %v1288_v35  ;;  %v1401_v61 = vpack.c.bf16 %v1289_v58, %v1289_v58  ;;  %v5139_v49 = vpack.c.bf16 %v1290_v18, %v1290_v18  ;;  %v1403_v27 = vpack.c.bf16 %v1291_v7, %v1291_v7 }
 0x179   :  { %v5141_v19 = vpack.c.bf16 %v1293_v42, %v1293_v42  ;;  %v5154_v31 = vsel %vm393_vm5, %v5111_v55, %v5129_v59  ;;  %v3636_v28 = vrot.slane %v1072_v26, 9  ;;  %v5156_v35 = vrot.slane %v1013_v4, 6 }
 0x17a   :  { %v1533_v52 = vunpack.c.l.b16 %v1400_v6  ;;  %v1534_v46 = vunpack.c.l.b16 %v1401_v61  ;;  %v1536_v20 = vunpack.c.l.b16 %v1403_v27  ;;  %v1396_v58 = vpack.c.bf16 %v1284_v44, %v1284_v44 }
 0x17b   :  { %v5167_v61 = vrot.slane %v6060_v43, 9  ;;  %v5169_v27 = vadd.f32 %v3636_v28, %v1072_v26  ;;  %v5174_v4 = vsel %vm392_vm4, %v5123_v11, %v5156_v35  ;;  %v5179_v44 = vsel %vm1036_vm11, %v5123_v11, %v5156_v35 }
 0x17c   :  { %v5158_v18 = vrot.slane %v1533_v52, 7  ;;  %v5160_v7 = vrot.slane %v1534_v46, 7  ;;  %v5162_v42 = vrot.slane %v1536_v20, 6  ;;  %v6061_v52 = vrot.slane %v5179_v44, 2 }
 0x17d   :  { %v5185_v46 = vsel %vm393_vm5, %v5123_v11, %v5156_v35  ;;  %v3640_v26 = vrot.slane %v5174_v4, 9  ;;  %v1511_v20 = vunpack.c.l.b16 %v5097_v33  ;;  %v1513_v25 = vunpack.c.l.b16 %v5099_v16 }
 0x17e   :  { %v1083_v10 = vrot.slane %v5185_v46, 4  ;;  %v1525_v43 = vunpack.c.l.b16 %v5121_v29  ;;  %v5195_v6 = vrot.slane %v6061_v52, 9  ;;  %v1527_v48 = vunpack.c.l.b16 %v5125_v62 }
 0x17f   :  { %v1529_v36 = vunpack.c.l.b16 %v1396_v58  ;;  %v1557_v33 = vsel %vm1556_vm13, %v4973_v24, %v1499_v21  ;;  %v1566_v28 = vrot.slane %v1509_v51, 3  ;;  %v1569_v29 = vrot.slane %v1511_v20, 2 }
 0x180   :  { %v1560_v16 = vsel %vm1559_vm14, %v4975_v14, %v1557_v33  ;;  %v1572_v52 = vrot.slane %v1513_v25, 1  ;;  %v1590_v41 = vsel %vm1556_vm13, %v5052_v3, %v1515_v22  ;;  %v1597_v21 = vrot.slane %v1525_v43, 3 }
 0x181   :  { %v1563_v62 = vsel %vm1562_vm15, %v4979_v38, %v1560_v16  ;;  %v1592_v13 = vsel %vm1559_vm14, %v5054_v39, %v1590_v41  ;;  %v1599_v14 = vrot.slane %v1527_v48, 2  ;;  %v1601_v51 = vrot.slane %v1529_v36, 1 }
 0x182   :  { %v1565_v24 = vsel %vm581_vm8, %v5026_v56, %v1563_v62  ;;  %v1594_v38 = vsel %vm1562_vm15, %v5058_v54, %v1592_v13  ;;  %v1381_v50 = vpack.c.bf16 %v1269_v1, %v1269_v1  ;;  %v1397_v22 = vpack.c.bf16 %v1285_v2, %v1285_v2 }
 0x183   :  { %v1568_v25 = vsel %vm1567_vm1, %v1566_v28, %v1565_v24  ;;  %v1596_v3 = vsel %vm581_vm8, %v5109_v63, %v1594_v38  ;;  %v1578_v36 = vsel %vm1559_vm14, %v4977_v17, %v4985_v60  ;;  %v6068_v39 = vunpack.c.l.b16 %v5019_v5 }
 0x184   :  { %v1571_v56 = vsel %vm1570_vm2, %v1569_v29, %v1568_v25  ;;  %v1598_v1 = vsel %vm1567_vm1, %v1597_v21, %v1596_v3  ;;  %v1514_v48 = vunpack.c.l.b16 %v1381_v50  ;;  %v1530_v32 = vunpack.c.l.b16 %v1397_v22 }
 0x185   :  { %v1585_v54 = vrot.slane %v6068_v39, 2  ;;  %v1574_v40 = vsel %vm1573_vm3, %v1572_v52, %v1571_v56  ;;  %v1600_v2 = vsel %vm1570_vm2, %v1599_v14, %v1598_v1  ;;  %v1580_v43 = vsel %vm1562_vm15, %v4981_v30, %v1578_v36 }
 0x186   :  { %v1606_v63 = vsel %vm1559_vm14, %v5056_v53, %v5064_v15  ;;  %v6069_v17 = vunpack.c.l.b16 %v5104_v8  ;;  %v1602_v5 = vsel %vm1573_vm3, %v1601_v51, %v1600_v2  ;;  %v1582_v58 = vsel %vm581_vm8, %v5028_v37, %v1580_v43 }
 0x187   :  { %v1587_v52 = vrot.slane %v1514_v48, 1  ;;  %v1608_v20 = vsel %vm1562_vm15, %v5060_v57, %v1606_v63  ;;  %v1657_v28 = vpack.c.b16 %v1602_v5, %v1574_v40  ;;  %v1584_v30 = vsel %vm1567_vm1, %v5030_v0, %v1582_v58 }
 0x188   :  { %v1613_v60 = vrot.slane %v6069_v17, 2  ;;  %v1610_v33 = vsel %vm581_vm8, %v5113_v12, %v1608_v20  ;;  %v1615_v53 = vrot.slane %v1530_v32, 1  ;;  %v1586_v15 = vsel %vm1570_vm2, %v1585_v54, %v1584_v30 }
 0x189   :  { %v1612_v8 = vsel %vm1567_vm1, %v5118_v47, %v1610_v33  ;;  %v1077_v37 = vsel %vm1041_vm12, %v5129_v59, %v5111_v55  ;;  %1745 = vmatmul.bf16.vlgmr.msra.gmra.mxu2 %v1657_v28  ;;  %v1588_v57 = vsel %vm1573_vm3, %v1587_v52, %v1586_v15  ;;  %v1084_v12 = vsel %vm1041_vm12, %v5156_v35, %v5123_v11 }
 0x18a   :  { %v1614_v16 = vsel %vm1570_vm2, %v1613_v60, %v1612_v8  ;;  %v1078_v0 = vrot.slane %v1077_v37, 6  ;;  %v1085_v62 = vrot.slane %v1084_v12, 6  ;;  %v6070_v47 = vrot.slane %v5154_v31, 4 }
 0x18b   :  { %v1616_v29 = vsel %vm1573_vm3, %v1615_v53, %v1614_v16  ;;  %v3642_v21 = vrot.slane %v1083_v10, 9  ;;  %v6071_v24 = vrot.slane %v5148_v34, 2  ;;  %v5276_v11 = vadd.f32 %v3640_v26, %v5174_v4 }
 0x18c   :  { %v3638_v41 = vrot.slane %v6070_v47, 9  ;;  %v1658_v55 = vpack.c.b16 %v1616_v29, %v1588_v57  ;;  %v3639_v59 = vrot.slane %v1078_v0, 9  ;;  %v3643_v35 = vrot.slane %v1085_v62, 9 }
 0x18d   :  { %v5271_v13 = vadd.f32 %v5167_v61, %v6071_v24  ;;  %v6072_v14 = vmov %v6070_v47  ;;  %v6073_v25 = vrot.slane %v5179_v44, 2  ;;  %v5289_v34 = vadd.f32 %v3642_v21, %v1083_v10 }
 0x18e   :  { %v5280_v51 = vadd.f32 %v3638_v41, %v6072_v14  ;;  %3684 = vmatmul.msk.bf16.vlgmr.msra.gmra.mxu3 %vm1726_vm6, %v1658_v55  ;;  %v1221_v61 = vadd.f32 %v3639_v59, %v1078_v0  ;;  %v1292_v4 = vperm.slane %v5127_v23, 0  ;;  %v1294_v26 = vperm.slane %v5169_v27, 0 }
 0x18f   :  { %v5285_v38 = vadd.f32 %v5195_v6, %v6073_v25  ;;  %v1296_v31 = vperm.slane %v5271_v13, 0  ;;  %v1225_v50 = vadd.f32 %v3643_v35, %v1085_v62  ;;  %v1302_v44 = vperm.slane %v5276_v11, 0 }
 0x190   :  { %v1298_v22 = vperm.slane %v5280_v51, 0  ;;  %v1300_v56 = vperm.slane %v1221_v61, 0  ;;  %v1306_v10 = vperm.slane %v5289_v34, 0  ;;  %v1404_v46 = vpack.c.bf16 %v1292_v4, %v1292_v4 }
 0x191   :  { %v1304_v6 = vperm.slane %v5285_v38, 0  ;;  %v1406_v3 = vpack.c.bf16 %v1294_v26, %v1294_v26  ;;  %v1308_v36 = vperm.slane %v1225_v50, 0  ;;  %v1408_v39 = vpack.c.bf16 %v1296_v31, %v1296_v31 }
 0x192   :  { %v1410_v54 = vpack.c.bf16 %v1298_v22, %v1298_v22  ;;  %v1414_v23 = vpack.c.bf16 %v1302_v44, %v1302_v44  ;;  %v1412_v40 = vpack.c.bf16 %v1300_v56, %v1300_v56  ;;  %v1418_v48 = vpack.c.bf16 %v1306_v10, %v1306_v10 }
 0x193   :  { %v1416_v1 = vpack.c.bf16 %v1304_v6, %v1304_v6  ;;  %v1535_v32 = vunpack.c.l.b16 %v5139_v49  ;;  %v1420_v2 = vpack.c.bf16 %v1308_v36, %v1308_v36  ;;  %v1537_v43 = vunpack.c.l.b16 %v1404_v46 }
 0x194   :  { %v1539_v63 = vunpack.c.l.b16 %v1406_v3  ;;  %v1541_v17 = vunpack.c.l.b16 %v1408_v39  ;;  %v1543_v60 = vunpack.c.l.b16 %v1410_v54  ;;  %v1545_v5 = vunpack.c.l.b16 %v1412_v40 }
 0x195   :  { %v1547_v58 = vunpack.c.l.b16 %v1414_v23  ;;  %v1549_v52 = vunpack.c.l.b16 %v1416_v1  ;;  %v1551_v20 = vunpack.c.l.b16 %v1418_v48  ;;  %v1553_v28 = vunpack.c.l.b16 %v1420_v2 }
 0x196   :  { %v6074_v30 = vunpack.c.l.b16 %v5132_v45  ;;  %v1619_v53 = vrot.slane %v1535_v32, 6  ;;  %v1621_v15 = vrot.slane %v1537_v43, 5  ;;  %v1623_v8 = vrot.slane %v1539_v63, 4 }
 0x197   :  { %v1625_v37 = vrot.slane %v1541_v17, 3  ;;  %v1627_v49 = vrot.slane %v1543_v60, 2  ;;  %v1629_v16 = vrot.slane %v1545_v5, 1  ;;  %v1645_v0 = vrot.slane %v1549_v52, 7 }
 0x198   :  { %v1618_v33 = vsel %vm1556_vm13, %v5158_v18, %v6074_v30  ;;  %v1647_v12 = vrot.slane %v1551_v20, 6  ;;  %v1649_v62 = vrot.slane %v1553_v28, 5  ;;  %v1297_v47 = vperm.slane %v5271_v13, 2 }
 0x199   :  { %v1620_v57 = vsel %vm1559_vm14, %v1619_v53, %v1618_v33  ;;  %v1299_v45 = vperm.slane %v5280_v51, 2  ;;  %v1646_v18 = vsel %vm1556_vm13, %v1645_v0, %v1547_v58  ;;  %v1301_v21 = vperm.slane %v1221_v61, 2  ;;  %v1815_v0 = vld [vmem:[%s6049_s3 + $0x50] sm:$0x33] }
 0x19a   :  { %v1622_v29 = vsel %vm1562_vm15, %v1621_v15, %v1620_v57  ;;  %v1303_v55 = vperm.slane %v5276_v11, 2  ;;  %v1648_v24 = vsel %vm1559_vm14, %v1647_v12, %v1646_v18  ;;  %v1305_v35 = vperm.slane %v5285_v38, 2 }
 0x19b   :  { %v1624_v41 = vsel %vm581_vm8, %v1623_v8, %v1622_v29  ;;  %v1307_v14 = vperm.slane %v5289_v34, 2  ;;  %v1650_v13 = vsel %vm1562_vm15, %v1649_v62, %v1648_v24  ;;  %v1309_v51 = vperm.slane %v1225_v50, 2 }
 0x19c   :  { %v1626_v59 = vsel %vm1567_vm1, %v1625_v37, %v1624_v41  ;;  %v6075_v4 = vperm.slane %v5169_v27, 2  ;;  %v1409_v11 = vpack.c.bf16 %v1297_v47, %v1297_v47  ;;  %v1411_v31 = vpack.c.bf16 %v1299_v45, %v1299_v45 }
 0x19d   :  { %v1628_v25 = vsel %vm1570_vm2, %v1627_v49, %v1626_v59  ;;  %v1413_v22 = vpack.c.bf16 %v1301_v21, %v1301_v21  ;;  %v1415_v6 = vpack.c.bf16 %v1303_v55, %v1303_v55  ;;  %v1417_v56 = vpack.c.bf16 %v1305_v35, %v1305_v35 }
 0x19e   :  { %v1407_v26 = vpack.c.bf16 %v6075_v4, %v6075_v4  ;;  %v1630_v61 = vsel %vm1573_vm3, %v1629_v16, %v1628_v25  ;;  %v1419_v38 = vpack.c.bf16 %v1307_v14, %v1307_v14  ;;  %v1421_v10 = vpack.c.bf16 %v1309_v51, %v1309_v51  ;;  %v3766_v25 = vld [vmem:[%s6049_s3 + $0x40] sm:$0xf]  ;;  %v4152_v4 = vld [vmem:[%s6049_s3 + $0x44] sm:$0xf] }
 0x19f   :  { %v1659_v44 = vpack.c.b16 %v1650_v13, %v1630_v61  ;;  %v1538_v34 = vunpack.c.l.b16 %v5141_v19  ;;  %v1542_v3 = vunpack.c.l.b16 %v1409_v11  ;;  %v1544_v50 = vunpack.c.l.b16 %v1411_v31  ;;  %v4153_v13 = vld [vmem:[%s6049_s3 + $0x44] sm:$0xf0]  ;;  %v3768_v11 = vld [vmem:[%s6049_s3 + $0x48] sm:$0xf0] }
 0x1a0   :  { %v1540_v46 = vunpack.c.l.b16 %v1407_v26  ;;  %v1546_v36 = vunpack.c.l.b16 %v1413_v22  ;;  %v1550_v27 = vunpack.c.l.b16 %v1417_v56  ;;  %v1552_v39 = vunpack.c.l.b16 %v1419_v38  ;;  %v1826_v61 = vld [vmem:[%s6049_s3 + $0xa8] sm:$0x33]  ;;  %v3758_v56 = vld [vmem:[%s6049_s3 + $0x30] sm:$0xf]  ;;  %v4151_v38 = vld [vmem:[%s6049_s3 + $0x34] sm:$0xf0] }
 0x1a1   :  { %1750 = vmatmul.bf16.gmra.mxu2 %v1659_v44  ;;  %v1554_v54 = vunpack.c.l.b16 %v1421_v10  ;;  %v6076_v23 = vunpack.c.l.b16 %v5134_v9  ;;  %v1635_v1 = vrot.slane %v1538_v34, 5  ;;  %v1639_v2 = vrot.slane %v1542_v3, 3  ;;  %v4150_v34 = vld [vmem:[%s6049_s3 + $0x34] sm:$0xf] }
 0x1a2   :  { %v1637_v32 = vrot.slane %v1540_v46, 4  ;;  %v1641_v19 = vrot.slane %v1544_v50, 2  ;;  %v1548_v43 = vunpack.c.l.b16 %v1415_v6  ;;  %v1651_v17 = vrot.slane %v1550_v27, 7  ;;  %v3760_v46 = vld [vmem:[%s6049_s3 + $0x38] sm:$0xf0] }
 0x1a3   :  { %v1632_v40 = vsel %vm1556_vm13, %v5160_v7, %v6076_v23  ;;  %v1653_v60 = vrot.slane %v1552_v39, 6  ;;  %v1643_v9 = vrot.slane %v1546_v36, 1  ;;  %v1655_v7 = vrot.slane %v1554_v54, 5 }
 0x1a4   :  { %v1634_v48 = vsel %vm1559_vm14, %v5162_v42, %v1632_v40  ;;  %v1652_v52 = vsel %vm1556_vm13, %v1651_v17, %v1548_v43  ;;  %v2080_v62 = vunpack.c.l.b16 %v1815_v0  ;;  %v2081_v47 = vunpack.c.h.b16 %v1815_v0  ;;  %v3722_v43 = vld [vmem:[%s6049_s3 + $0x98] sm:$0xf]  ;;  %v4160_v17 = vld [vmem:[%s6049_s3 + $0x8c] sm:$0xf] }
 0x1a5   :  { %v1636_v63 = vsel %vm1562_vm15, %v1635_v1, %v1634_v48  ;;  %v1654_v42 = vsel %vm1559_vm14, %v1653_v60, %v1652_v52  ;;  %v3767_v51 = vor.u32 %v4153_v13, %v3766_v25  ;;  %v1977_v22 = vunpack.c.h.b16 %v1826_v61  ;;  %v4162_v1 = vld [vmem:[%s6049_s3 + $0x9c] sm:$0xf]  ;;  %v3724_v48 = vld [vmem:[%s6049_s3 + $0xa0] sm:$0xf0] }
 0x1a6   :  { %v1638_v5 = vsel %vm581_vm8, %v1637_v32, %v1636_v63  ;;  %v1656_v30 = vsel %vm1562_vm15, %v1655_v7, %v1654_v42  ;;  %v2092_v41 = vpack.c.b16 %v2080_v62, %v2080_v62  ;;  %v2093_v18 = vpack.c.b16 %v2081_v47, %v2081_v47  ;;  %v4163_v63 = vld [vmem:[%s6049_s3 + $0x9c] sm:$0xf0]  ;;  %v4161_v7 = vld [vmem:[%s6049_s3 + $0x8c] sm:$0xf0]  ;;  %v4149_v42 = vld [vmem:[%s6049_s3 + $0x24] sm:$0xf0] }
 0x1a7   :  { %v1640_v58 = vsel %vm1567_vm1, %v1639_v2, %v1638_v5  ;;  %v1976_v44 = vunpack.c.l.b16 %v1826_v61  ;;  %v3771_v6 = vor.u32 %v4152_v4, %v3768_v11  ;;  %v3759_v10 = vor.u32 %v4151_v38, %v3758_v56  ;;  %v3706_v62 = vld [vmem:[%s6049_s3 + $0x78] sm:$0xf]  ;;  %v3736_v4 = vld [vmem:[%s6049_s3 + $0x8] sm:$0xf0]  ;;  %v3700_v61 = vld [vmem:[%s6049_s3 + $0x70] sm:$0xf0] }
 0x1a8   :  { %v1642_v20 = vsel %vm1570_vm2, %v1641_v19, %v1640_v58  ;;  %v2111_v55 = vsel %vm392_vm4, %v2092_v41, 0  ;;  %v2114_v59 = vsel %vm392_vm4, %v2093_v18, 0  ;;  %v1989_v36 = vpack.c.b16 %v1977_v22, %v1977_v22  ;;  %v3716_v58 = vld [vmem:[%s6049_s3 + $0x90] sm:$0xf0]  ;;  %v4159_v18 = vld [vmem:[%s6049_s3 + $0x7c] sm:$0xf0] }
 0x1a9   :  { %v1644_v28 = vsel %vm1573_vm3, %v1643_v9, %v1642_v20  ;;  %2118 = vmatpush.bf16.msrb.mxu0 %v2111_v55  ;;  %2136 = vmatpush.bf16.msrb.mxu1 %v2114_v59  ;;  %v1988_v27 = vpack.c.b16 %v1976_v44, %v1976_v44  ;;  %v3763_v39 = vor.u32 %v4150_v34, %v3760_v46  ;;  %v3714_v9 = vld [vmem:[%s6049_s3 + $0x88] sm:$0xf]  ;;  %v3750_v20 = vld [vmem:[%s6049_s3 + $0x20] sm:$0xf] }
 0x1aa   :  { %v1660_v33 = vpack.c.b16 %v1656_v30, %v1644_v28  ;;  %v2011_v23 = vsel %vm392_vm4, %v1989_v36, 0  ;;  %v3727_v19 = vor.u32 %v4162_v1, %v3724_v48  ;;  %v3723_v5 = vor.u32 %v4163_v63, %v3722_v43  ;;  %v3734_v55 = vld [vmem:[%s6049_s3] sm:$0xf]  ;;  %v4145_v59 = vld [vmem:[%s6049_s3 + $0x4] sm:$0xf0] }
 0x1ab   :  { %v2008_v40 = vsel %vm392_vm4, %v1988_v27, 0  ;;  %2033 = vmatpush.bf16.msrb.mxu3 %v2011_v23  ;;  %v3719_v52 = vor.u32 %v4160_v17, %v3716_v58  ;;  %v3715_v28 = vor.u32 %v4161_v7, %v3714_v9  ;;  %v3751_v30 = vor.u32 %v4149_v42, %v3750_v20  ;;  %v3698_v11 = vld [vmem:[%s6049_s3 + $0x68] sm:$0xf]  ;;  %v3692_v36 = vld [vmem:[%s6049_s3 + $0x60] sm:$0xf0] }
 0x1ac   :  { %3685 = vmatmul.msk.bf16.gmra.mxu3 %vm1726_vm6, %v1660_v33  ;;  %2015 = vmatpush.bf16.msrb.mxu2 %v2008_v40  ;;  %v4148_v33 = vld [vmem:[%s6049_s3 + $0x24] sm:$0xf]  ;;  %v3707_v13 = vor.u32 %v4159_v18, %v3706_v62  ;;  %v3735_v44 = vor.u32 %v4145_v59, %v3734_v55  ;;  %v3690_v27 = vld [vmem:[%s6049_s3 + $0x58] sm:$0xf]  ;;  %vm5524_vm6 = vmor %vm1886_vm7, %vm1570_vm2 }
 0x1ad   :  { %2119 = vmatpush.bf16.msrb.mxu0 %v3767_v51  ;;  %2137 = vmatpush.bf16.msrb.mxu1 %v3771_v6  ;;  %v4144_v51 = vld [vmem:[%s6049_s3 + $0x4] sm:$0xf]  ;;  %v4157_v6 = vld [vmem:[%s6049_s3 + $0x6c] sm:$0xf0] }
 0x1ae   :  { %v3739_v38 = vor.u32 %v4144_v51, %v3736_v4  ;;  %v3699_v34 = vor.u32 %v4157_v6, %v3698_v11  ;;  %v1837_v42 = vld [vmem:[%s6049_s3 + $0x100] sm:$0x33]  ;;  %v3854_v51 = vld [vmem:[%s6049_s3 + $0x148] sm:$0xf] }
 0x1af   :  { %2034 = vmatpush.bf16.msrb.mxu3 %v3727_v19 }
 0x1b0   :  { %2016 = vmatpush.bf16.msrb.mxu2 %v3723_v5 }
 0x1b1   :  { %2120 = vmatpush.bf16.msrb.mxu0 %v3759_v10  ;;  %2138 = vmatpush.bf16.msrb.mxu1 %v3763_v39  ;;  %v4155_v39 = vld [vmem:[%s6049_s3 + $0x5c] sm:$0xf0] }
 0x1b2   :  { %v3691_v43 = vor.u32 %v4155_v39, %v3690_v27 }
 0x1b3   :  { %2035 = vmatpush.bf16.msrb.mxu3 %v3719_v52 }
 0x1b4   :  { %2017 = vmatpush.bf16.msrb.mxu2 %v3715_v28 }
 0x1b5   :  { %2121 = vmatpush.bf16.msrb.mxu0 %v3751_v30 }
 0x1b8   :  { %2018 = vmatpush.bf16.msrb.mxu2 %v3707_v13  ;;  %v4173_v13 = vld [vmem:[%s6049_s3 + $0xf4] sm:$0xf0] }
 0x1bc   :  { %2019 = vmatpush.bf16.msrb.mxu2 %v3699_v34  ;;  %v3802_v34 = vld [vmem:[%s6049_s3 + $0xe0] sm:$0xf] }
 0x1c0   :  { %2020 = vmatpush.bf16.msrb.mxu2 %v3691_v43  ;;  %v4171_v43 = vld [vmem:[%s6049_s3 + $0xe4] sm:$0xf0] }
 0x20c   :  { %v1746_v53 = vpop.f32.mrf.mxu2 }
 0x211   :  { %v1765_v15 = vpop.f32.mrf.mxu3 }
 0x212   :  { %v1766_v8 = vadd.f32 %v1765_v15, %v1746_v53  ;;  %v3752_v53 = vld [vmem:[%s6049_s3 + $0x28] sm:$0xf0]  ;;  %v3742_v15 = vld [vmem:[%s6049_s3 + $0x10] sm:$0xf] }
 0x214   :  { %v1775_v37 = vmul.f32 0.5, %v1766_v8  ;;  %v1748_v49 = vpop.f32.mrf.mxu2 }
 0x216   :  { %4275 = vtanh.f32 %v1775_v37  ;;  %v3755_v37 = vor.u32 %v4148_v33, %v3752_v53  ;;  %v2209_v53 = vunpack.c.h.b16 %v1837_v42 }
 0x218   :  { %2139 = vmatpush.bf16.msrb.mxu1 %v3755_v37  ;;  %v2208_v37 = vunpack.c.l.b16 %v1837_v42  ;;  %v4181_v42 = vld [vmem:[%s6049_s3 + $0x13c] sm:$0xf0] }
 0x219   :  { %v1767_v57 = vpop.f32.mrf.mxu3 }
 0x21a   :  { %v1768_v16 = vadd.f32 %v1767_v57, %v1748_v49  ;;  %v4158_v49 = vld [vmem:[%s6049_s3 + $0x7c] sm:$0xf]  ;;  %v3708_v57 = vld [vmem:[%s6049_s3 + $0x80] sm:$0xf0] }
 0x21c   :  { %v4276_v12 = vpop.eup %4275  ;;  %v1776_v29 = vmul.f32 0.5, %v1768_v16  ;;  %v4147_v16 = vld [vmem:[%s6049_s3 + $0x14] sm:$0xf0] }
 0x21d   :  { %v1783_v45 = vmul.f32 0.5, %v4276_v12  ;;  %v3743_v0 = vor.u32 %v4147_v16, %v3742_v15  ;;  %v4146_v12 = vld [vmem:[%s6049_s3 + $0x14] sm:$0xf] }
 0x21e   :  { %4277 = vtanh.f32 %v1776_v29  ;;  %v3744_v29 = vld [vmem:[%s6049_s3 + $0x18] sm:$0xf0] }
 0x21f   :  { %v5340_v21 = vadd.f32 0.5, %v1783_v45  ;;  %v3711_v45 = vor.u32 %v4158_v49, %v3708_v57  ;;  %v3747_v41 = vor.u32 %v4146_v12, %v3744_v29  ;;  %2122 = vmatpush.bf16.msrb.mxu0 %v3743_v0  ;;  %v1848_v49 = vld [vmem:[%s6049_s3 + $0x158] sm:$0x33]  ;;  %v2221_v0 = vpack.c.b16 %v2209_v53, %v2209_v53  ;;  %v4172_v12 = vld [vmem:[%s6049_s3 + $0xf4] sm:$0xf] }
 0x220   :  { %v3812_v29 = vld [vmem:[%s6049_s3 + $0xf8] sm:$0xf0]  ;;  %v2348_v18 = vunpack.c.l.b16 %v1848_v49  ;;  %v2349_v55 = vunpack.c.h.b16 %v1848_v49 }
 0x221   :  { %v5345_v24 = vrot.slane %v5340_v21, 2  ;;  %v5348_v35 = vrot.slane %v5340_v21, 4  ;;  %v5351_v14 = vrot.slane %v5340_v21, 6  ;;  %1860 = vst [vmem:[#allocation1] ss:$4 sm:$0xff] %v5340_v21  ;;  %2036 = vmatpush.bf16.msrb.mxu3 %v3711_v45  ;;  %2140 = vmatpush.bf16.msrb.mxu1 %v3747_v41  ;;  %v3686_v52 = vrot.slane %v5340_v21, 9 }
 0x222   :  { %v2220_v45 = vpack.c.b16 %v2208_v37, %v2208_v37  ;;  %v3810_v41 = vld [vmem:[%s6049_s3 + $0xf0] sm:$0xf]  ;;  %v2360_v11 = vpack.c.b16 %v2348_v18, %v2348_v18  ;;  %v3796_v53 = vld [vmem:[%s6049_s3 + $0xd8] sm:$0xf0] }
 0x223   :  { %1862 = vst [vmem:[#allocation1 + $0x1] ss:$4 sm:$0xff] %v5345_v24  ;;  %2123 = vmatpush.bf16.msrb.mxu0 %v3735_v44  ;;  %v1896_v19 = vrot.slane %v5351_v14, 7  ;;  %v3811_v27 = vor.u32 %v4173_v13, %v3810_v41  ;;  %v4167_v13 = vld [vmem:[%s6049_s3 + $0xc4] sm:$0xf0] }
 0x224   :  { %v4278_v26 = vpop.eup %4277  ;;  %1864 = vst [vmem:[#allocation1 + $0x2] ss:$4 sm:$0xff] %v5348_v35  ;;  %v1751_v50 = vpop.f32.mrf.mxu2  ;;  %v2379_v39 = vsel %vm392_vm4, %v2360_v11, 0  ;;  %v4177_v11 = vld [vmem:[%s6049_s3 + $0x11c] sm:$0xf0] }
 0x225   :  { %1866 = vst [vmem:[#allocation1 + $0x3] ss:$4 sm:$0xff] %v5351_v14  ;;  %v1784_v31 = vmul.f32 0.5, %v4278_v26  ;;  %v4156_v26 = vld [vmem:[%s6049_s3 + $0x6c] sm:$0xf]  ;;  %2141 = vmatpush.bf16.msrb.mxu1 %v3739_v38  ;;  %v1898_v28 = vrot.slane %v1896_v19, 2 }
 0x226   :  { %v3703_v10 = vor.u32 %v4156_v26, %v3700_v61  ;;  %v2242_v61 = vsel %vm392_vm4, %v2221_v0, 0  ;;  %v4170_v38 = vld [vmem:[%s6049_s3 + $0xe4] sm:$0xf]  ;;  %v4179_v0 = vld [vmem:[%s6049_s3 + $0x12c] sm:$0xf0] }
 0x227   :  { %v5384_v3 = vadd.f32 0.5, %v1784_v31  ;;  %2386 = vmatpush.bf16.msra.mxu0 %v2379_v39 }
 0x228   :  { %2037 = vmatpush.bf16.msrb.mxu3 %v3703_v10  ;;  %v3804_v10 = vld [vmem:[%s6049_s3 + $0xe8] sm:$0xf0] }
 0x229   :  { %v1800_v54 = vrot.slane %v5384_v3, 6  ;;  %1868 = vst [vmem:[#allocation1 + $0x20] ss:$4 sm:$0xff] %v5384_v3  ;;  %v1899_v5 = vrot.slane %v5384_v3, 7 }
 0x22b   :  { %1870 = vst [vmem:[#allocation1 + $0x21] ss:$4 sm:$0xff] %v1800_v54  ;;  %v3687_v30 = vrot.slane %v1800_v54, 9  ;;  %v1901_v21 = vrot.slane %v1899_v5, 2 }
 0x22c   :  { %v1753_v8 = vpop.f32.mrf.mxu2  ;;  %v1875_v63 = vld.sshfl [vmem:[#allocation1] sm:$0xff pattern:$0x73625140] }
 0x22f   :  { %v1770_v32 = vpop.f32.mrf.mxu3 }
 0x230   :  { %v1771_v2 = vadd.f32 %v1770_v32, %v1751_v50  ;;  %v4154_v50 = vld [vmem:[%s6049_s3 + $0x5c] sm:$0xf]  ;;  %v1890_v32 = vrot.slane %v5345_v24, 7 }
 0x231   :  { %v3695_v48 = vor.u32 %v4154_v50, %v3692_v36  ;;  %v4183_v50 = vld [vmem:[%s6049_s3 + $0x14c] sm:$0xf0]  ;;  %v3815_v36 = vor.u32 %v4172_v12, %v3812_v29  ;;  %v4178_v12 = vld [vmem:[%s6049_s3 + $0x12c] sm:$0xf]  ;;  %v3840_v29 = vld [vmem:[%s6049_s3 + $0x130] sm:$0xf0] }
 0x232   :  { %v1777_v60 = vmul.f32 0.5, %v1771_v2  ;;  %v1893_v2 = vrot.slane %v5348_v35, 7  ;;  %v1892_v7 = vrot.slane %v1890_v32, 2  ;;  %v1891_v4 = vsel %vm5524_vm6, %v3686_v52, %v1890_v32  ;;  %v4182_v32 = vld [vmem:[%s6049_s3 + $0x14c] sm:$0xf] }
 0x233   :  { %2038 = vmatpush.bf16.msrb.mxu3 %v3695_v48 }
 0x234   :  { %4279 = vtanh.f32 %v1777_v60  ;;  %v5508_v60 = vrot.slane %v5384_v3, 2  ;;  %v1895_v20 = vrot.slane %v1893_v2, 2 }
 0x237   :  { %v1772_v47 = vpop.f32.mrf.mxu3  ;;  %2264 = vmatpush.bf16.msra.mxu3 %v2242_v61  ;;  %v3830_v61 = vld [vmem:[%s6049_s3 + $0x118] sm:$0xf] }
 0x238   :  { %v1773_v25 = vadd.f32 %v1772_v47, %v1753_v8  ;;  %v1902_v8 = vrot.slane %v5508_v60, 7 }
 0x23a   :  { %v4280_v31 = vpop.eup %4279  ;;  %v1778_v22 = vmul.f32 0.5, %v1773_v25 }
 0x23b   :  { %v1785_v56 = vmul.f32 0.5, %v4280_v31  ;;  %v2361_v31 = vpack.c.b16 %v2349_v55, %v2349_v55  ;;  %2265 = vmatpush.bf16.msra.mxu3 %v3815_v36  ;;  %v3788_v55 = vld [vmem:[%s6049_s3 + $0xc8] sm:$0xf0]  ;;  %v4164_v36 = vld [vmem:[%s6049_s3 + $0xb4] sm:$0xf] }
 0x23c   :  { %4281 = vtanh.f32 %v1778_v22  ;;  %v5564_v22 = vsel %vm5524_vm6, %v1892_v7, %v1893_v2  ;;  %v5596_v2 = vsel %vm5524_vm6, %v1895_v20, %v1896_v19  ;;  %v3846_v7 = vld [vmem:[%s6049_s3 + $0x138] sm:$0xf]  ;;  %v5621_v20 = vsel %vm5524_vm6, %v1901_v21, %v1902_v8  ;;  %v3848_v21 = vld [vmem:[%s6049_s3 + $0x140] sm:$0xf0] }
 0x23d   :  { %v5476_v46 = vadd.f32 0.5, %v1785_v56  ;;  %v2239_v56 = vsel %vm392_vm4, %v2220_v45, 0  ;;  %v2382_v48 = vsel %vm392_vm4, %v2361_v31, 0  ;;  %v3847_v37 = vor.u32 %v4181_v42, %v3846_v7  ;;  %v4166_v45 = vld [vmem:[%s6049_s3 + $0xc4] sm:$0xf] }
 0x23e   :  { %2246 = vmatpush.bf16.msra.mxu2 %v2239_v56  ;;  %2404 = vmatpush.bf16.msra.mxu1 %v2382_v48  ;;  %v4176_v31 = vld [vmem:[%s6049_s3 + $0x11c] sm:$0xf]  ;;  %v3791_v39 = vor.u32 %v4166_v45, %v3788_v55  ;;  %v4175_v7 = vld [vmem:[%s6049_s3 + $0x10c] sm:$0xf0]  ;;  %v4193_v45 = vld [vmem:[%s6049_s3 + $0x1a4] sm:$0xf0] }
 0x23f   :  { %v5491_v23 = vrot.slane %v5476_v46, 2  ;;  %v5494_v40 = vrot.slane %v5476_v46, 4  ;;  %v5497_v1 = vrot.slane %v5476_v46, 6  ;;  %1872 = vst [vmem:[#allocation1 + $0x22] ss:$4 sm:$0xff] %v5476_v46  ;;  %v1906_v17 = vrot.slane %v5476_v46, 7 }
 0x241   :  { %1874 = vst [vmem:[#allocation1 + $0x23] ss:$4 sm:$0xff] %v5491_v23  ;;  %v1909_v58 = vrot.slane %v5491_v23, 7  ;;  %v1908_v33 = vrot.slane %v1906_v17, 2  ;;  %v1907_v54 = vsel %vm5524_vm6, %v3687_v30, %v1906_v17  ;;  %v1912_v16 = vrot.slane %v5494_v40, 7 }
 0x242   :  { %1877 = vst [vmem:[#allocation1] ss:$4 sm:$0xff] %v5494_v40  ;;  %v4282_v9 = vpop.eup %4281  ;;  %v1915_v6 = vrot.slane %v5497_v1, 7  ;;  %v3856_v17 = vld [vmem:[%s6049_s3 + $0x150] sm:$0xf0]  ;;  %2247 = vmatpush.bf16.msra.mxu2 %v3811_v27  ;;  %v3807_v30 = vor.u32 %v4170_v38, %v3804_v10 }
 0x243   :  { %1878 = vst [vmem:[#allocation1 + $0x1] ss:$4 sm:$0xff] %v5497_v1  ;;  %v1911_v57 = vrot.slane %v1909_v58, 2  ;;  %v1786_v47 = vmul.f32 0.5, %v4282_v9  ;;  %v5548_v59 = vsel %vm5524_vm6, %v1908_v33, %v1909_v58  ;;  %v5609_v58 = vsel %vm5524_vm6, %v1898_v28, %v1899_v5  ;;  %v4168_v5 = vld [vmem:[%s6049_s3 + $0xd4] sm:$0xf] }
 0x244   :  { %v1914_v9 = vrot.slane %v1912_v16, 2  ;;  %v3859_v52 = vor.u32 %v4182_v32, %v3856_v17  ;;  %v4180_v28 = vld [vmem:[%s6049_s3 + $0x13c] sm:$0xf]  ;;  %v3803_v33 = vor.u32 %v4171_v43, %v3802_v34  ;;  %2266 = vmatpush.bf16.msra.mxu3 %v3807_v30  ;;  %v3799_v41 = vor.u32 %v4168_v5, %v3796_v53  ;;  %v3832_v10 = vld [vmem:[%s6049_s3 + $0x120] sm:$0xf0] }
 0x245   :  { %v5568_v44 = vsel %vm5524_vm6, %v1911_v57, %v1912_v16  ;;  %v5612_v19 = vadd.f32 0.5, %v1786_v47  ;;  %v3851_v49 = vor.u32 %v4180_v28, %v3848_v21  ;;  %v4169_v57 = vld [vmem:[%s6049_s3 + $0xd4] sm:$0xf0]  ;;  %v3838_v16 = vld [vmem:[%s6049_s3 + $0x128] sm:$0xf]  ;;  %v3831_v17 = vor.u32 %v4177_v11, %v3830_v61 }
 0x246   :  { %2405 = vmatpush.bf16.msra.mxu1 %v3859_v52  ;;  %2248 = vmatpush.bf16.msra.mxu2 %v3803_v33  ;;  %v5686_v56 = vsel %vm5524_vm6, %v1914_v9, %v1915_v6  ;;  %v3778_v32 = vld [vmem:[%s6049_s3 + $0xb0] sm:$0xf]  ;;  %v4165_v43 = vld [vmem:[%s6049_s3 + $0xb4] sm:$0xf0]  ;;  %v3835_v9 = vor.u32 %v4176_v31, %v3832_v10  ;;  %v3822_v52 = vld [vmem:[%s6049_s3 + $0x108] sm:$0xf] }
 0x247   :  { %v1918_v47 = vrot.slane %v5612_v19, 7  ;;  %v3824_v5 = vld [vmem:[%s6049_s3 + $0x110] sm:$0xf0]  ;;  %v3779_v42 = vor.u32 %v4165_v43, %v3778_v32  ;;  %v1799_v28 = vrot.slane %v5384_v3, 4  ;;  %v3823_v30 = vor.u32 %v4175_v7, %v3822_v52  ;;  %v3884_v10 = vld [vmem:[%s6049_s3 + $0x188] sm:$0xf0] }
 0x248   :  { %v1876_v62 = vld.sshfl [vmem:[#allocation1 + $0x20] sm:$0xff pattern:$0x73625140]  ;;  %2267 = vmatpush.bf16.msra.mxu3 %v3799_v41  ;;  %v2286_v53 = vrot.slane %v1902_v8, 2  ;;  %v4187_v32 = vld [vmem:[%s6049_s3 + $0x174] sm:$0xf0] }
 0x249   :  { %1930 = vst [vmem:[#allocation1 + $0x21] ss:$4 sm:$0xff] %v1907_v54  ;;  %v1883_v25 = vpack.c.bf16 %v1876_v62, %v1875_v63  ;;  %v3855_v63 = vor.u32 %v4183_v50, %v3854_v51  ;;  %v3794_v54 = vld [vmem:[%s6049_s3 + $0xd0] sm:$0xf]  ;;  %v1917_v62 = vrot.slane %v1915_v6, 2  ;;  %v3839_v51 = vor.u32 %v4179_v0, %v3838_v16 }
 0x24a   :  { %v5558_v26 = vld.sshfl [vmem:[#allocation1] sm:$0xff pattern:$0x73625140]  ;;  %1932 = vst [vmem:[#allocation1 + $0x22] ss:$4 sm:$0xff] %v5548_v59  ;;  %v3795_v18 = vor.u32 %v4169_v57, %v3794_v54  ;;  %2406 = vmatpush.bf16.msra.mxu1 %v3851_v49 }
 0x24b   :  { %1920 = vst [vmem:[#allocation1] ss:$4 sm:$0xff] %v1891_v4  ;;  %3772 = vmatmul.msk.bf16.vlgmr.msrb.gmra.mxu0 %vm2000_vm9, %v1883_v25  ;;  %3774 = vmatmul.msk.bf16.vlgmr.msrb.gmra.mxu1 %vm2000_vm9, %v1883_v25  ;;  %v3786_v25 = vld [vmem:[%s6049_s3 + $0xc0] sm:$0xf]  ;;  %v3843_v4 = vor.u32 %v4178_v12, %v3840_v29  ;;  %v5695_v34 = vsel %vm5524_vm6, %v1917_v62, %v1918_v47  ;;  %v3780_v6 = vld [vmem:[%s6049_s3 + $0xb8] sm:$0xf0] }
 0x24c   :  { %1934 = vst [vmem:[#allocation1 + $0x23] ss:$4 sm:$0xff] %v5568_v44  ;;  %2387 = vmatpush.bf16.msra.mxu0 %v3855_v63  ;;  %2249 = vmatpush.bf16.msra.mxu2 %v3795_v18  ;;  %v3787_v48 = vor.u32 %v4167_v13, %v3786_v25  ;;  %v1884_v63 = vpack.c.bf16 %v5558_v26, %v5558_v26  ;;  %v4174_v26 = vld [vmem:[%s6049_s3 + $0x10c] sm:$0xf]  ;;  %v1859_v49 = vld [vmem:[%s6049_s3 + $0x1b0] sm:$0x33] }
 0x24d   :  { %1922 = vst [vmem:[#allocation1 + $0x1] ss:$4 sm:$0xff] %v5564_v22  ;;  %2268 = vmatpush.bf16.msra.mxu3 %v3791_v39  ;;  %v3827_v33 = vor.u32 %v4174_v26, %v3824_v5  ;;  %v2483_v54 = vunpack.c.h.b16 %v1859_v49  ;;  %v2482_v57 = vunpack.c.l.b16 %v1859_v49  ;;  %v4192_v8 = vld [vmem:[%s6049_s3 + $0x1a4] sm:$0xf]  ;;  %v3898_v62 = vld [vmem:[%s6049_s3 + $0x1a0] sm:$0xf] }
 0x24e   :  { %1924 = vst [vmem:[#allocation1 + $0x2] ss:$4 sm:$0xff] %v5596_v2  ;;  %2407 = vmatpush.bf16.msra.mxu1 %v3843_v4  ;;  %v3899_v25 = vor.u32 %v4193_v45, %v3898_v62  ;;  %v4190_v13 = vld [vmem:[%s6049_s3 + $0x194] sm:$0xf]  ;;  %v4191_v4 = vld [vmem:[%s6049_s3 + $0x194] sm:$0xf0] }
 0x24f   :  { %1926 = vst [vmem:[#allocation1 + $0x3] ss:$4 sm:$0xff] %v5609_v58  ;;  %v2495_v12 = vpack.c.b16 %v2483_v54, %v2483_v54  ;;  %v2494_v29 = vpack.c.b16 %v2482_v57, %v2482_v57  ;;  %v3874_v39 = vld [vmem:[%s6049_s3 + $0x170] sm:$0xf]  ;;  %v2289_v26 = vrot.slane %v1918_v47, 2 }
 0x250   :  { %1928 = vst [vmem:[#allocation1 + $0x20] ss:$4 sm:$0xff] %v5621_v20  ;;  %2388 = vmatpush.bf16.msra.mxu0 %v3847_v37  ;;  %2250 = vmatpush.bf16.msra.mxu2 %v3787_v48  ;;  %v2287_v37 = vrot.slane %v1799_v28, 7  ;;  %v3875_v43 = vor.u32 %v4187_v32, %v3874_v39 }
 0x251   :  { %v2516_v41 = vsel %vm392_vm4, %v2495_v12, 0  ;;  %v2513_v18 = vsel %vm392_vm4, %v2494_v29, 0 }
 0x252   :  { %2408 = vmatpush.bf16.msra.mxu1 %v3835_v9  ;;  %v2288_v16 = vsel %vm5524_vm6, %v2286_v53, %v2287_v37  ;;  %v4185_v9 = vld [vmem:[%s6049_s3 + $0x164] sm:$0xf0] }
 0x254   :  { %2389 = vmatpush.bf16.msra.mxu0 %v3839_v51  ;;  %2251 = vmatpush.bf16.msra.mxu2 %v3779_v42 }
 0x256   :  { %v1935_v38 = vld.sshfl [vmem:[#allocation1] sm:$0xff pattern:$0x73625140]  ;;  %2409 = vmatpush.bf16.msra.mxu1 %v3827_v33 }
 0x257   :  { %1937 = vst [vmem:[#allocation1] ss:$4 sm:$0xff] %v5686_v56  ;;  %v1936_v50 = vld.sshfl [vmem:[#allocation1 + $0x20] sm:$0xff pattern:$0x73625140] }
 0x258   :  { %1938 = vst [vmem:[#allocation1 + $0x1] ss:$4 sm:$0xff] %v5695_v34  ;;  %v1943_v27 = vpack.c.bf16 %v1936_v50, %v1935_v38  ;;  %2390 = vmatpush.bf16.msra.mxu0 %v3831_v17  ;;  %v4188_v38 = vld [vmem:[%s6049_s3 + $0x184] sm:$0xf]  ;;  %v1804_v17 = vrot.slane %v5612_v19, 2 }
 0x259   :  { %2160 = vst [vmem:[#allocation1 + $0x20] ss:$4 sm:$0xff] %v5508_v60  ;;  %v3887_v50 = vor.u32 %v4188_v38, %v3884_v10 }
 0x25a   :  { %3728 = vmatmul.msk.bf16.vlgmr.msrb.gmra.mxu2 %vm2000_vm9, %v1943_v27  ;;  %2162 = vst [vmem:[#allocation1 + $0x21] ss:$4 sm:$0xff] %v5476_v46  ;;  %3730 = vmatmul.msk.bf16.vlgmr.msrb.gmra.mxu3 %vm2000_vm9, %v1943_v27  ;;  %v3783_v46 = vor.u32 %v4164_v36, %v3780_v6  ;;  %v3882_v36 = vld [vmem:[%s6049_s3 + $0x180] sm:$0xf]  ;;  %v4186_v27 = vld [vmem:[%s6049_s3 + $0x174] sm:$0xf] }
 0x25b   :  { %2164 = vst [vmem:[#allocation1 + $0x22] ss:$4 sm:$0xff] %v5491_v23  ;;  %3773 = vmatmul.msk.bf16.gmra.mxu0 %vm2000_vm9, %v1884_v63  ;;  %3775 = vmatmul.msk.bf16.gmra.mxu1 %vm2000_vm9, %v1884_v63  ;;  %v3868_v63 = vld [vmem:[%s6049_s3 + $0x168] sm:$0xf0]  ;;  %v2290_v5 = vrot.slane %v1804_v17, 7 }
 0x25c   :  { %2166 = vst [vmem:[#allocation1 + $0x23] ss:$4 sm:$0xff] %v5494_v40  ;;  %2269 = vmatpush.bf16.msra.mxu3 %v3783_v46  ;;  %2391 = vmatpush.bf16.msra.mxu0 %v3823_v30 }
 0x25d   :  { %2520 = vmatpush.bf16.msrb.mxu2 %v2513_v18  ;;  %v2291_v46 = vsel %vm5524_vm6, %v2289_v26, %v2290_v5 }
 0x25f   :  { %v1939_v21 = vld.sshfl [vmem:[#allocation1] sm:$0xff pattern:$0x73625140] }
 0x260   :  { %2152 = vst [vmem:[#allocation1] ss:$4 sm:$0xff] %v5345_v24  ;;  %v3900_v24 = vld [vmem:[%s6049_s3 + $0x1a8] sm:$0xf0]  ;;  %2538 = vmatpush.bf16.msrb.mxu3 %v2516_v41  ;;  %v1944_v51 = vpack.c.bf16 %v1939_v21, %v1939_v21 }
 0x261   :  { %2154 = vst [vmem:[#allocation1 + $0x1] ss:$4 sm:$0xff] %v5348_v35  ;;  %v3903_v55 = vor.u32 %v4192_v8, %v3900_v24  ;;  %2521 = vmatpush.bf16.msrb.mxu2 %v3899_v25 }
 0x262   :  { %2156 = vst [vmem:[#allocation1 + $0x2] ss:$4 sm:$0xff] %v5351_v14 }
 0x263   :  { %2158 = vst [vmem:[#allocation1 + $0x3] ss:$4 sm:$0xff] %v5384_v3  ;;  %v2168_v0 = vld.sshfl [vmem:[#allocation1 + $0x20] sm:$0xff pattern:$0x73625140] }
 0x264   :  { %2300 = vst [vmem:[#allocation1 + $0x20] ss:$4 sm:$0xff] %v2288_v16  ;;  %2539 = vmatpush.bf16.msrb.mxu3 %v3903_v55 }
 0x265   :  { %2302 = vst [vmem:[#allocation1 + $0x21] ss:$4 sm:$0xff] %v5548_v59  ;;  %v3892_v59 = vld [vmem:[%s6049_s3 + $0x198] sm:$0xf0] }
 0x266   :  { %2304 = vst [vmem:[#allocation1 + $0x22] ss:$4 sm:$0xff] %v5568_v44  ;;  %v3890_v44 = vld [vmem:[%s6049_s3 + $0x190] sm:$0xf]  ;;  %v3895_v11 = vor.u32 %v4190_v13, %v3892_v59 }
 0x267   :  { %2306 = vst [vmem:[#allocation1 + $0x23] ss:$4 sm:$0xff] %v5686_v56  ;;  %v3891_v31 = vor.u32 %v4191_v4, %v3890_v44 }
 0x268   :  { %2540 = vmatpush.bf16.msrb.mxu3 %v3895_v11 }
 0x269   :  { %2522 = vmatpush.bf16.msrb.mxu2 %v3891_v31 }
 0x26a   :  { %3729 = vmatmul.msk.bf16.gmra.mxu2 %vm2000_vm9, %v1944_v51  ;;  %3731 = vmatmul.msk.bf16.gmra.mxu3 %vm2000_vm9, %v1944_v51  ;;  %v2167_v61 = vld.sshfl [vmem:[#allocation1] sm:$0xff pattern:$0x73625140] }
 0x26b   :  { %2170 = vst [vmem:[#allocation1 + $0x1] ss:$4 sm:$0xff] %v5612_v19  ;;  %v2175_v52 = vpack.c.bf16 %v2168_v0, %v2167_v61 }
 0x26c   :  { %2169 = vst [vmem:[#allocation1] ss:$4 sm:$0xff] %v5497_v1  ;;  %2541 = vmatpush.bf16.msrb.mxu3 %v3887_v50 }
 0x26e   :  { %v2308_v56 = vld.sshfl [vmem:[#allocation1 + $0x20] sm:$0xff pattern:$0x73625140] }
 0x26f   :  { %2434 = vst [vmem:[#allocation1 + $0x20] ss:$4 sm:$0xff] %v1799_v28 }
 0x270   :  { %2436 = vst [vmem:[#allocation1 + $0x21] ss:$4 sm:$0xff] %v5491_v23  ;;  %v4189_v23 = vld [vmem:[%s6049_s3 + $0x184] sm:$0xf0] }
 0x271   :  { %2438 = vst [vmem:[#allocation1 + $0x22] ss:$4 sm:$0xff] %v5494_v40  ;;  %v3883_v6 = vor.u32 %v4189_v23, %v3882_v36 }
 0x272   :  { %2440 = vst [vmem:[#allocation1 + $0x23] ss:$4 sm:$0xff] %v5497_v1  ;;  %v3876_v1 = vld [vmem:[%s6049_s3 + $0x178] sm:$0xf0] }
 0x273   :  { %v2171_v40 = vld.sshfl [vmem:[#allocation1] sm:$0xff pattern:$0x73625140]  ;;  %2523 = vmatpush.bf16.msrb.mxu2 %v3883_v6  ;;  %v3879_v48 = vor.u32 %v4186_v27, %v3876_v1 }
 0x274   :  { %2292 = vst [vmem:[#allocation1] ss:$4 sm:$0xff] %v5564_v22  ;;  %v4184_v22 = vld [vmem:[%s6049_s3 + $0x164] sm:$0xf]  ;;  %v2176_v30 = vpack.c.bf16 %v2171_v40, %v2171_v40 }
 0x275   :  { %2294 = vst [vmem:[#allocation1 + $0x1] ss:$4 sm:$0xff] %v5596_v2  ;;  %v3866_v2 = vld [vmem:[%s6049_s3 + $0x160] sm:$0xf]  ;;  %2542 = vmatpush.bf16.msrb.mxu3 %v3879_v48 }
 0x276   :  { %2296 = vst [vmem:[#allocation1 + $0x2] ss:$4 sm:$0xff] %v5609_v58  ;;  %v3871_v58 = vor.u32 %v4184_v22, %v3868_v63  ;;  %v3867_v7 = vor.u32 %v4185_v9, %v3866_v2  ;;  %v2560_v48 = vld [vmem:[%s6050_s4] sm:$0x3] }
 0x277   :  { %2298 = vst [vmem:[#allocation1 + $0x3] ss:$4 sm:$0xff] %v5621_v20  ;;  %2524 = vmatpush.bf16.msrb.mxu2 %v3875_v43  ;;  %v2562_v22 = vperm.slane %v2560_v48, 0  ;;  %v2563_v63 = vperm.slane %v2560_v48, 1 }
 0x279   :  { %2543 = vmatpush.bf16.msrb.mxu3 %v3871_v58  ;;  %v4201_v58 = vld [vmem:[%s6052_s6 + $0x38] sm:$0xff] }
 0x27a   :  { %3816 = vmatmul.msk.bf16.vlgmr.msra.gmra.mxu2 %vm2000_vm9, %v2175_v52  ;;  %3818 = vmatmul.msk.bf16.vlgmr.msra.gmra.mxu3 %vm2000_vm9, %v2175_v52 }
 0x27b   :  { %2525 = vmatpush.bf16.msrb.mxu2 %v3867_v7  ;;  %2900 = vmatpush.bf16.msrb.mxu1 %v4201_v58 }
 0x27e   :  { %v2307_v20 = vld.sshfl [vmem:[#allocation1] sm:$0xff pattern:$0x73625140] }
 0x27f   :  { %v2315_v42 = vpack.c.bf16 %v2308_v56, %v2307_v20  ;;  %2309 = vst [vmem:[#allocation1] ss:$4 sm:$0xff] %v5695_v34 }
 0x280   :  { %2310 = vst [vmem:[#allocation1 + $0x1] ss:$4 sm:$0xff] %v2291_v46 }
 0x281   :  { %3860 = vmatmul.msk.bf16.vlgmr.msra.gmra.mxu0 %vm2000_vm9, %v2315_v42  ;;  %3862 = vmatmul.msk.bf16.vlgmr.msra.gmra.mxu1 %vm2000_vm9, %v2315_v42 }
 0x287   :  { %v2311_v28 = vld.sshfl [vmem:[#allocation1] sm:$0xff pattern:$0x73625140] }
 0x288   :  { %2426 = vst [vmem:[#allocation1] ss:$4 sm:$0xff] %v5348_v35  ;;  %v2316_v15 = vpack.c.bf16 %v2311_v28, %v2311_v28  ;;  %v2442_v35 = vld.sshfl [vmem:[#allocation1 + $0x20] sm:$0xff pattern:$0x73625140]  ;;  %v4200_v28 = vld [vmem:[%s6052_s6 + $0x30] sm:$0xff] }
 0x289   :  { %2428 = vst [vmem:[#allocation1 + $0x1] ss:$4 sm:$0xff] %v5351_v14  ;;  %2901 = vmatpush.bf16.msrb.mxu1 %v4200_v28 }
 0x28a   :  { %3817 = vmatmul.msk.bf16.gmra.mxu2 %vm2000_vm9, %v2176_v30  ;;  %3819 = vmatmul.msk.bf16.gmra.mxu3 %vm2000_vm9, %v2176_v30  ;;  %2430 = vst [vmem:[#allocation1 + $0x2] ss:$4 sm:$0xff] %v5384_v3 }
 0x28b   :  { %2432 = vst [vmem:[#allocation1 + $0x3] ss:$4 sm:$0xff] %v5508_v60 }
 0x291   :  { %3861 = vmatmul.msk.bf16.gmra.mxu0 %vm2000_vm9, %v2316_v15  ;;  %3863 = vmatmul.msk.bf16.gmra.mxu1 %vm2000_vm9, %v2316_v15 }
 0x292   :  { %v2441_v47 = vld.sshfl [vmem:[#allocation1] sm:$0xff pattern:$0x73625140] }
 0x293   :  { %2443 = vst [vmem:[#allocation1] ss:$4 sm:$0xff] %v5612_v19  ;;  %v2449_v34 = vpack.c.bf16 %v2442_v35, %v2441_v47 }
 0x294   :  { %2444 = vst [vmem:[#allocation1 + $0x1] ss:$4 sm:$0xff] %v1804_v17 }
 0x29a   :  { %3904 = vmatmul.msk.bf16.vlgmr.msrb.gmra.mxu2 %vm2000_vm9, %v2449_v34  ;;  %3906 = vmatmul.msk.bf16.vlgmr.msrb.gmra.mxu3 %vm2000_vm9, %v2449_v34 }
 0x29b   :  { %v2445_v14 = vld.sshfl [vmem:[#allocation1] sm:$0xff pattern:$0x73625140] }
 0x29c   :  { %v2450_v33 = vpack.c.bf16 %v2445_v14, %v2445_v14 }
 0x2aa   :  { %3905 = vmatmul.msk.bf16.gmra.mxu2 %vm2000_vm9, %v2450_v33  ;;  %3907 = vmatmul.msk.bf16.gmra.mxu3 %vm2000_vm9, %v2450_v33  ;;  %v4199_v33 = vld [vmem:[%s6052_s6 + $0x28] sm:$0xff] }
 0x2ab   :  { %2902 = vmatpush.bf16.msrb.mxu1 %v4199_v33 }
 0x2c8   :  { %v2125_v3 = vpop.f32.mrf.mxu0  ;;  %v2143_v60 = vpop.f32.mrf.mxu1 }
 0x2d0   :  { %v2127_v53 = vpop.f32.mrf.mxu0  ;;  %v2145_v21 = vpop.f32.mrf.mxu1 }
 0x2d8   :  { %v2130_v37 = vpop.f32.mrf.mxu0  ;;  %v2148_v49 = vpop.f32.mrf.mxu1 }
 0x2dd   :  { %v2022_v19 = vpop.f32.mrf.mxu2  ;;  %v2040_v54 = vpop.f32.mrf.mxu3 }
 0x2de   :  { %v2126_v57 = vadd.f32 %v2125_v3, %v2022_v19  ;;  %v2144_v8 = vadd.f32 %v2143_v60, %v2040_v54  ;;  %v4198_v54 = vld [vmem:[%s6052_s6 + $0x20] sm:$0xff] }
 0x2df   :  { %2903 = vmatpush.bf16.msrb.mxu1 %v4198_v54 }
 0x2e0   :  { %v2132_v24 = vpop.f32.mrf.mxu0  ;;  %v2150_v16 = vpop.f32.mrf.mxu1 }
 0x2e5   :  { %v2024_v0 = vpop.f32.mrf.mxu2  ;;  %v2042_v12 = vpop.f32.mrf.mxu3 }
 0x2e6   :  { %v2128_v29 = vadd.f32 %v2127_v53, %v2024_v0  ;;  %v2146_v62 = vadd.f32 %v2145_v21, %v2042_v12 }
 0x2ed   :  { %v2027_v45 = vpop.f32.mrf.mxu2  ;;  %v2045_v41 = vpop.f32.mrf.mxu3 }
 0x2ee   :  { %v2131_v18 = vadd.f32 %v2130_v37, %v2027_v45  ;;  %v2149_v55 = vadd.f32 %v2148_v49, %v2045_v41 }
 0x2f5   :  { %v2029_v25 = vpop.f32.mrf.mxu2  ;;  %v2047_v13 = vpop.f32.mrf.mxu3 }
 0x2fd   :  { %v2253_v51 = vpop.f32.mrf.mxu2  ;;  %v2271_v59 = vpop.f32.mrf.mxu3 }
 0x2fe   :  { %v2393_v44 = vpop.f32.mrf.mxu0  ;;  %v2411_v4 = vpop.f32.mrf.mxu1  ;;  %v2280_v1 = vadd.f32 %v2253_v51, %v2126_v57  ;;  %v2281_v39 = vadd.f32 %v2271_v59, %v2144_v8 }
 0x300   :  { %v2420_v32 = vadd.f32 %v2393_v44, %v2280_v1  ;;  %v2421_v43 = vadd.f32 %v2411_v4, %v2281_v39 }
 0x305   :  { %v2255_v61 = vpop.f32.mrf.mxu2  ;;  %v2273_v11 = vpop.f32.mrf.mxu3 }
 0x306   :  { %v2395_v31 = vpop.f32.mrf.mxu0  ;;  %v2413_v56 = vpop.f32.mrf.mxu1  ;;  %v2282_v7 = vadd.f32 %v2255_v61, %v2128_v29  ;;  %v2283_v26 = vadd.f32 %v2273_v11, %v2146_v62 }
 0x308   :  { %v2422_v30 = vadd.f32 %v2395_v31, %v2282_v7  ;;  %v2423_v15 = vadd.f32 %v2413_v56, %v2283_v26  ;;  %v4196_v31 = vld [vmem:[%s6052_s6 + $0x10] sm:$0xff] }
 0x30d   :  { %v2258_v38 = vpop.f32.mrf.mxu2  ;;  %v2276_v10 = vpop.f32.mrf.mxu3 }
 0x30e   :  { %v2398_v50 = vpop.f32.mrf.mxu0  ;;  %v2416_v36 = vpop.f32.mrf.mxu1  ;;  %v2284_v3 = vadd.f32 %v2258_v38, %v2131_v18  ;;  %v2285_v60 = vadd.f32 %v2276_v10, %v2149_v55  ;;  %v4197_v18 = vld [vmem:[%s6052_s6 + $0x18] sm:$0xff] }
 0x30f   :  { %2904 = vmatpush.bf16.msrb.mxu1 %v4197_v18 }
 0x310   :  { %v2424_v8 = vadd.f32 %v2398_v50, %v2284_v3  ;;  %v2425_v0 = vadd.f32 %v2416_v36, %v2285_v60 }
 0x313   :  { %2905 = vmatpush.bf16.msrb.mxu1 %v4196_v31 }
 0x315   :  { %v2260_v23 = vpop.f32.mrf.mxu2  ;;  %v2278_v40 = vpop.f32.mrf.mxu3 }
 0x316   :  { %v2400_v6 = vpop.f32.mrf.mxu0  ;;  %v2418_v27 = vpop.f32.mrf.mxu1 }
 0x31d   :  { %v2527_v2 = vpop.f32.mrf.mxu2  ;;  %v2545_v17 = vpop.f32.mrf.mxu3 }
 0x31e   :  { %v2554_v9 = vadd.f32 %v2527_v2, %v2420_v32  ;;  %v2555_v52 = vadd.f32 %v2545_v17, %v2421_v43  ;;  %v4195_v2 = vld [vmem:[%s6052_s6 + $0x8] sm:$0xff] }
 0x31f   :  { %2906 = vmatpush.bf16.msrb.mxu1 %v4195_v2 }
 0x320   :  { %v2566_v5 = vadd.f32 %v2562_v22, %v2554_v9  ;;  %v2567_v20 = vadd.f32 %v2563_v63, %v2555_v52 }
 0x322   :  { %v2572_v46 = vmul.f32 0.5, %v2566_v5  ;;  %v2573_v42 = vmul.f32 0.5, %v2567_v20 }
 0x324   :  { %4283 = vtanh.f32 %v2572_v46 }
 0x325   :  { %4285 = vtanh.f32 %v2573_v42  ;;  %v2529_v47 = vpop.f32.mrf.mxu2  ;;  %v2547_v35 = vpop.f32.mrf.mxu3 }
 0x326   :  { %v2556_v34 = vadd.f32 %v2529_v47, %v2422_v30  ;;  %v2557_v14 = vadd.f32 %v2547_v35, %v2423_v15  ;;  %v4194_v30 = vld [vmem:[%s6052_s6] sm:$0xff] }
 0x327   :  { %2907 = vmatpush.bf16.msrb.mxu1 %v4194_v30 }
 0x328   :  { %v2568_v53 = vadd.f32 %v2562_v22, %v2556_v34  ;;  %v2569_v21 = vadd.f32 %v2563_v63, %v2557_v14 }
 0x32a   :  { %v4284_v37 = vpop.eup %4283  ;;  %v2574_v49 = vmul.f32 0.5, %v2568_v53  ;;  %v2575_v19 = vmul.f32 0.5, %v2569_v21 }
 0x32b   :  { %v4286_v57 = vpop.eup %4285  ;;  %v2584_v24 = vmul.f32 0.5, %v4284_v37 }
 0x32c   :  { %v2585_v16 = vmul.f32 0.5, %v4286_v57  ;;  %4287 = vtanh.f32 %v2574_v49 }
 0x32d   :  { %4289 = vtanh.f32 %v2575_v19  ;;  %v2532_v12 = vpop.f32.mrf.mxu2  ;;  %v2550_v29 = vpop.f32.mrf.mxu3  ;;  %v2590_v55 = vadd.f32 0.5, %v2584_v24 }
 0x32e   :  { %v2591_v62 = vadd.f32 0.5, %v2585_v16  ;;  %v2558_v45 = vadd.f32 %v2532_v12, %v2424_v8  ;;  %v2559_v41 = vadd.f32 %v2550_v29, %v2425_v0 }
 0x330   :  { %v2602_v25 = vrot.slane %v2591_v62, 6  ;;  %v2570_v13 = vadd.f32 %v2562_v22, %v2558_v45  ;;  %v2571_v51 = vadd.f32 %v2563_v63, %v2559_v41  ;;  %v4203_v45 = vld [vmem:[%s6052_s6 + $0x48] sm:$0xff] }
 0x331   :  { %2920 = vmatpush.bf16.msra.mxu1 %v4203_v45 }
 0x332   :  { %v4288_v59 = vpop.eup %4287  ;;  %v2605_v44 = vsel %vm392_vm4, %v2590_v55, %v2602_v25  ;;  %v2606_v4 = vsel %vm1036_vm11, %v2590_v55, %v2602_v25  ;;  %v2608_v61 = vsel %vm393_vm5, %v2590_v55, %v2602_v25  ;;  %v2610_v11 = vsel %vm1041_vm12, %v2602_v25, %v2590_v55 }
 0x333   :  { %v4290_v56 = vpop.eup %4289  ;;  %v2607_v38 = vrot.slane %v2606_v4, 2  ;;  %v2609_v10 = vrot.slane %v2608_v61, 4  ;;  %v2611_v50 = vrot.slane %v2610_v11, 6  ;;  %v3908_v36 = vrot.slane %v2605_v44, 9  ;;  %v4202_v4 = vld [vmem:[%s6052_s6 + $0x40] sm:$0xff] }
 0x334   :  { %v2586_v23 = vmul.f32 0.5, %v4288_v59  ;;  %v2587_v40 = vmul.f32 0.5, %v4290_v56  ;;  %v2576_v6 = vmul.f32 0.5, %v2570_v13  ;;  %v2577_v27 = vmul.f32 0.5, %v2571_v51 }
 0x335   :  { %v3909_v1 = vrot.slane %v2607_v38, 9  ;;  %v3910_v39 = vrot.slane %v2609_v10, 9  ;;  %v3911_v48 = vrot.slane %v2611_v50, 9  ;;  %v2662_v32 = vadd.f32 %v3908_v36, %v2605_v44  ;;  %v2534_v22 = vpop.f32.mrf.mxu2  ;;  %v2552_v43 = vpop.f32.mrf.mxu3  ;;  %2921 = vmatpush.bf16.msra.mxu1 %v4202_v4 }
 0x336   :  { %v2593_v63 = vadd.f32 0.5, %v2587_v40  ;;  %4291 = vtanh.f32 %v2576_v6  ;;  %v2592_v26 = vadd.f32 0.5, %v2586_v23 }
 0x337   :  { %v2663_v17 = vadd.f32 %v3909_v1, %v2607_v38  ;;  %v2664_v9 = vadd.f32 %v3910_v39, %v2609_v10  ;;  %v2665_v52 = vadd.f32 %v3911_v48, %v2611_v50  ;;  %v2682_v58 = vperm.slane %v2662_v32, 0 }
 0x338   :  { %v2683_v7 = vperm.slane %v2662_v32, 2  ;;  %v2603_v5 = vrot.slane %v2593_v63, 6  ;;  %4293 = vtanh.f32 %v2577_v27 }
 0x339   :  { %v2684_v20 = vperm.slane %v2663_v17, 0  ;;  %v2685_v46 = vperm.slane %v2663_v17, 2  ;;  %v2686_v42 = vperm.slane %v2664_v9, 0  ;;  %v2687_v28 = vperm.slane %v2664_v9, 2 }
 0x33a   :  { %v2688_v15 = vperm.slane %v2665_v52, 0  ;;  %v2689_v47 = vperm.slane %v2665_v52, 2  ;;  %v2722_v35 = vpack.c.bf16 %v2682_v58, %v2682_v58  ;;  %v2723_v34 = vpack.c.bf16 %v2683_v7, %v2683_v7 }
 0x33b   :  { %v2724_v14 = vpack.c.bf16 %v2684_v20, %v2684_v20  ;;  %v2725_v33 = vpack.c.bf16 %v2685_v46, %v2685_v46  ;;  %v2726_v3 = vpack.c.bf16 %v2686_v42, %v2686_v42  ;;  %v2727_v60 = vpack.c.bf16 %v2687_v28, %v2687_v28 }
 0x33c   :  { %v4292_v53 = vpop.eup %4291  ;;  %v2728_v21 = vpack.c.bf16 %v2688_v15, %v2688_v15  ;;  %v2729_v37 = vpack.c.bf16 %v2689_v47, %v2689_v47  ;;  %v2782_v49 = vunpack.c.l.b16 %v2722_v35  ;;  %v2783_v19 = vunpack.c.l.b16 %v2723_v34 }
 0x33d   :  { %v2784_v54 = vunpack.c.l.b16 %v2724_v14  ;;  %v2785_v57 = vunpack.c.l.b16 %v2725_v33  ;;  %v2786_v8 = vunpack.c.l.b16 %v2726_v3  ;;  %v2787_v24 = vunpack.c.l.b16 %v2727_v60 }
 0x33e   :  { %v4294_v16 = vpop.eup %4293  ;;  %v2788_v0 = vunpack.c.l.b16 %v2728_v21  ;;  %v2789_v12 = vunpack.c.l.b16 %v2729_v37  ;;  %v2612_v29 = vsel %vm392_vm4, %v2592_v26, %v2603_v5  ;;  %v2613_v62 = vsel %vm1036_vm11, %v2592_v26, %v2603_v5 }
 0x33f   :  { %v2802_v41 = vrot.slane %v2784_v54, 7  ;;  %v2804_v18 = vrot.slane %v2786_v8, 6  ;;  %v2816_v55 = vrot.slane %v2785_v57, 7  ;;  %v2818_v25 = vrot.slane %v2787_v24, 6 }
 0x340   :  { %v2806_v13 = vrot.slane %v2788_v0, 5  ;;  %v2820_v51 = vrot.slane %v2789_v12, 5  ;;  %v2614_v59 = vrot.slane %v2613_v62, 2  ;;  %v2615_v44 = vsel %vm393_vm5, %v2592_v26, %v2603_v5 }
 0x341   :  { %v2803_v61 = vsel %vm1556_vm13, %v2802_v41, %v2782_v49  ;;  %v2817_v11 = vsel %vm1556_vm13, %v2816_v55, %v2783_v19  ;;  %v2616_v31 = vrot.slane %v2615_v44, 4  ;;  %v2617_v56 = vsel %vm1041_vm12, %v2603_v5, %v2592_v26 }
 0x342   :  { %v2819_v38 = vsel %vm1559_vm14, %v2818_v25, %v2817_v11  ;;  %v2618_v10 = vrot.slane %v2617_v56, 6  ;;  %v3912_v50 = vrot.slane %v2612_v29, 9  ;;  %v3913_v36 = vrot.slane %v2614_v59, 9 }
 0x343   :  { %v2821_v23 = vsel %vm1562_vm15, %v2820_v51, %v2819_v38  ;;  %v3914_v40 = vrot.slane %v2616_v31, 9  ;;  %v2588_v6 = vmul.f32 0.5, %v4292_v53  ;;  %v2589_v27 = vmul.f32 0.5, %v4294_v16 }
 0x344   :  { %v3915_v1 = vrot.slane %v2618_v10, 9  ;;  %v2666_v39 = vadd.f32 %v3912_v50, %v2612_v29  ;;  %v2667_v48 = vadd.f32 %v3913_v36, %v2614_v59  ;;  %v2805_v32 = vsel %vm1559_vm14, %v2804_v18, %v2803_v61  ;;  %v4213_v18 = vld [vmem:[%s6053_s7 + $0x48] sm:$0xff] }
 0x345   :  { %v2668_v22 = vadd.f32 %v3914_v40, %v2616_v31  ;;  %v2594_v43 = vadd.f32 0.5, %v2588_v6  ;;  %v2595_v63 = vadd.f32 0.5, %v2589_v27  ;;  %v2807_v2 = vsel %vm1562_vm15, %v2806_v13, %v2805_v32  ;;  %3044 = vmatpush.bf16.msra.mxu2 %v4213_v18 }
 0x346   :  { %v2669_v17 = vadd.f32 %v3915_v1, %v2618_v10  ;;  %v2690_v9 = vperm.slane %v2666_v39, 0  ;;  %v2691_v52 = vperm.slane %v2666_v39, 2  ;;  %v2692_v58 = vperm.slane %v2667_v48, 0 }
 0x347   :  { %v2693_v7 = vperm.slane %v2667_v48, 2  ;;  %v2694_v26 = vperm.slane %v2668_v22, 0  ;;  %v2695_v5 = vperm.slane %v2668_v22, 2  ;;  %v2604_v20 = vrot.slane %v2595_v63, 6 }
 0x348   :  { %v2696_v46 = vperm.slane %v2669_v17, 0  ;;  %v2697_v42 = vperm.slane %v2669_v17, 2  ;;  %v2730_v28 = vpack.c.bf16 %v2690_v9, %v2690_v9  ;;  %v2731_v30 = vpack.c.bf16 %v2691_v52, %v2691_v52 }
 0x349   :  { %v2732_v15 = vpack.c.bf16 %v2692_v58, %v2692_v58  ;;  %v2733_v47 = vpack.c.bf16 %v2693_v7, %v2693_v7  ;;  %v2734_v35 = vpack.c.bf16 %v2694_v26, %v2694_v26  ;;  %v2735_v34 = vpack.c.bf16 %v2695_v5, %v2695_v5  ;;  %v4212_v7 = vld [vmem:[%s6053_s7 + $0x40] sm:$0xff]  ;;  %v4211_v5 = vld [vmem:[%s6053_s7 + $0x38] sm:$0xff] }
 0x34a   :  { %v2737_v14 = vpack.c.bf16 %v2697_v42, %v2697_v42  ;;  %v2790_v33 = vunpack.c.l.b16 %v2730_v28  ;;  %v2791_v3 = vunpack.c.l.b16 %v2731_v30  ;;  %v2619_v60 = vsel %vm392_vm4, %v2594_v43, %v2604_v20  ;;  %3045 = vmatpush.bf16.msra.mxu2 %v4212_v7  ;;  %v4208_v26 = vld [vmem:[%s6053_s7 + $0x20] sm:$0xff]  ;;  %v4217_v42 = vld [vmem:[%s6053_s7 + $0x68] sm:$0xff]  ;;  %v4223_v28 = vld [vmem:[%s6053_s7 + $0x98] sm:$0xff] }
 0x34b   :  { %v2792_v53 = vunpack.c.l.b16 %v2732_v15  ;;  %v2793_v21 = vunpack.c.l.b16 %v2733_v47  ;;  %v2794_v37 = vunpack.c.l.b16 %v2734_v35  ;;  %v2795_v49 = vunpack.c.l.b16 %v2735_v34  ;;  %3097 = vmatpush.bf16.msra.mxu3 %v4208_v26  ;;  %v4210_v30 = vld [vmem:[%s6053_s7 + $0x30] sm:$0xff]  ;;  %v4216_v47 = vld [vmem:[%s6053_s7 + $0x60] sm:$0xff]  ;;  %v4205_v34 = vld [vmem:[%s6053_s7 + $0x8] sm:$0xff] }
 0x34c   :  { %v2797_v19 = vunpack.c.l.b16 %v2737_v14  ;;  %v2808_v54 = vrot.slane %v2790_v33, 4  ;;  %v2822_v57 = vrot.slane %v2791_v3, 4  ;;  %v2620_v8 = vsel %vm1036_vm11, %v2594_v43, %v2604_v20  ;;  %v4218_v20 = vld [vmem:[%s6053_s7 + $0x70] sm:$0xff]  ;;  %v4215_v14 = vld [vmem:[%s6053_s7 + $0x58] sm:$0xff]  ;;  %v4221_v33 = vld [vmem:[%s6053_s7 + $0x88] sm:$0xff] }
 0x34d   :  { %v2810_v24 = vrot.slane %v2792_v53, 3  ;;  %v2824_v16 = vrot.slane %v2793_v21, 3  ;;  %v2826_v0 = vrot.slane %v2795_v49, 2  ;;  %v2621_v12 = vrot.slane %v2620_v8, 2  ;;  %3152 = vmatpush.bf16.msrb.mxu0 %v4218_v20  ;;  %v4206_v15 = vld [vmem:[%s6053_s7 + $0x10] sm:$0xff]  ;;  %v4209_v3 = vld [vmem:[%s6053_s7 + $0x28] sm:$0xff] }
 0x34e   :  { %v2823_v29 = vsel %vm581_vm8, %v2822_v57, %v2821_v23  ;;  %v2828_v62 = vrot.slane %v2797_v19, 1  ;;  %v3916_v45 = vrot.slane %v2619_v60, 9  ;;  %v2736_v41 = vpack.c.bf16 %v2696_v46, %v2696_v46  ;;  %3046 = vmatpush.bf16.msra.mxu2 %v4211_v5  ;;  %v4207_v46 = vld [vmem:[%s6053_s7 + $0x18] sm:$0xff]  ;;  %v4222_v35 = vld [vmem:[%s6053_s7 + $0x90] sm:$0xff]  ;;  %v4228_v21 = vld [vmem:[%s6053_s7 + $0xc0] sm:$0xff] }
 0x34f   :  { %v3917_v55 = vrot.slane %v2621_v12, 9  ;;  %v2809_v25 = vsel %vm581_vm8, %v2808_v54, %v2807_v2  ;;  %v2812_v13 = vrot.slane %v2794_v37, 2  ;;  %v2825_v51 = vsel %vm1567_vm1, %v2824_v16, %v2823_v29  ;;  %3098 = vmatpush.bf16.msra.mxu3 %v4207_v46  ;;  %v4214_v53 = vld [vmem:[%s6053_s7 + $0x50] sm:$0xff]  ;;  %v4220_v37 = vld [vmem:[%s6053_s7 + $0x80] sm:$0xff]  ;;  %v4227_v49 = vld [vmem:[%s6053_s7 + $0xb8] sm:$0xff] }
 0x350   :  { %v2670_v59 = vadd.f32 %v3916_v45, %v2619_v60  ;;  %v2796_v44 = vunpack.c.l.b16 %v2736_v41  ;;  %v2811_v4 = vsel %vm1567_vm1, %v2810_v24, %v2809_v25  ;;  %v2827_v61 = vsel %vm1570_vm2, %v2826_v0, %v2825_v51  ;;  %v4204_v60 = vld [vmem:[%s6053_s7] sm:$0xff]  ;;  %v4219_v54 = vld [vmem:[%s6053_s7 + $0x78] sm:$0xff]  ;;  %v4226_v57 = vld [vmem:[%s6053_s7 + $0xb0] sm:$0xff] }
 0x351   :  { %v2671_v11 = vadd.f32 %v3917_v55, %v2621_v12  ;;  %v2813_v31 = vsel %vm1570_vm2, %v2812_v13, %v2811_v4  ;;  %v2829_v56 = vsel %vm1573_vm3, %v2828_v62, %v2827_v61  ;;  %3153 = vmatpush.bf16.msrb.mxu0 %v4217_v42  ;;  %v4225_v8 = vld [vmem:[%s6053_s7 + $0xa8] sm:$0xff]  ;;  %v4224_v16 = vld [vmem:[%s6053_s7 + $0xa0] sm:$0xff]  ;;  %vm3441_vm5 = vcmask 74752  }
 0x352   :  { %v2698_v38 = vperm.slane %v2670_v59, 0  ;;  %v2699_v10 = vperm.slane %v2670_v59, 2  ;;  %v2814_v50 = vrot.slane %v2796_v44, 1  ;;  %3047 = vmatpush.bf16.msra.mxu2 %v4210_v30 }
 0x353   :  { %v2700_v36 = vperm.slane %v2671_v11, 0  ;;  %v2701_v23 = vperm.slane %v2671_v11, 2  ;;  %3099 = vmatpush.bf16.msra.mxu3 %v4206_v15 }
 0x354   :  { %v2815_v40 = vsel %vm1573_vm3, %v2814_v50, %v2813_v31  ;;  %v2738_v6 = vpack.c.bf16 %v2698_v38, %v2698_v38  ;;  %v2739_v27 = vpack.c.bf16 %v2699_v10, %v2699_v10 }
 0x355   :  { %v2740_v1 = vpack.c.bf16 %v2700_v36, %v2700_v36  ;;  %v2741_v39 = vpack.c.bf16 %v2701_v23, %v2701_v23  ;;  %3154 = vmatpush.bf16.msrb.mxu0 %v4216_v47  ;;  %v3299_v47 = vld [vmem:[%s6055_s9 + $0x38] sm:$0xf] }
 0x356   :  { %v2798_v22 = vunpack.c.l.b16 %v2738_v6  ;;  %v2799_v43 = vunpack.c.l.b16 %v2739_v27  ;;  %3048 = vmatpush.bf16.msra.mxu2 %v4209_v3  ;;  %v4234_v3 = vld [vmem:[%s6055_s9 + $0x28] sm:$0xff] }
 0x357   :  { %v2800_v48 = vunpack.c.l.b16 %v2740_v1  ;;  %v2801_v32 = vunpack.c.l.b16 %v2741_v39  ;;  %3100 = vmatpush.bf16.msra.mxu3 %v4205_v34 }
 0x359   :  { %v2830_v63 = vrot.slane %v2800_v48, 7  ;;  %v2832_v2 = vrot.slane %v2801_v32, 7  ;;  %3155 = vmatpush.bf16.msrb.mxu0 %v4215_v14 }
 0x35a   :  { %3264 = vmatpush.bf16.msrb.mxu2 %v4228_v21  ;;  %v4231_v21 = vld [vmem:[%s6055_s9 + $0x10] sm:$0xff] }
 0x35b   :  { %v2831_v17 = vsel %vm1556_vm13, %v2830_v63, %v2798_v22  ;;  %v2833_v9 = vsel %vm1556_vm13, %v2832_v2, %v2799_v43  ;;  %3101 = vmatpush.bf16.msra.mxu3 %v4204_v60  ;;  %v4233_v60 = vld [vmem:[%s6055_s9 + $0x20] sm:$0xff] }
 0x35c   :  { %v2834_v52 = vpack.c.b16 %v2831_v17, %v2815_v40  ;;  %v2835_v58 = vpack.c.b16 %v2833_v9, %v2829_v56 }
 0x35d   :  { %3156 = vmatpush.bf16.msrb.mxu0 %v4214_v53  ;;  %v4232_v53 = vld [vmem:[%s6055_s9 + $0x18] sm:$0xff] }
 0x35e   :  { %2908 = vmatmul.bf16.vlgmr.msrb.gmra.mxu1 %v2834_v52  ;;  %3265 = vmatpush.bf16.msrb.mxu2 %v4227_v49  ;;  %v4230_v49 = vld [vmem:[%s6055_s9 + $0x8] sm:$0xff] }
 0x35f   :  { %3208 = vmatpush.bf16.msrb.mxu1 %v4223_v28 }
 0x362   :  { %3266 = vmatpush.bf16.msrb.mxu2 %v4226_v57  ;;  %v4229_v57 = vld [vmem:[%s6055_s9] sm:$0xff] }
 0x363   :  { %3209 = vmatpush.bf16.msrb.mxu1 %v4222_v35  ;;  %v3333_v35 = vunpack.c.l.b16 %v3299_v47 }
 0x365   :  { %v3341_v34 = vpack.c.b16 %v3333_v35, %v3333_v35 }
 0x366   :  { %3267 = vmatpush.bf16.msrb.mxu2 %v4225_v8 }
 0x367   :  { %3210 = vmatpush.bf16.msrb.mxu1 %v4221_v33  ;;  %v3354_v14 = vsel %vm1733_vm10, %v3341_v34, 0  ;;  %v4235_v33 = vld [vmem:[%s6055_s9 + $0x30] sm:$0xff] }
 0x368   :  { %3356 = vmatpush.bf16.msrb.mxu3 %v3354_v14 }
 0x36a   :  { %3268 = vmatpush.bf16.msrb.mxu2 %v4224_v16  ;;  %v3384_v16 = vld [vmem:[%s6057_s11 + $0x28] sm:$0x3] }
 0x36b   :  { %3211 = vmatpush.bf16.msrb.mxu1 %v4220_v37 }
 0x36c   :  { %3357 = vmatpush.bf16.msrb.mxu3 %v4235_v33 }
 0x36e   :  { %3958 = vmatmul.msk.bf16.vlgmr.msra.gmra.mxu1 %vm235_vm0, %v2835_v58  ;;  %vm3037_vm0 = vcmask 654336  }
 0x36f   :  { %3212 = vmatpush.bf16.msrb.mxu1 %v4219_v54 }
 0x370   :  { %3358 = vmatpush.bf16.msrb.mxu3 %v4234_v3 }
 0x374   :  { %3359 = vmatpush.bf16.msrb.mxu3 %v4233_v60 }
 0x378   :  { %3360 = vmatpush.bf16.msrb.mxu3 %v4232_v53 }
 0x37c   :  { %3361 = vmatpush.bf16.msrb.mxu3 %v4231_v21 }
 0x380   :  { %3362 = vmatpush.bf16.msrb.mxu3 %v4230_v49 }
 0x384   :  { %3363 = vmatpush.bf16.msrb.mxu3 %v4229_v57 }
 0x3db   :  { %v2909_v19 = vpop.f32.mrf.mxu1 }
 0x3e3   :  { %v2911_v24 = vpop.f32.mrf.mxu1 }
 0x3eb   :  { %v2923_v0 = vpop.f32.mrf.mxu1 }
 0x3ec   :  { %v2924_v12 = vadd.f32 %v2923_v0, %v2909_v19  ;;  %v3410_v0 = vunpack.c.l.b16 %v3384_v16 }
 0x3ee   :  { %v2930_v29 = vrot.slane %v2924_v12, 1  ;;  %v2935_v62 = vrot.slane %v2924_v12, 6  ;;  %v2934_v45 = vrot.slane %v2924_v12, 5  ;;  %v2931_v41 = vrot.slane %v2924_v12, 2 }
 0x3ef   :  { %v2936_v18 = vrot.slane %v2924_v12, 7  ;;  %v2996_v13 = vpack.c.bf16 %v2924_v12, %v2924_v12  ;;  %v2932_v4 = vrot.slane %v2924_v12, 3  ;;  %v2933_v52 = vrot.slane %v2924_v12, 4 }
 0x3f0   :  { %v2998_v55 = vpack.c.bf16 %v2930_v29, %v2930_v29  ;;  %v2999_v25 = vpack.c.bf16 %v2935_v62, %v2935_v62  ;;  %v2997_v51 = vpack.c.bf16 %v2934_v45, %v2934_v45  ;;  %v3107_v59 = vpack.c.bf16 %v2931_v41, %v2931_v41 }
 0x3f1   :  { %v3108_v44 = vpack.c.bf16 %v2936_v18, %v2936_v18  ;;  %v3056_v36 = vunpack.c.l.b16 %v2996_v13  ;;  %v3163_v1 = vpack.c.bf16 %v2932_v4, %v2932_v4  ;;  %v3219_v46 = vpack.c.bf16 %v2933_v52, %v2933_v52 }
 0x3f2   :  { %v3003_v61 = vunpack.c.l.b16 %v2999_v25  ;;  %v3057_v31 = vunpack.c.l.b16 %v2997_v51  ;;  %v3002_v10 = vunpack.c.l.b16 %v2998_v55  ;;  %v3111_v40 = vunpack.c.l.b16 %v3107_v59  ;;  %v4240_v55 = vld [vmem:[%s6057_s11 + $0x20] sm:$0xff] }
 0x3f3   :  { %v2925_v11 = vpop.f32.mrf.mxu1  ;;  %v3112_v56 = vunpack.c.l.b16 %v3108_v44  ;;  %v3167_v58 = vunpack.c.l.b16 %v3163_v1  ;;  %v3223_v28 = vunpack.c.l.b16 %v3219_v46  ;;  %v3416_v29 = vpack.c.b16 %v3410_v0, %v3410_v0  ;;  %v4244_v51 = vld [vmem:[%s6054_s8] ss:$0 sm:$0xff] }
 0x3f4   :  { %v2926_v38 = vadd.f32 %v2925_v11, %v2911_v24  ;;  %v3004_v50 = vrot.slane %v3003_v61, 7  ;;  %v3058_v23 = vrot.slane %v3057_v31, 7 }
 0x3f5   :  { %v3113_v6 = vrot.slane %v3112_v56, 7  ;;  %v3426_v18 = vsel %vm392_vm4, %v3416_v29, 0  ;;  %vm3349_vm4 = vcmask 982016  }
 0x3f6   :  { %v2937_v27 = vrot.slane %v2926_v38, 1  ;;  %v3164_v39 = vpack.c.bf16 %v2926_v38, %v2926_v38  ;;  %v3005_v48 = vsel %vm1556_vm13, %v3004_v50, %v3002_v10  ;;  %v3059_v22 = vsel %vm1556_vm13, %v3058_v23, %v3056_v36  ;;  %3430 = vmatpush.bf16.msra.mxu0 %v3426_v18  ;;  %v4239_v50 = vld [vmem:[%s6057_s11 + $0x18] sm:$0xff]  ;;  %v4238_v36 = vld [vmem:[%s6057_s11 + $0x10] sm:$0xff]  ;;  %v4237_v23 = vld [vmem:[%s6057_s11 + $0x8] sm:$0xff] }
 0x3f7   :  { %v3006_v32 = vpack.c.b16 %v3005_v48, %v3005_v48  ;;  %v3114_v43 = vsel %vm1556_vm13, %v3113_v6, %v3111_v40  ;;  %v3060_v17 = vpack.c.b16 %v3059_v22, %v3059_v22  ;;  %v4236_v40 = vld [vmem:[%s6057_s11] sm:$0xff] }
 0x3f8   :  { %v3168_v63 = vunpack.c.l.b16 %v3164_v39  ;;  %v3220_v2 = vpack.c.bf16 %v2937_v27, %v2937_v27  ;;  %v3115_v9 = vpack.c.b16 %v3114_v43, %v3114_v43  ;;  %v4245_v6 = vld [vmem:[%s6056_s10] ss:$0 sm:$0xff]  ;;  %s4329_s10 = smov [#allocation2]  }
 0x3f9   :  { %3979 = vmatmul.msk.bf16.vlgmr.msra.gmra.mxu2 %vm3037_vm0, %v3006_v32  ;;  %4000 = vmatmul.msk.bf16.vlgmr.msra.gmra.mxu3 %vm3037_vm0, %v3060_v17  ;;  %s3476_s11 = sshll.u32 %s4329_s10, 4  ;;  %s3477_s11 = int_to_ptr.vmem [resolvable:$true] %s3476_s11 }
 0x3fa   :  { %v3169_v7 = vrot.slane %v3168_v63, 7  ;;  %4021 = vmatmul.msk.bf16.vlgmr.msrb.gmra.mxu0 %vm3037_vm0, %v3115_v9  ;;  %v3224_v5 = vunpack.c.l.b16 %v3220_v2  ;;  %v4246_v2 = vld [vmem:[%s6058_s12] ss:$0 sm:$0xff] }
 0x3fb   :  { %3431 = vmatpush.bf16.msra.mxu0 %v4240_v55 }
 0x3fc   :  { %v3170_v26 = vsel %vm1556_vm13, %v3169_v7, %v3167_v58  ;;  %v3225_v42 = vrot.slane %v3224_v5, 7 }
 0x3fd   :  { %v3171_v20 = vpack.c.b16 %v3170_v26, %v3170_v26 }
 0x3fe   :  { %v3226_v30 = vsel %vm1556_vm13, %v3225_v42, %v3223_v28  ;;  %vm3469_vm13 = vcmask 73728  }
 0x3ff   :  { %4042 = vmatmul.msk.bf16.vlgmr.msrb.gmra.mxu1 %vm3037_vm0, %v3171_v20  ;;  %v3227_v15 = vpack.c.b16 %v3226_v30, %v3226_v30  ;;  %3432 = vmatpush.bf16.msra.mxu0 %v4239_v50 }
 0x403   :  { %3433 = vmatpush.bf16.msra.mxu0 %v4238_v36 }
 0x407   :  { %3434 = vmatpush.bf16.msra.mxu0 %v4237_v23 }
 0x409   :  { %4063 = vmatmul.msk.bf16.vlgmr.msrb.gmra.mxu2 %vm3037_vm0, %v3227_v15 }
 0x40b   :  { %3435 = vmatpush.bf16.msra.mxu0 %v4236_v40 }
 0x477   :  { %v3158_v37 = vpop.f32.mrf.mxu0 }
 0x47c   :  { %v3050_v19 = vpop.f32.mrf.mxu2  ;;  %v3214_v54 = vpop.f32.mrf.mxu1 }
 0x47d   :  { %v3103_v8 = vpop.f32.mrf.mxu3 }
 0x47e   :  { %v3104_v12 = vadd.f32 %v3103_v8, %v3050_v19 }
 0x47f   :  { %v3160_v24 = vpop.f32.mrf.mxu0 }
 0x480   :  { %v3162_v25 = vadd.f32 %v3158_v37, %v3104_v12 }
 0x482   :  { %v3218_v13 = vadd.f32 %v3214_v54, %v3162_v25 }
 0x484   :  { %v3052_v62 = vpop.f32.mrf.mxu2  ;;  %v3216_v45 = vpop.f32.mrf.mxu1 }
 0x485   :  { %v3105_v41 = vpop.f32.mrf.mxu3 }
 0x48c   :  { %v3270_v59 = vpop.f32.mrf.mxu2 }
 0x48d   :  { %v3274_v44 = vadd.f32 %v3270_v59, %v3218_v13 }
 0x48f   :  { %v3279_v4 = vadd.f32 %v4244_v51, %v3274_v44 }
 0x491   :  { %v3280_v61 = vmul.f32 0.5, %v3279_v4 }
 0x493   :  { %4295 = vtanh.f32 %v3280_v61 }
 0x494   :  { %v3272_v11 = vpop.f32.mrf.mxu2 }
 0x499   :  { %v4296_v31 = vpop.eup %4295 }
 0x49a   :  { %v3282_v56 = vmul.f32 0.5, %v4296_v31 }
 0x49c   :  { %v3283_v38 = vadd.f32 0.5, %v3282_v56 }
 0x49e   :  { %v3284_v10 = vpack.c.bf16 %v3283_v38, %v3283_v38 }
 0x4a0   :  { %4092 = vmatmul.msk.bf16.vlgmr.msrb.gmra.mxu3 %vm3349_vm4, %v3284_v10 }
 0x523   :  { %v3365_v27 = vpop.f32.mrf.mxu3 }
 0x524   :  { %v3366_v1 = vadd.f32 %v4245_v6, %v3365_v27 }
 0x526   :  { %v3369_v39 = vmul.f32 0.5, %v3366_v1 }
 0x528   :  { %4297 = vtanh.f32 %v3369_v39 }
 0x52b   :  { %v3367_v48 = vpop.f32.mrf.mxu3 }
 0x52e   :  { %v4298_v32 = vpop.eup %4297 }
 0x52f   :  { %v3371_v22 = vmul.f32 0.5, %v4298_v32 }
 0x531   :  { %v3372_v43 = vadd.f32 0.5, %v3371_v22 }
 0x533   :  { %v3373_v63 = vpack.c.bf16 %v3372_v43, %v3372_v43 }
 0x535   :  { %4113 = vmatmul.msk.bf16.vlgmr.msra.gmra.mxu0 %vm2000_vm9, %v3373_v63 }
 0x5b2   :  { %v3437_v17 = vpop.f32.mrf.mxu0 }
 0x5b3   :  { %v3438_v9 = vadd.f32 %v4246_v2, %v3437_v17 }
 0x5b5   :  { %v3442_v52 = vsel %vm3441_vm5, %v3438_v9, -inf }
 0x5b6   :  { %3443 = vmax.xlane.f32.xlu0 %v3442_v52 }
 0x5ba   :  { %v3439_v58 = vpop.f32.mrf.mxu0 }
 0x629   :  { %v3444_v7 = vpop.xlane.xlu0 %3443 }
 0x62a   :  { %v3445_v26 = vsub.f32 %v3438_v9, %v3444_v7 }
 0x62c   :  { %v3446_v5 = vmul.f32 1.442695, %v3445_v26 }
 0x62e   :  { %4299 = vpow2.f32 %v3446_v5 }
 0x634   :  { %v4300_v20 = vpop.eup %4299 }
 0x635   :  { %v3448_v46 = vsel %vm3441_vm5, %v4300_v20, 0.0 }
 0x636   :  { %3449 = vadd.xlane.f32.xlu0 %v3448_v46 }
 0x6a9   :  { %v3450_v42 = vpop.xlane.xlu0 %3449 }
 0x6aa   :  { %4301 = vrcp.f32 %v3450_v42  ;;  %v3462_v47 = vand.u32 2147483648, %v3450_v42  ;;  %v3460_v34 = vand.u32 2147483647, %v3450_v42  ;;  %vm3456_vm10 = vweird.f32 %v3450_v42 }
 0x6ac   :  { %v3463_v33 = vor.u32 1.1754944e-38, %v3462_v47  ;;  %vm3461_vm12 = vcmp.eq.f32.partialorder %v3460_v34, 8.507059e+37 }
 0x6b0   :  { %v4302_v28 = vpop.eup %4301 }
 0x6b1   :  { %v3452_v30 = vmul.f32 %v4302_v28, %v3450_v42  ;;  %vm3457_vm8 = vweird.f32 %v4302_v28 }
 0x6b2   :  { %vm3458_vm11 = vmor %vm3456_vm10, %vm3457_vm8 }
 0x6b3   :  { %v3453_v15 = vsub.f32 1.0, %v3452_v30 }
 0x6b5   :  { %v3454_v35 = vmul.f32 %v4302_v28, %v3453_v15 }
 0x6b7   :  { %v3455_v14 = vadd.f32 %v4302_v28, %v3454_v35 }
 0x6b9   :  { %v3459_v3 = vsel %vm3458_vm11, %v4302_v28, %v3455_v14 }
 0x6ba   :  { %v3464_v60 = vsel %vm3461_vm12, %v3463_v33, %v3459_v3 }
 0x6bb   :  { %v3465_v53 = vmul.f32 %v4300_v20, %v3464_v60 }
 0x6bd   :  { %v3467_v21 = vrot.slane %v3465_v53, 1  ;;  %3470 = vst.msk [vmem:[#allocation2] sm:$0x1] %vm3469_vm13, %v3465_v53 }
 0x6bf   :  { %3471 = vst.msk [vmem:[#allocation2 + $0x1] sm:$0x1] %vm3469_vm13, %v3467_v21 }
 0x6c0   :  { %3484 = dma.vmem_to_hbm [thread:$0]  %s3477_s11, 32, %s3479_s22, [#allocation3], %s4330_s23, %s4330_s23, %s4331_s24  }
 0x6c1   :  { %4327 = dma.done.wait [#allocation3], 32  }
 0x6c2   :  { %4328 = vsyncadd [#allocation3], 4294967264 }
 0x6c3   :  { %3489 = vsyncpa [#allocation3], 1 }

</bundles_post_ra>
